<compile_context>
chip_gen: v7x
topology: tpu7x:2x2x1
jax: 0.10.0
libtpu: 0.0.40
codegen_flags: <defaults>
</compile_context>

<pallas_src>
import functools

import jax
import jax.numpy as jnp
from jax.experimental import pallas as pl
from jax.experimental.pallas import tpu as pltpu


# ----------------------------------------------------------------------------
# Single fused kernel:
#   projection (1x1 conv, E=C=1  => per-pixel scalar affine)              -> proj_ref
#   Tception1/2/3 (Conv2d(1,k)+ReLU) -> BN(folded) -> depthwise(63,1)
#     -> concat -> ELU -> AvgPool(1,4)                                    -> aux_ref
# Whole batch processed in one grid step; all scalars come from SMEM.
# ----------------------------------------------------------------------------
def _fused_tsception_kernel(x_ref, taps_ref, scal_ref, dw_ref,
                            proj_ref, aux_ref, cat_ref,
                            *, B, H, ks, Wouts, Wc, Wp):
    k1, k2, k3 = ks
    W1, W2, W3 = Wouts

    x = x_ref[...]                                   # (B, H, W) f32, whole batch in VMEM

    # ---- projection = Conv2d(1x1) with E == C == 1: per-pixel scalar affine ----
    # Kept lane-dense (W on lanes); rearrange is a free reshape in the wrapper.
    proj_ref[...] = scal_ref[4] * x + scal_ref[5]

    # ---- Tception branches -> ReLU -> BN-folded depthwise (63,1), Ho == 1 ----
    dwb = dw_ref[...][None, :, :]                    # (1, H, 1) BN-scaled depthwise taps

    def branch(off, k, Wout, bias):
        acc = jnp.zeros((B, H, Wout), jnp.float32)
        for t in range(k):                           # static unroll, k <= 20 taps
            acc = acc + taps_ref[off + t] * x[:, :, t:t + Wout]
        y = jnp.maximum(acc + bias, 0.0)             # conv bias + ReLU
        # depthwise (63,1) conv == weighted sum over H: broadcast-mul + sublane reduce
        return jnp.sum(y * dwb, axis=1)              # (B, Wout)

    # write branches into disjoint column ranges of the concatenated row (no HBM concat)
    cat_ref[:, 0:W1]       = branch(0,       k1, W1, scal_ref[0])
    cat_ref[:, W1:W1 + W2] = branch(k1,      k2, W2, scal_ref[1])
    cat_ref[:, W1 + W2:Wc] = branch(k1 + k2, k3, W3, scal_ref[2])

    r = cat_ref[...] + scal_ref[3]                   # folded depthwise bias + BN shift
    # ELU (alpha = 1)
    z = jnp.where(r > 0, r, jnp.exp(jnp.minimum(r, 0.0)) - 1.0)
    # AvgPool2d((1, 4)), floor semantics (matches PyTorch default stride == kernel)
    zt = z[:, :Wp * 4].reshape(B, Wp, 4)
    aux_ref[...] = jnp.sum(zt, axis=-1) * 0.25
    # TODO(synk): Dropout(0.5) train-mode mask omitted (eval identity; branch is discarded).


# ----------------------------------------------------------------------------
# Full forward (mirrors TSception.forward).  Returns (module_output, aux_out):
# module_output == projection(x) (the only tensor the PyTorch forward returns),
# aux_out is the computed-then-discarded Tception branch.
# ----------------------------------------------------------------------------
def tsception_forward(x, p, eps=1e-5):
    B, C, H, W = x.shape
    E = p["pr_w"].shape[0]
    assert C == 1 and E == C, "reference forward only type-checks for emb_size == in_channels == 1"
    KH = p["dw_w"].shape[2]
    assert H == KH, "depthwise_conv hard-codes a (63,1) kernel -> 63 electrode rows (Ho == 1)"

    k1 = p["t1_w"].shape[-1]
    k2 = p["t2_w"].shape[-1]
    k3 = p["t3_w"].shape[-1]
    W1, W2, W3 = W - k1 + 1, W - k2 + 1, W - k3 + 1
    Wc = W1 + W2 + W3
    Wp = Wc // 4

    # Fold eval-mode BN_t into the depthwise conv (both linear, they commute):
    #   BN(y) = s*y + sh ;  depthwise(z)[w] = sum_h dw[h]*z[h,w] + db
    #   =>  dw' = s*dw ,  db' = db + sh*sum_h dw[h]
    bn_scale = p["bn_gamma"][0] * jax.lax.rsqrt(p["bn_var"][0] + eps)
    bn_shift = p["bn_beta"][0] - bn_scale * p["bn_mean"][0]
    dw = p["dw_w"][0, 0, :, 0]                                            # (H,)
    dw_fold = (bn_scale * dw).reshape(H, 1).astype(jnp.float32)           # VMEM (H, 1)
    db_fold = p["dw_b"][0] + bn_shift * jnp.sum(dw)

    # Scalar parameters -> SMEM (no padded (8,128) VMEM tiles, no tiny per-step DMAs).
    taps = jnp.concatenate([p["t1_w"].reshape(-1), p["t2_w"].reshape(-1),
                            p["t3_w"].reshape(-1)]).astype(jnp.float32)   # (k1+k2+k3,)
    scal = jnp.stack([p["t1_b"][0], p["t2_b"][0], p["t3_b"][0],
                      db_fold, p["pr_w"][0, 0, 0, 0], p["pr_b"][0]]).astype(jnp.float32)  # (6,)

    x3 = x[:, 0, :, :].astype(jnp.float32)                                # (B, H, W)

    kernel = functools.partial(_fused_tsception_kernel, B=B, H=H,
                               ks=(k1, k2, k3), Wouts=(W1, W2, W3), Wc=Wc, Wp=Wp)

    proj3, aux2 = pl.pallas_call(
        kernel,
        out_shape=(jax.ShapeDtypeStruct((B, H, W), jnp.float32),
                   jax.ShapeDtypeStruct((B, Wp), jnp.float32)),
        grid=(1,),                                    # whole batch in one step (<100 KB working set)
        in_specs=[
            pl.BlockSpec((B, H, W), lambda i: (0, 0, 0)),
            pl.BlockSpec(memory_space=pltpu.MemorySpace.SMEM),   # temporal conv taps
            pl.BlockSpec(memory_space=pltpu.MemorySpace.SMEM),   # biases / folded scalars
            pl.BlockSpec((H, 1), lambda i: (0, 0)),              # BN-folded depthwise weights
        ],
        out_specs=[
            pl.BlockSpec((B, H, W), lambda i: (0, 0, 0)),        # projection, lane-dense
            pl.BlockSpec((B, Wp), lambda i: (0, 0)),             # aux branch output
        ],
        scratch_shapes=[pltpu.VMEM((B, Wc), jnp.float32)],       # concatenated (post-depthwise) row
    )(x3, taps, scal, dw_fold)

    # Rearrange 'b e (h) (w) -> b (h w) e' with e == 1 is a free contiguous reshape.
    proj = proj3.reshape(B, H * W, E)
    aux = aux2.reshape(B, E, 1, Wp)                  # (B, E, Ho=1, Wp)
    return proj, aux


# ----------------------------------------------------------------------------
# Pure-JAX reference (lax.conv, highest precision) for verification.
# ----------------------------------------------------------------------------
def reference_forward(x, p, eps=1e-5):
    dn = ("NCHW", "OIHW", "NCHW")
    hp = jax.lax.Precision.HIGHEST

    def conv(inp, w, b, groups=1):
        y = jax.lax.conv_general_dilated(
            inp, w, (1, 1), "VALID", dimension_numbers=dn,
            feature_group_count=groups, precision=hp)
        return y + b[None, :, None, None]

    y1 = jax.nn.relu(conv(x, p["t1_w"], p["t1_b"]))
    y2 = jax.nn.relu(conv(x, p["t2_w"], p["t2_b"]))
    y3 = jax.nn.relu(conv(x, p["t3_w"], p["t3_b"]))
    out = jnp.concatenate([y1, y2, y3], axis=-1)
    scale = p["bn_gamma"] / jnp.sqrt(p["bn_var"] + eps)
    out = (out - p["bn_mean"][None, :, None, None]) * scale[None, :, None, None] \
        + p["bn_beta"][None, :, None, None]
    out = conv(out, p["dw_w"], p["dw_b"], groups=out.shape[1])
    out = jnp.where(out > 0, out, jnp.exp(jnp.minimum(out, 0.0)) - 1.0)
    Wc = out.shape[-1]
    Wp = Wc // 4
    out = out[..., :Wp * 4].reshape(out.shape[0], out.shape[1], out.shape[2], Wp, 4).mean(-1)

    proj = conv(x, p["pr_w"], p["pr_b"])
    B, E, H, W = proj.shape
    proj = jnp.transpose(proj, (0, 2, 3, 1)).reshape(B, H * W, E)
    return proj, out


if __name__ == "__main__":
    # Small config consistent with the module: sampling_rate=40 -> temporal
    # kernels (1,20)/(1,8)/(1,4); emb_size=1 (see note at top); H=63 is forced
    # by the hard-coded (63,1) depthwise kernel.
    sampling_rate, E = 40, 1
    B, C, H, W = 2, 1, 63, 64
    k1 = int(0.5 * sampling_rate)
    k2 = int(0.2 * sampling_rate)
    k3 = int(0.1 * sampling_rate)

    key = jax.random.PRNGKey(0)
    ks = jax.random.split(key, 16)

    def nrm(k, shape, s=0.1):
        return s * jax.random.normal(k, shape, jnp.float32)

    params = {
        "t1_w": nrm(ks[0], (E, 1, 1, k1)), "t1_b": nrm(ks[1], (E,)),
        "t2_w": nrm(ks[2], (E, 1, 1, k2)), "t2_b": nrm(ks[3], (E,)),
        "t3_w": nrm(ks[4], (E, 1, 1, k3)), "t3_b": nrm(ks[5], (E,)),
        "bn_gamma": 1.0 + nrm(ks[6], (E,)), "bn_beta": nrm(ks[7], (E,)),
        "bn_mean": nrm(ks[8], (E,)),
        "bn_var": 1.0 + 0.1 * jax.random.uniform(ks[9], (E,), jnp.float32),
        "dw_w": nrm(ks[10], (E, 1, 63, 1)), "dw_b": nrm(ks[11], (E,)),
        "pr_w": nrm(ks[12], (E, E, 1, 1)), "pr_b": nrm(ks[13], (E,)),
    }
    x = jax.random.normal(ks[14], (B, C, H, W), jnp.float32)

    fwd = jax.jit(tsception_forward)
    proj, aux = fwd(x, params)
    jax.block_until_ready((proj, aux))

    # Sanity: shapes and numerics against the pure-JAX reference.
    proj_ref, aux_ref = reference_forward(x, params)
    assert proj.shape == (B, H * W, E)
    assert aux.shape == aux_ref.shape
    assert bool(jnp.allclose(proj, proj_ref, rtol=5e-4, atol=5e-4))
    assert bool(jnp.allclose(aux, aux_ref, rtol=5e-4, atol=5e-4))

    print("KERNEL_OK")
</pallas_src>

<mosaic_0001>
module attributes {stable_mosaic.version = 11 : i64} {
  func.func @_fused_tsception_kernel(%arg0: i32, %arg1: memref<2x63x64xf32, #tpu.memory_space<vmem>>, %arg2: memref<32xf32, #tpu.memory_space<smem>>, %arg3: memref<6xf32, #tpu.memory_space<smem>>, %arg4: memref<63x1xf32, #tpu.memory_space<vmem>>, %arg5: memref<2x63x64xf32, #tpu.memory_space<vmem>>, %arg6: memref<2x40xf32, #tpu.memory_space<vmem>>, %arg7: memref<2x163xf32, #tpu.memory_space<vmem>>) attributes {dimension_semantics = [#tpu.dimension_semantics<arbitrary>], iteration_bounds = array<i64: 1>, scalar_prefetch = 0 : i64, scratch_operands = 1 : i64, tpu.core_type = #tpu.core_type<tc>, window_params = [{pipeline_mode = #tpu.pipeline_mode<synchronous>, transform_indices = @transform_0, window_bounds = array<i64: 2, 63, 64>}, {transform_indices = @transform_1, window_bounds = array<i64: 32>}, {transform_indices = @transform_2, window_bounds = array<i64: 6>}, {pipeline_mode = #tpu.pipeline_mode<synchronous>, transform_indices = @transform_3, window_bounds = array<i64: 63, 1>}, {pipeline_mode = #tpu.pipeline_mode<synchronous>, transform_indices = @transform_4, window_bounds = array<i64: 2, 63, 64>}, {pipeline_mode = #tpu.pipeline_mode<synchronous>, transform_indices = @transform_5, window_bounds = array<i64: 2, 40>}]} {
    %c0 = arith.constant 0 : index
    %c0_0 = arith.constant 0 : index
    %c0_1 = arith.constant 0 : index
    %0 = vector.load %arg1[%c0, %c0_0, %c0_1] : memref<2x63x64xf32, #tpu.memory_space<vmem>>, vector<2x63x64xf32>
    %c4 = arith.constant 4 : index
    %1 = memref.load %arg3[%c4] : memref<6xf32, #tpu.memory_space<smem>>
    %2 = vector.broadcast %1 : f32 to vector<2x63x64xf32>
    %3 = arith.mulf %2, %0 : vector<2x63x64xf32>
    %c5 = arith.constant 5 : index
    %4 = memref.load %arg3[%c5] : memref<6xf32, #tpu.memory_space<smem>>
    %5 = vector.broadcast %4 : f32 to vector<2x63x64xf32>
    %6 = arith.addf %3, %5 : vector<2x63x64xf32>
    %c0_2 = arith.constant 0 : index
    %c0_3 = arith.constant 0 : index
    %c0_4 = arith.constant 0 : index
    %7 = vector.load %arg5[%c0_2, %c0_3, %c0_4] : memref<2x63x64xf32, #tpu.memory_space<vmem>>, vector<2x63x64xf32>
    tpu.vector_store %arg5[%c0_2, %c0_3, %c0_4], %6 {strides = array<i32>} : memref<2x63x64xf32, #tpu.memory_space<vmem>>, vector<2x63x64xf32>,
    %c0_5 = arith.constant 0 : index
    %c0_6 = arith.constant 0 : index
    %8 = vector.load %arg4[%c0_5, %c0_6] : memref<63x1xf32, #tpu.memory_space<vmem>>, vector<63x1xf32>
    %9 = vector.shape_cast %8 : vector<63x1xf32> to vector<1x63x1xf32>
    %c0_7 = arith.constant 0 : index
    %10 = memref.load %arg3[%c0_7] : memref<6xf32, #tpu.memory_space<smem>>
    %cst = arith.constant 0.000000e+00 : f32
    %11 = vector.broadcast %cst : f32 to vector<2x63x45xf32>
    %c0_8 = arith.constant 0 : index
    %12 = memref.load %arg2[%c0_8] : memref<32xf32, #tpu.memory_space<smem>>
    %13 = vector.extract_strided_slice %0 {offsets = [0, 0, 0], sizes = [2, 63, 45], strides = [1, 1, 1]} : vector<2x63x64xf32> to vector<2x63x45xf32>
    %14 = vector.broadcast %12 : f32 to vector<2x63x45xf32>
    %15 = arith.mulf %14, %13 : vector<2x63x45xf32>
    %16 = arith.addf %11, %15 : vector<2x63x45xf32>
    %c1 = arith.constant 1 : index
    %17 = memref.load %arg2[%c1] : memref<32xf32, #tpu.memory_space<smem>>
    %18 = vector.extract_strided_slice %0 {offsets = [0, 0, 1], sizes = [2, 63, 45], strides = [1, 1, 1]} : vector<2x63x64xf32> to vector<2x63x45xf32>
    %19 = vector.broadcast %17 : f32 to vector<2x63x45xf32>
    %20 = arith.mulf %19, %18 : vector<2x63x45xf32>
    %21 = arith.addf %16, %20 : vector<2x63x45xf32>
    %c2 = arith.constant 2 : index
    %22 = memref.load %arg2[%c2] : memref<32xf32, #tpu.memory_space<smem>>
    %23 = vector.extract_strided_slice %0 {offsets = [0, 0, 2], sizes = [2, 63, 45], strides = [1, 1, 1]} : vector<2x63x64xf32> to vector<2x63x45xf32>
    %24 = vector.broadcast %22 : f32 to vector<2x63x45xf32>
    %25 = arith.mulf %24, %23 : vector<2x63x45xf32>
    %26 = arith.addf %21, %25 : vector<2x63x45xf32>
    %c3 = arith.constant 3 : index
    %27 = memref.load %arg2[%c3] : memref<32xf32, #tpu.memory_space<smem>>
    %28 = vector.extract_strided_slice %0 {offsets = [0, 0, 3], sizes = [2, 63, 45], strides = [1, 1, 1]} : vector<2x63x64xf32> to vector<2x63x45xf32>
    %29 = vector.broadcast %27 : f32 to vector<2x63x45xf32>
    %30 = arith.mulf %29, %28 : vector<2x63x45xf32>
    %31 = arith.addf %26, %30 : vector<2x63x45xf32>
    %c4_9 = arith.constant 4 : index
    %32 = memref.load %arg2[%c4_9] : memref<32xf32, #tpu.memory_space<smem>>
    %33 = vector.extract_strided_slice %0 {offsets = [0, 0, 4], sizes = [2, 63, 45], strides = [1, 1, 1]} : vector<2x63x64xf32> to vector<2x63x45xf32>
    %34 = vector.broadcast %32 : f32 to vector<2x63x45xf32>
    %35 = arith.mulf %34, %33 : vector<2x63x45xf32>
    %36 = arith.addf %31, %35 : vector<2x63x45xf32>
    %c5_10 = arith.constant 5 : index
    %37 = memref.load %arg2[%c5_10] : memref<32xf32, #tpu.memory_space<smem>>
    %38 = vector.extract_strided_slice %0 {offsets = [0, 0, 5], sizes = [2, 63, 45], strides = [1, 1, 1]} : vector<2x63x64xf32> to vector<2x63x45xf32>
    %39 = vector.broadcast %37 : f32 to vector<2x63x45xf32>
    %40 = arith.mulf %39, %38 : vector<2x63x45xf32>
    %41 = arith.addf %36, %40 : vector<2x63x45xf32>
    %c6 = arith.constant 6 : index
    %42 = memref.load %arg2[%c6] : memref<32xf32, #tpu.memory_space<smem>>
    %43 = vector.extract_strided_slice %0 {offsets = [0, 0, 6], sizes = [2, 63, 45], strides = [1, 1, 1]} : vector<2x63x64xf32> to vector<2x63x45xf32>
    %44 = vector.broadcast %42 : f32 to vector<2x63x45xf32>
    %45 = arith.mulf %44, %43 : vector<2x63x45xf32>
    %46 = arith.addf %41, %45 : vector<2x63x45xf32>
    %c7 = arith.constant 7 : index
    %47 = memref.load %arg2[%c7] : memref<32xf32, #tpu.memory_space<smem>>
    %48 = vector.extract_strided_slice %0 {offsets = [0, 0, 7], sizes = [2, 63, 45], strides = [1, 1, 1]} : vector<2x63x64xf32> to vector<2x63x45xf32>
    %49 = vector.broadcast %47 : f32 to vector<2x63x45xf32>
    %50 = arith.mulf %49, %48 : vector<2x63x45xf32>
    %51 = arith.addf %46, %50 : vector<2x63x45xf32>
    %c8 = arith.constant 8 : index
    %52 = memref.load %arg2[%c8] : memref<32xf32, #tpu.memory_space<smem>>
    %53 = vector.extract_strided_slice %0 {offsets = [0, 0, 8], sizes = [2, 63, 45], strides = [1, 1, 1]} : vector<2x63x64xf32> to vector<2x63x45xf32>
    %54 = vector.broadcast %52 : f32 to vector<2x63x45xf32>
    %55 = arith.mulf %54, %53 : vector<2x63x45xf32>
    %56 = arith.addf %51, %55 : vector<2x63x45xf32>
    %c9 = arith.constant 9 : index
    %57 = memref.load %arg2[%c9] : memref<32xf32, #tpu.memory_space<smem>>
    %58 = vector.extract_strided_slice %0 {offsets = [0, 0, 9], sizes = [2, 63, 45], strides = [1, 1, 1]} : vector<2x63x64xf32> to vector<2x63x45xf32>
    %59 = vector.broadcast %57 : f32 to vector<2x63x45xf32>
    %60 = arith.mulf %59, %58 : vector<2x63x45xf32>
    %61 = arith.addf %56, %60 : vector<2x63x45xf32>
    %c10 = arith.constant 10 : index
    %62 = memref.load %arg2[%c10] : memref<32xf32, #tpu.memory_space<smem>>
    %63 = vector.extract_strided_slice %0 {offsets = [0, 0, 10], sizes = [2, 63, 45], strides = [1, 1, 1]} : vector<2x63x64xf32> to vector<2x63x45xf32>
    %64 = vector.broadcast %62 : f32 to vector<2x63x45xf32>
    %65 = arith.mulf %64, %63 : vector<2x63x45xf32>
    %66 = arith.addf %61, %65 : vector<2x63x45xf32>
    %c11 = arith.constant 11 : index
    %67 = memref.load %arg2[%c11] : memref<32xf32, #tpu.memory_space<smem>>
    %68 = vector.extract_strided_slice %0 {offsets = [0, 0, 11], sizes = [2, 63, 45], strides = [1, 1, 1]} : vector<2x63x64xf32> to vector<2x63x45xf32>
    %69 = vector.broadcast %67 : f32 to vector<2x63x45xf32>
    %70 = arith.mulf %69, %68 : vector<2x63x45xf32>
    %71 = arith.addf %66, %70 : vector<2x63x45xf32>
    %c12 = arith.constant 12 : index
    %72 = memref.load %arg2[%c12] : memref<32xf32, #tpu.memory_space<smem>>
    %73 = vector.extract_strided_slice %0 {offsets = [0, 0, 12], sizes = [2, 63, 45], strides = [1, 1, 1]} : vector<2x63x64xf32> to vector<2x63x45xf32>
    %74 = vector.broadcast %72 : f32 to vector<2x63x45xf32>
    %75 = arith.mulf %74, %73 : vector<2x63x45xf32>
    %76 = arith.addf %71, %75 : vector<2x63x45xf32>
    %c13 = arith.constant 13 : index
    %77 = memref.load %arg2[%c13] : memref<32xf32, #tpu.memory_space<smem>>
    %78 = vector.extract_strided_slice %0 {offsets = [0, 0, 13], sizes = [2, 63, 45], strides = [1, 1, 1]} : vector<2x63x64xf32> to vector<2x63x45xf32>
    %79 = vector.broadcast %77 : f32 to vector<2x63x45xf32>
    %80 = arith.mulf %79, %78 : vector<2x63x45xf32>
    %81 = arith.addf %76, %80 : vector<2x63x45xf32>
    %c14 = arith.constant 14 : index
    %82 = memref.load %arg2[%c14] : memref<32xf32, #tpu.memory_space<smem>>
    %83 = vector.extract_strided_slice %0 {offsets = [0, 0, 14], sizes = [2, 63, 45], strides = [1, 1, 1]} : vector<2x63x64xf32> to vector<2x63x45xf32>
    %84 = vector.broadcast %82 : f32 to vector<2x63x45xf32>
    %85 = arith.mulf %84, %83 : vector<2x63x45xf32>
    %86 = arith.addf %81, %85 : vector<2x63x45xf32>
    %c15 = arith.constant 15 : index
    %87 = memref.load %arg2[%c15] : memref<32xf32, #tpu.memory_space<smem>>
    %88 = vector.extract_strided_slice %0 {offsets = [0, 0, 15], sizes = [2, 63, 45], strides = [1, 1, 1]} : vector<2x63x64xf32> to vector<2x63x45xf32>
    %89 = vector.broadcast %87 : f32 to vector<2x63x45xf32>
    %90 = arith.mulf %89, %88 : vector<2x63x45xf32>
    %91 = arith.addf %86, %90 : vector<2x63x45xf32>
    %c16 = arith.constant 16 : index
    %92 = memref.load %arg2[%c16] : memref<32xf32, #tpu.memory_space<smem>>
    %93 = vector.extract_strided_slice %0 {offsets = [0, 0, 16], sizes = [2, 63, 45], strides = [1, 1, 1]} : vector<2x63x64xf32> to vector<2x63x45xf32>
    %94 = vector.broadcast %92 : f32 to vector<2x63x45xf32>
    %95 = arith.mulf %94, %93 : vector<2x63x45xf32>
    %96 = arith.addf %91, %95 : vector<2x63x45xf32>
    %c17 = arith.constant 17 : index
    %97 = memref.load %arg2[%c17] : memref<32xf32, #tpu.memory_space<smem>>
    %98 = vector.extract_strided_slice %0 {offsets = [0, 0, 17], sizes = [2, 63, 45], strides = [1, 1, 1]} : vector<2x63x64xf32> to vector<2x63x45xf32>
    %99 = vector.broadcast %97 : f32 to vector<2x63x45xf32>
    %100 = arith.mulf %99, %98 : vector<2x63x45xf32>
    %101 = arith.addf %96, %100 : vector<2x63x45xf32>
    %c18 = arith.constant 18 : index
    %102 = memref.load %arg2[%c18] : memref<32xf32, #tpu.memory_space<smem>>
    %103 = vector.extract_strided_slice %0 {offsets = [0, 0, 18], sizes = [2, 63, 45], strides = [1, 1, 1]} : vector<2x63x64xf32> to vector<2x63x45xf32>
    %104 = vector.broadcast %102 : f32 to vector<2x63x45xf32>
    %105 = arith.mulf %104, %103 : vector<2x63x45xf32>
    %106 = arith.addf %101, %105 : vector<2x63x45xf32>
    %c19 = arith.constant 19 : index
    %107 = memref.load %arg2[%c19] : memref<32xf32, #tpu.memory_space<smem>>
    %108 = vector.extract_strided_slice %0 {offsets = [0, 0, 19], sizes = [2, 63, 45], strides = [1, 1, 1]} : vector<2x63x64xf32> to vector<2x63x45xf32>
    %109 = vector.broadcast %107 : f32 to vector<2x63x45xf32>
    %110 = arith.mulf %109, %108 : vector<2x63x45xf32>
    %111 = arith.addf %106, %110 : vector<2x63x45xf32>
    %112 = vector.broadcast %10 : f32 to vector<2x63x45xf32>
    %113 = arith.addf %111, %112 : vector<2x63x45xf32>
    %cst_11 = arith.constant 0.000000e+00 : f32
    %114 = vector.broadcast %cst_11 : f32 to vector<2x63x45xf32>
    %115 = arith.maximumf %113, %114 : vector<2x63x45xf32>
    %116 = vector.broadcast %9 : vector<1x63x1xf32> to vector<2x63x45xf32>
    %117 = arith.mulf %115, %116 : vector<2x63x45xf32>
    %cst_12 = arith.constant dense<0.000000e+00> : vector<2x45xf32>
    %118 = vector.multi_reduction <add>, %117, %cst_12 [1] : vector<2x63x45xf32> to vector<2x45xf32>
    %c0_13 = arith.constant 0 : index
    %c0_14 = arith.constant 0 : index
    %119 = vector.load %arg7[%c0_13, %c0_14] : memref<2x163xf32, #tpu.memory_space<vmem>>, vector<2x45xf32>
    tpu.vector_store %arg7[%c0_13, %c0_14], %118 {strides = array<i32>} : memref<2x163xf32, #tpu.memory_space<vmem>>, vector<2x45xf32>,
    %c1_15 = arith.constant 1 : index
    %120 = memref.load %arg3[%c1_15] : memref<6xf32, #tpu.memory_space<smem>>
    %cst_16 = arith.constant 0.000000e+00 : f32
    %121 = vector.broadcast %cst_16 : f32 to vector<2x63x57xf32>
    %c20 = arith.constant 20 : index
    %122 = memref.load %arg2[%c20] : memref<32xf32, #tpu.memory_space<smem>>
    %123 = vector.extract_strided_slice %0 {offsets = [0, 0, 0], sizes = [2, 63, 57], strides = [1, 1, 1]} : vector<2x63x64xf32> to vector<2x63x57xf32>
    %124 = vector.broadcast %122 : f32 to vector<2x63x57xf32>
    %125 = arith.mulf %124, %123 : vector<2x63x57xf32>
    %126 = arith.addf %121, %125 : vector<2x63x57xf32>
    %c21 = arith.constant 21 : index
    %127 = memref.load %arg2[%c21] : memref<32xf32, #tpu.memory_space<smem>>
    %128 = vector.extract_strided_slice %0 {offsets = [0, 0, 1], sizes = [2, 63, 57], strides = [1, 1, 1]} : vector<2x63x64xf32> to vector<2x63x57xf32>
    %129 = vector.broadcast %127 : f32 to vector<2x63x57xf32>
    %130 = arith.mulf %129, %128 : vector<2x63x57xf32>
    %131 = arith.addf %126, %130 : vector<2x63x57xf32>
    %c22 = arith.constant 22 : index
    %132 = memref.load %arg2[%c22] : memref<32xf32, #tpu.memory_space<smem>>
    %133 = vector.extract_strided_slice %0 {offsets = [0, 0, 2], sizes = [2, 63, 57], strides = [1, 1, 1]} : vector<2x63x64xf32> to vector<2x63x57xf32>
    %134 = vector.broadcast %132 : f32 to vector<2x63x57xf32>
    %135 = arith.mulf %134, %133 : vector<2x63x57xf32>
    %136 = arith.addf %131, %135 : vector<2x63x57xf32>
    %c23 = arith.constant 23 : index
    %137 = memref.load %arg2[%c23] : memref<32xf32, #tpu.memory_space<smem>>
    %138 = vector.extract_strided_slice %0 {offsets = [0, 0, 3], sizes = [2, 63, 57], strides = [1, 1, 1]} : vector<2x63x64xf32> to vector<2x63x57xf32>
    %139 = vector.broadcast %137 : f32 to vector<2x63x57xf32>
    %140 = arith.mulf %139, %138 : vector<2x63x57xf32>
    %141 = arith.addf %136, %140 : vector<2x63x57xf32>
    %c24 = arith.constant 24 : index
    %142 = memref.load %arg2[%c24] : memref<32xf32, #tpu.memory_space<smem>>
    %143 = vector.extract_strided_slice %0 {offsets = [0, 0, 4], sizes = [2, 63, 57], strides = [1, 1, 1]} : vector<2x63x64xf32> to vector<2x63x57xf32>
    %144 = vector.broadcast %142 : f32 to vector<2x63x57xf32>
    %145 = arith.mulf %144, %143 : vector<2x63x57xf32>
    %146 = arith.addf %141, %145 : vector<2x63x57xf32>
    %c25 = arith.constant 25 : index
    %147 = memref.load %arg2[%c25] : memref<32xf32, #tpu.memory_space<smem>>
    %148 = vector.extract_strided_slice %0 {offsets = [0, 0, 5], sizes = [2, 63, 57], strides = [1, 1, 1]} : vector<2x63x64xf32> to vector<2x63x57xf32>
    %149 = vector.broadcast %147 : f32 to vector<2x63x57xf32>
    %150 = arith.mulf %149, %148 : vector<2x63x57xf32>
    %151 = arith.addf %146, %150 : vector<2x63x57xf32>
    %c26 = arith.constant 26 : index
    %152 = memref.load %arg2[%c26] : memref<32xf32, #tpu.memory_space<smem>>
    %153 = vector.extract_strided_slice %0 {offsets = [0, 0, 6], sizes = [2, 63, 57], strides = [1, 1, 1]} : vector<2x63x64xf32> to vector<2x63x57xf32>
    %154 = vector.broadcast %152 : f32 to vector<2x63x57xf32>
    %155 = arith.mulf %154, %153 : vector<2x63x57xf32>
    %156 = arith.addf %151, %155 : vector<2x63x57xf32>
    %c27 = arith.constant 27 : index
    %157 = memref.load %arg2[%c27] : memref<32xf32, #tpu.memory_space<smem>>
    %158 = vector.extract_strided_slice %0 {offsets = [0, 0, 7], sizes = [2, 63, 57], strides = [1, 1, 1]} : vector<2x63x64xf32> to vector<2x63x57xf32>
    %159 = vector.broadcast %157 : f32 to vector<2x63x57xf32>
    %160 = arith.mulf %159, %158 : vector<2x63x57xf32>
    %161 = arith.addf %156, %160 : vector<2x63x57xf32>
    %162 = vector.broadcast %120 : f32 to vector<2x63x57xf32>
    %163 = arith.addf %161, %162 : vector<2x63x57xf32>
    %cst_17 = arith.constant 0.000000e+00 : f32
    %164 = vector.broadcast %cst_17 : f32 to vector<2x63x57xf32>
    %165 = arith.maximumf %163, %164 : vector<2x63x57xf32>
    %166 = vector.broadcast %9 : vector<1x63x1xf32> to vector<2x63x57xf32>
    %167 = arith.mulf %165, %166 : vector<2x63x57xf32>
    %cst_18 = arith.constant dense<0.000000e+00> : vector<2x57xf32>
    %168 = vector.multi_reduction <add>, %167, %cst_18 [1] : vector<2x63x57xf32> to vector<2x57xf32>
    %c0_19 = arith.constant 0 : index
    %c45 = arith.constant 45 : index
    %169 = vector.load %arg7[%c0_19, %c45] : memref<2x163xf32, #tpu.memory_space<vmem>>, vector<2x57xf32>
    tpu.vector_store %arg7[%c0_19, %c45], %168 {strides = array<i32>} : memref<2x163xf32, #tpu.memory_space<vmem>>, vector<2x57xf32>,
    %c2_20 = arith.constant 2 : index
    %170 = memref.load %arg3[%c2_20] : memref<6xf32, #tpu.memory_space<smem>>
    %cst_21 = arith.constant 0.000000e+00 : f32
    %171 = vector.broadcast %cst_21 : f32 to vector<2x63x61xf32>
    %c28 = arith.constant 28 : index
    %172 = memref.load %arg2[%c28] : memref<32xf32, #tpu.memory_space<smem>>
    %173 = vector.extract_strided_slice %0 {offsets = [0, 0, 0], sizes = [2, 63, 61], strides = [1, 1, 1]} : vector<2x63x64xf32> to vector<2x63x61xf32>
    %174 = vector.broadcast %172 : f32 to vector<2x63x61xf32>
    %175 = arith.mulf %174, %173 : vector<2x63x61xf32>
    %176 = arith.addf %171, %175 : vector<2x63x61xf32>
    %c29 = arith.constant 29 : index
    %177 = memref.load %arg2[%c29] : memref<32xf32, #tpu.memory_space<smem>>
    %178 = vector.extract_strided_slice %0 {offsets = [0, 0, 1], sizes = [2, 63, 61], strides = [1, 1, 1]} : vector<2x63x64xf32> to vector<2x63x61xf32>
    %179 = vector.broadcast %177 : f32 to vector<2x63x61xf32>
    %180 = arith.mulf %179, %178 : vector<2x63x61xf32>
    %181 = arith.addf %176, %180 : vector<2x63x61xf32>
    %c30 = arith.constant 30 : index
    %182 = memref.load %arg2[%c30] : memref<32xf32, #tpu.memory_space<smem>>
    %183 = vector.extract_strided_slice %0 {offsets = [0, 0, 2], sizes = [2, 63, 61], strides = [1, 1, 1]} : vector<2x63x64xf32> to vector<2x63x61xf32>
    %184 = vector.broadcast %182 : f32 to vector<2x63x61xf32>
    %185 = arith.mulf %184, %183 : vector<2x63x61xf32>
    %186 = arith.addf %181, %185 : vector<2x63x61xf32>
    %c31 = arith.constant 31 : index
    %187 = memref.load %arg2[%c31] : memref<32xf32, #tpu.memory_space<smem>>
    %188 = vector.extract_strided_slice %0 {offsets = [0, 0, 3], sizes = [2, 63, 61], strides = [1, 1, 1]} : vector<2x63x64xf32> to vector<2x63x61xf32>
    %189 = vector.broadcast %187 : f32 to vector<2x63x61xf32>
    %190 = arith.mulf %189, %188 : vector<2x63x61xf32>
    %191 = arith.addf %186, %190 : vector<2x63x61xf32>
    %192 = vector.broadcast %170 : f32 to vector<2x63x61xf32>
    %193 = arith.addf %191, %192 : vector<2x63x61xf32>
    %cst_22 = arith.constant 0.000000e+00 : f32
    %194 = vector.broadcast %cst_22 : f32 to vector<2x63x61xf32>
    %195 = arith.maximumf %193, %194 : vector<2x63x61xf32>
    %196 = vector.broadcast %9 : vector<1x63x1xf32> to vector<2x63x61xf32>
    %197 = arith.mulf %195, %196 : vector<2x63x61xf32>
    %cst_23 = arith.constant dense<0.000000e+00> : vector<2x61xf32>
    %198 = vector.multi_reduction <add>, %197, %cst_23 [1] : vector<2x63x61xf32> to vector<2x61xf32>
    %c0_24 = arith.constant 0 : index
    %c102 = arith.constant 102 : index
    %199 = vector.load %arg7[%c0_24, %c102] : memref<2x163xf32, #tpu.memory_space<vmem>>, vector<2x61xf32>
    tpu.vector_store %arg7[%c0_24, %c102], %198 {strides = array<i32>} : memref<2x163xf32, #tpu.memory_space<vmem>>, vector<2x61xf32>,
    %c0_25 = arith.constant 0 : index
    %c0_26 = arith.constant 0 : index
    %200 = vector.load %arg7[%c0_25, %c0_26] : memref<2x163xf32, #tpu.memory_space<vmem>>, vector<2x163xf32>
    %c3_27 = arith.constant 3 : index
    %201 = memref.load %arg3[%c3_27] : memref<6xf32, #tpu.memory_space<smem>>
    %202 = vector.broadcast %201 : f32 to vector<2x163xf32>
    %203 = arith.addf %200, %202 : vector<2x163xf32>
    %cst_28 = arith.constant 0.000000e+00 : f32
    %204 = vector.broadcast %cst_28 : f32 to vector<2x163xf32>
    %205 = arith.cmpf ogt, %203, %204 : vector<2x163xf32>
    %cst_29 = arith.constant 0.000000e+00 : f32
    %206 = vector.broadcast %cst_29 : f32 to vector<2x163xf32>
    %207 = arith.minimumf %203, %206 : vector<2x163xf32>
    %208 = math.exp %207 : vector<2x163xf32>
    %cst_30 = arith.constant 1.000000e+00 : f32
    %209 = vector.broadcast %cst_30 : f32 to vector<2x163xf32>
    %210 = arith.subf %208, %209 : vector<2x163xf32>
    %211 = arith.select %205, %203, %210 : vector<2x163xi1>, vector<2x163xf32>
    %212 = vector.extract_strided_slice %211 {offsets = [0, 0], sizes = [2, 160], strides = [1, 1]} : vector<2x163xf32> to vector<2x160xf32>
    %213 = vector.shape_cast %212 : vector<2x160xf32> to vector<2x40x4xf32>
    %cst_31 = arith.constant dense<0.000000e+00> : vector<2x40xf32>
    %214 = vector.multi_reduction <add>, %213, %cst_31 [2] : vector<2x40x4xf32> to vector<2x40xf32>
    %cst_32 = arith.constant 2.500000e-01 : f32
    %215 = vector.broadcast %cst_32 : f32 to vector<2x40xf32>
    %216 = arith.mulf %214, %215 : vector<2x40xf32>
    %c0_33 = arith.constant 0 : index
    %c0_34 = arith.constant 0 : index
    %217 = vector.load %arg6[%c0_33, %c0_34] : memref<2x40xf32, #tpu.memory_space<vmem>>, vector<2x40xf32>
    tpu.vector_store %arg6[%c0_33, %c0_34], %216 {strides = array<i32>} : memref<2x40xf32, #tpu.memory_space<vmem>>, vector<2x40xf32>,
    return
  }
  func.func @transform_0(%arg0: i32) -> (i32, i32, i32) {
    %c0_i32 = arith.constant 0 : i32
    %c0_i32_0 = arith.constant 0 : i32
    %c0_i32_1 = arith.constant 0 : i32
    %c0_i32_2 = arith.constant 0 : i32
    return %c0_i32, %c0_i32_0, %c0_i32_1 : i32, i32, i32
  }
  func.func @transform_1(%arg0: i32) -> i32 {
    %c0_i32 = arith.constant 0 : i32
    %c0_i32_0 = arith.constant 0 : i32
    return %c0_i32 : i32
  }
  func.func @transform_2(%arg0: i32) -> i32 {
    %c0_i32 = arith.constant 0 : i32
    %c0_i32_0 = arith.constant 0 : i32
    return %c0_i32 : i32
  }
  func.func @transform_3(%arg0: i32) -> (i32, i32) {
    %c0_i32 = arith.constant 0 : i32
    %c0_i32_0 = arith.constant 0 : i32
    %c0_i32_1 = arith.constant 0 : i32
    return %c0_i32, %c0_i32_0 : i32, i32
  }
  func.func @transform_4(%arg0: i32) -> (i32, i32, i32) {
    %c0_i32 = arith.constant 0 : i32
    %c0_i32_0 = arith.constant 0 : i32
    %c0_i32_1 = arith.constant 0 : i32
    %c0_i32_2 = arith.constant 0 : i32
    return %c0_i32, %c0_i32_0, %c0_i32_1 : i32, i32, i32
  }
  func.func @transform_5(%arg0: i32) -> (i32, i32) {
    %c0_i32 = arith.constant 0 : i32
    %c0_i32_0 = arith.constant 0 : i32
    %c0_i32_1 = arith.constant 0 : i32
    return %c0_i32, %c0_i32_0 : i32, i32
  }
}

</mosaic_0001>

<bundles_post_ra>
// kernel: tsception_forward.1
= control target key start
LH: loop header
LB: loop body
LE: loop exit
PB: predicated region body
PF: predicated region fallthrough
CT: control target
= control target key end

     0   :  { %11 = vsyncpa [#allocation5], 0  ;;  %s7853_s0 = inlined_call_operand.vmem [shape: f32[2,63,64], index: 0, kind: input, shape index: {}]   ;;  %s7854_s1 = inlined_call_operand.vmem [shape: f32[32], index: 1, kind: input, shape index: {}]   ;;  %s7855_s2 = inlined_call_operand.vmem [shape: f32[6], index: 2, kind: input, shape index: {}]   ;;  %s7856_s3 = inlined_call_operand.vmem [shape: f32[63,1], index: 3, kind: input, shape index: {}]   ;;  %s7857_s4 = inlined_call_operand.vmem [shape: f32[2,63,64], index: 4, kind: output, shape index: {0}]   ;;  %s7858_s5 = inlined_call_operand.hbm [shape: f32[2,40], index: 5, kind: output, shape index: {1}]  }
   0x1   :  { %12 = vsyncpa [#allocation7], 0 }
   0x2   :  { %13 = vsyncpa [#allocation4], 0  ;;  %s22_s20 = sshll.u32 %s7854_s1, 4  ;;  %s32_s23 = sshll.u32 %s7855_s2, 4  ;;  %s23_s20 = int_to_ptr.vmem [resolvable:$true] %s22_s20  ;;  %s33_s23 = int_to_ptr.vmem [resolvable:$true] %s32_s23 }
   0x3   :  { %s4304_s24 = scalar_lea.vmem %s23_s20, 16  ;;  %p4309_p1 = scmp.lt.s32.totalorder %s23_s20, %s23_s20 }
   0x4   :  { %p4305_p0 = scmp.ne.s32.totalorder %s23_s20, %s4304_s24  ;;  %p4310_p2 = scmp.lt.s32.totalorder %s4304_s24, %s4304_s24 }
   0x6   :  { %p4311_p3 = por %p4310_p2, %p4309_p1 }
   0x8   :  { %p4312_p4 = pnand %p4311_p3, %p4305_p0 }
   0xa   :  { %4315 = shalt.err (!%p4312_p4)
}
   0xb   :  { %s4356_s25 = smov [#allocation3]   ;;  %s4316_s26 = scalar_lea.vmem %s33_s23, 16 }
   0xc   :  { %25 = dma.vmem_to_smem %s23_s20, 16, %s4356_s25, [#allocation5]  }
   0xd   :  { %p4317_p5 = scmp.ne.s32.totalorder %s33_s23, %s4316_s26  ;;  %p4321_p6 = scmp.lt.s32.totalorder %s33_s23, %s33_s23 }
   0xe   :  { %p4322_p7 = scmp.lt.s32.totalorder %s4316_s26, %s4316_s26 }
  0x10   :  { %p4323_p8 = por %p4322_p7, %p4321_p6 }
  0x12   :  { %p4324_p9 = pnand %p4323_p8, %p4317_p5 }
  0x14   :  { %4327 = shalt.err (!%p4324_p9)
}
  0x15   :  { %s4357_s1 = smov [#allocation6]  }
  0x16   :  { %35 = dma.vmem_to_smem %s33_s23, 16, %s4357_s1, [#allocation7]  }
  0x17   :  { %4350 = dma.done.wait [#allocation5], 16  }
  0x18   :  { %4351 = vsyncadd [#allocation5], 4294967280 }
  0x19   :  { %4352 = dma.done.wait [#allocation7], 16  }
  0x1a   :  { %4353 = vsyncadd [#allocation7], 4294967280 }
  0x1b   :  { %44 = sfence }
  0x1c   :  { %s4137_s2 = sld [smem:[#allocation3 + $0x1]]  ;;  %v4449_v0 = vld [vmem:[%s7853_s0 + $0x10] sm:$0xff]  ;;  %v4454_v1 = vld [vmem:[%s7853_s0] sm:$0xff]  ;;  %v4459_v3 = vld [vmem:[%s7853_s0 + $0x18] sm:$0xff]  ;;  %s4358_s10 = smov 127   ;;  %vm2109_vm0 = vcmask 367616  }
  0x1d   :  { %v4464_v4 = vld [vmem:[%s7853_s0 + $0x8] sm:$0xff]  ;;  %v4480_v10 = vld [vmem:[%s7853_s0 + $0x20] sm:$0xff]  ;;  %v4489_v13 = vld [vmem:[%s7853_s0 + $0x38] sm:$0x7f]  ;;  %s4138_s29 = sld [smem:[#allocation3 + $0x2]]  ;;  %s4359_s9 = smov 126  }
  0x1e   :  { %v4475_v9 = vld [vmem:[%s7853_s0 + $0x28] sm:$0xff]  ;;  %v4494_v14 = vld [vmem:[%s7853_s0 + $0x30] sm:$0xff]  ;;  %v4508_v18 = vld [vmem:[%s7853_s0 + $0x40] sm:$0xff]  ;;  %s4139_s11 = sld [smem:[#allocation3 + $0x3]]  ;;  %s4360_s12 = smov 125   ;;  %vm2123_vm1 = vcmask 366592  }
  0x1f   :  { %v4503_v17 = vld [vmem:[%s7853_s0 + $0x48] sm:$0xff]  ;;  %v4517_v21 = vld [vmem:[%s7853_s0 + $0x58] sm:$0xff]  ;;  %v4522_v22 = vld [vmem:[%s7853_s0 + $0x50] sm:$0xff]  ;;  %s4140_s13 = sld [smem:[#allocation3 + $0x4]]  ;;  %s4361_s14 = smov 124   ;;  %vm2174_vm2 = vcmask 1041409  }
  0x20   :  { %v4531_v25 = vld [vmem:[%s7853_s0 + $0x68] sm:$0xff]  ;;  %v4536_v26 = vld [vmem:[%s7853_s0 + $0x60] sm:$0xff]  ;;  %v4545_v29 = vld [vmem:[%s7853_s0 + $0x78] sm:$0x7f]  ;;  %s4141_s15 = sld [smem:[#allocation3 + $0x5]]  ;;  %s4362_s16 = smov 123  }
  0x21   :  { %v4550_v30 = vld [vmem:[%s7853_s0 + $0x70] sm:$0xff]  ;;  %s4142_s17 = sld [smem:[#allocation3 + $0x6]]  ;;  %s4363_s18 = smov 122   ;;  %vm2176_vm3 = vcmask 1043459   ;;  %vm2178_vm4 = vcmask 1045509   ;;  %vm2180_vm5 = vcmask 1047559  }
  0x22   :  { %v159_v2 = vstv %s4137_s2  ;;  %s4143_s19 = sld [smem:[#allocation3 + $0x7]]  ;;  %s4364_s20 = smov 121   ;;  %vm2183_vm6 = vcmask 361472   ;;  %vm2955_vm7 = vcmask 465920   ;;  %vm3405_vm8 = vcmask 498688  }
  0x23   :  { %v162_v5 = vmul.f32 %v159_v2, %v4449_v0  ;;  %v160_v6 = vmul.f32 %v159_v2, %v4454_v1  ;;  %v163_v7 = vmul.f32 %v159_v2, %v4459_v3  ;;  %v161_v8 = vmul.f32 %v159_v2, %v4464_v4  ;;  %s4144_s21 = sld [smem:[#allocation3 + $0x8]]  ;;  %s4365_s22 = smov 120  }
  0x24   :  { %v165_v11 = vmul.f32 %v159_v2, %v4475_v9  ;;  %v164_v12 = vmul.f32 %v159_v2, %v4480_v10  ;;  %v167_v15 = vmul.f32 %v159_v2, %v4489_v13  ;;  %v166_v16 = vmul.f32 %v159_v2, %v4494_v14  ;;  %s4145_s23 = sld [smem:[#allocation3 + $0x9]]  ;;  %s4366_s24 = smov 119  }
  0x25   :  { %196 = vrot.lane.b32.xlu1 %v162_v5, %s4358_s10  ;;  %192 = vrot.lane.b32.xlu0 %v160_v6, %s4358_s10  ;;  %v169_v19 = vmul.f32 %v159_v2, %v4503_v17  ;;  %v168_v20 = vmul.f32 %v159_v2, %v4508_v18  ;;  %v171_v23 = vmul.f32 %v159_v2, %v4517_v21  ;;  %v257_v33 = vstv %s4138_s29  ;;  %s4146_s25 = sld [smem:[#allocation3 + $0xa]]  ;;  %s4367_s26 = smov 118  }
  0x26   :  { %v170_v24 = vmul.f32 %v159_v2, %v4522_v22  ;;  %v173_v27 = vmul.f32 %v159_v2, %v4531_v25  ;;  %v172_v28 = vmul.f32 %v159_v2, %v4536_v26  ;;  %v175_v31 = vmul.f32 %v159_v2, %v4545_v29  ;;  %s4147_s1 = sld [smem:[#allocation3 + $0xb]]  ;;  %s4368_s2 = smov 117  }
  0x27   :  { %v174_v32 = vmul.f32 %v159_v2, %v4550_v30  ;;  %v259_v34 = vmul.f32 %v257_v33, %v4464_v4  ;;  %v258_v35 = vmul.f32 %v257_v33, %v4454_v1  ;;  %v261_v36 = vmul.f32 %v257_v33, %v4459_v3  ;;  %s4148_s27 = sld [smem:[#allocation3 + $0xc]]  ;;  %s4369_s7 = smov 116  }
  0x28   :  { %v260_v37 = vmul.f32 %v257_v33, %v4449_v0  ;;  %v263_v38 = vmul.f32 %v257_v33, %v4475_v9  ;;  %v262_v39 = vmul.f32 %v257_v33, %v4480_v10  ;;  %v265_v40 = vmul.f32 %v257_v33, %v4489_v13  ;;  %s4151_s28 = sld [smem:[#allocation3 + $0xf]]  ;;  %s4372_s29 = smov 113  }
  0x29   :  { %198 = vrot.lane.b32.xlu1 %v163_v7, %s4358_s10  ;;  %194 = vrot.lane.b32.xlu0 %v161_v8, %s4358_s10  ;;  %v264_v41 = vmul.f32 %v257_v33, %v4494_v14  ;;  %v267_v42 = vmul.f32 %v257_v33, %v4503_v17  ;;  %v266_v43 = vmul.f32 %v257_v33, %v4508_v18  ;;  %v355_v50 = vstv %s4139_s11  ;;  %s4152_s30 = sld [smem:[#allocation3 + $0x10]]  ;;  %s4374_s6 = smov 112  }
  0x2a   :  { %v269_v44 = vmul.f32 %v257_v33, %v4517_v21  ;;  %v268_v45 = vmul.f32 %v257_v33, %v4522_v22  ;;  %v271_v46 = vmul.f32 %v257_v33, %v4531_v25  ;;  %v270_v47 = vmul.f32 %v257_v33, %v4536_v26  ;;  %s4153_s8 = sld [smem:[#allocation3 + $0x11]]  ;;  %s4375_s11 = smov 111  }
  0x2b   :  { %v273_v48 = vmul.f32 %v257_v33, %v4545_v29  ;;  %v272_v49 = vmul.f32 %v257_v33, %v4550_v30  ;;  %v357_v51 = vmul.f32 %v355_v50, %v4464_v4  ;;  %v356_v52 = vmul.f32 %v355_v50, %v4454_v1 }
  0x2c   :  { %v359_v53 = vmul.f32 %v355_v50, %v4459_v3  ;;  %v358_v54 = vmul.f32 %v355_v50, %v4449_v0  ;;  %v361_v55 = vmul.f32 %v355_v50, %v4475_v9  ;;  %v360_v56 = vmul.f32 %v355_v50, %v4480_v10 }
  0x2d   :  { %202 = vrot.lane.b32.xlu1 %v165_v11, %s4358_s10  ;;  %200 = vrot.lane.b32.xlu0 %v164_v12, %s4358_s10  ;;  %v363_v57 = vmul.f32 %v355_v50, %v4489_v13  ;;  %v362_v58 = vmul.f32 %v355_v50, %v4494_v14  ;;  %v365_v59 = vmul.f32 %v355_v50, %v4503_v17  ;;  %v453_v7 = vstv %s4140_s13  ;;  %s4149_s13 = sld [smem:[#allocation3 + $0xd]] }
  0x2e   :  { %v364_v60 = vmul.f32 %v355_v50, %v4508_v18  ;;  %v367_v61 = vmul.f32 %v355_v50, %v4517_v21  ;;  %v366_v62 = vmul.f32 %v355_v50, %v4522_v22  ;;  %v369_v63 = vmul.f32 %v355_v50, %v4531_v25 }
  0x2f   :  { %v368_v2 = vmul.f32 %v355_v50, %v4536_v26  ;;  %v371_v5 = vmul.f32 %v355_v50, %v4545_v29  ;;  %v370_v6 = vmul.f32 %v355_v50, %v4550_v30  ;;  %v455_v8 = vmul.f32 %v453_v7, %v4464_v4 }
  0x30   :  { %v454_v11 = vmul.f32 %v453_v7, %v4454_v1  ;;  %v457_v12 = vmul.f32 %v453_v7, %v4459_v3  ;;  %vm3419_vm9 = vcmask 497664   ;;  %vm2969_vm10 = vcmask 464896  }
  0x31   :  { %206 = vrot.lane.b32.xlu1 %v167_v15, %s4358_s10  ;;  %204 = vrot.lane.b32.xlu0 %v166_v16, %s4358_s10  ;;  %v456_v15 = vmul.f32 %v453_v7, %v4449_v0  ;;  %v459_v16 = vmul.f32 %v453_v7, %v4475_v9  ;;  %vm3478_vm11 = vcmask 1042224   ;;  %vm3479_vm12 = vcmask 281602  }
  0x32   :  { %vm3025_vm13 = vcmask 828776   ;;  %vm3475_vm14 = vcmask 834560   ;;  %vm3480_vm15 = vmor %vm3479_vm12, %vm3478_vm11 }
  0x35   :  { %210 = vrot.lane.b32.xlu1 %v169_v19, %s4358_s10  ;;  %208 = vrot.lane.b32.xlu0 %v168_v20, %s4358_s10  ;;  %v458_v19 = vmul.f32 %v453_v7, %v4480_v10  ;;  %v461_v20 = vmul.f32 %v453_v7, %v4489_v13 }
  0x39   :  { %214 = vrot.lane.b32.xlu1 %v171_v23, %s4358_s10  ;;  %212 = vrot.lane.b32.xlu0 %v170_v24, %s4358_s10  ;;  %v460_v23 = vmul.f32 %v453_v7, %v4494_v14  ;;  %v463_v24 = vmul.f32 %v453_v7, %v4503_v17 }
  0x3d   :  { %218 = vrot.lane.b32.xlu1 %v173_v27, %s4358_s10  ;;  %216 = vrot.lane.b32.xlu0 %v172_v28, %s4358_s10  ;;  %v462_v27 = vmul.f32 %v453_v7, %v4508_v18  ;;  %v465_v28 = vmul.f32 %v453_v7, %v4517_v21 }
  0x41   :  { %222 = vrot.lane.b32.xlu1 %v175_v31, %s4358_s10  ;;  %220 = vrot.lane.b32.xlu0 %v174_v32, %s4358_s10  ;;  %v464_v31 = vmul.f32 %v453_v7, %v4522_v22 }
  0x45   :  { %292 = vrot.lane.b32.xlu1 %v259_v34, %s4359_s9  ;;  %290 = vrot.lane.b32.xlu0 %v258_v35, %s4359_s9  ;;  %v467_v34 = vmul.f32 %v453_v7, %v4531_v25  ;;  %v466_v35 = vmul.f32 %v453_v7, %v4536_v26 }
  0x49   :  { %296 = vrot.lane.b32.xlu1 %v261_v36, %s4359_s9  ;;  %294 = vrot.lane.b32.xlu0 %v260_v37, %s4359_s9 }
  0x4d   :  { %300 = vrot.lane.b32.xlu1 %v263_v38, %s4359_s9  ;;  %298 = vrot.lane.b32.xlu0 %v262_v39, %s4359_s9  ;;  %v469_v38 = vmul.f32 %v453_v7, %v4545_v29  ;;  %v468_v39 = vmul.f32 %v453_v7, %v4550_v30 }
  0x51   :  { %304 = vrot.lane.b32.xlu1 %v265_v40, %s4359_s9  ;;  %302 = vrot.lane.b32.xlu0 %v264_v41, %s4359_s9  ;;  %v551_v40 = vstv %s4141_s15  ;;  %s4376_s15 = smov 110  }
  0x52   :  { %v565_v7 = vmul.f32 %v551_v40, %v4531_v25 }
  0x55   :  { %308 = vrot.lane.b32.xlu1 %v267_v42, %s4359_s9  ;;  %306 = vrot.lane.b32.xlu0 %v266_v43, %s4359_s9  ;;  %v553_v43 = vmul.f32 %v551_v40, %v4464_v4 }
  0x59   :  { %312 = vrot.lane.b32.xlu1 %v269_v44, %s4359_s9  ;;  %310 = vrot.lane.b32.xlu0 %v268_v45, %s4359_s9  ;;  %v552_v44 = vmul.f32 %v551_v40, %v4454_v1 }
  0x5d   :  { %316 = vrot.lane.b32.xlu1 %v271_v46, %s4359_s9  ;;  %314 = vrot.lane.b32.xlu0 %v270_v47, %s4359_s9  ;;  %v555_v47 = vmul.f32 %v551_v40, %v4459_v3 }
  0x61   :  { %320 = vrot.lane.b32.xlu1 %v273_v48, %s4359_s9  ;;  %318 = vrot.lane.b32.xlu0 %v272_v49, %s4359_s9  ;;  %v554_v48 = vmul.f32 %v551_v40, %v4449_v0 }
  0x65   :  { %390 = vrot.lane.b32.xlu1 %v357_v51, %s4360_s12  ;;  %388 = vrot.lane.b32.xlu0 %v356_v52, %s4360_s12  ;;  %v557_v51 = vmul.f32 %v551_v40, %v4475_v9  ;;  %v556_v52 = vmul.f32 %v551_v40, %v4480_v10 }
  0x69   :  { %394 = vrot.lane.b32.xlu1 %v359_v53, %s4360_s12  ;;  %392 = vrot.lane.b32.xlu0 %v358_v54, %s4360_s12 }
  0x6d   :  { %398 = vrot.lane.b32.xlu1 %v361_v55, %s4360_s12  ;;  %396 = vrot.lane.b32.xlu0 %v360_v56, %s4360_s12  ;;  %v559_v55 = vmul.f32 %v551_v40, %v4489_v13  ;;  %v558_v56 = vmul.f32 %v551_v40, %v4494_v14 }
  0x71   :  { %402 = vrot.lane.b32.xlu1 %v363_v57, %s4360_s12  ;;  %400 = vrot.lane.b32.xlu0 %v362_v58, %s4360_s12 }
  0x75   :  { %406 = vrot.lane.b32.xlu1 %v365_v59, %s4360_s12  ;;  %404 = vrot.lane.b32.xlu0 %v364_v60, %s4360_s12  ;;  %v561_v59 = vmul.f32 %v551_v40, %v4503_v17  ;;  %v560_v60 = vmul.f32 %v551_v40, %v4508_v18 }
  0x79   :  { %410 = vrot.lane.b32.xlu1 %v367_v61, %s4360_s12  ;;  %408 = vrot.lane.b32.xlu0 %v366_v62, %s4360_s12 }
  0x7d   :  { %414 = vrot.lane.b32.xlu1 %v369_v63, %s4360_s12  ;;  %412 = vrot.lane.b32.xlu0 %v368_v2, %s4360_s12  ;;  %v563_v63 = vmul.f32 %v551_v40, %v4517_v21  ;;  %v562_v2 = vmul.f32 %v551_v40, %v4522_v22 }
  0x81   :  { %418 = vrot.lane.b32.xlu1 %v371_v5, %s4360_s12  ;;  %416 = vrot.lane.b32.xlu0 %v370_v6, %s4360_s12 }
  0x85   :  { %488 = vrot.lane.b32.xlu1 %v455_v8, %s4361_s14  ;;  %486 = vrot.lane.b32.xlu0 %v454_v11, %s4361_s14  ;;  %v564_v8 = vmul.f32 %v551_v40, %v4536_v26 }
  0x89   :  { %492 = vrot.lane.b32.xlu1 %v457_v12, %s4361_s14  ;;  %490 = vrot.lane.b32.xlu0 %v456_v15, %s4361_s14  ;;  %v567_v15 = vmul.f32 %v551_v40, %v4545_v29 }
  0x8d   :  { %496 = vrot.lane.b32.xlu1 %v459_v16, %s4361_s14  ;;  %494 = vrot.lane.b32.xlu0 %v458_v19, %s4361_s14  ;;  %v566_v16 = vmul.f32 %v551_v40, %v4550_v30  ;;  %v649_v19 = vstv %s4142_s17  ;;  %s4155_s17 = sld [smem:[#allocation3 + $0x13]] }
  0x8e   :  { %v655_v40 = vmul.f32 %v649_v19, %v4475_v9 }
  0x91   :  { %500 = vrot.lane.b32.xlu1 %v461_v20, %s4361_s14  ;;  %498 = vrot.lane.b32.xlu0 %v460_v23, %s4361_s14 }
  0x95   :  { %504 = vrot.lane.b32.xlu1 %v463_v24, %s4361_s14  ;;  %502 = vrot.lane.b32.xlu0 %v462_v27, %s4361_s14  ;;  %v651_v24 = vmul.f32 %v649_v19, %v4464_v4  ;;  %v650_v27 = vmul.f32 %v649_v19, %v4454_v1 }
  0x97   :  { %v4644_v32 = vpop.permute.xlu1 %196  ;;  %v4646_v33 = vpop.permute.xlu0 %192 }
  0x99   :  { %508 = vrot.lane.b32.xlu1 %v465_v28, %s4361_s14  ;;  %506 = vrot.lane.b32.xlu0 %v464_v31, %s4361_s14 }
  0x9b   :  { %v4652_v36 = vpop.permute.xlu1 %198  ;;  %v4654_v37 = vpop.permute.xlu0 %194 }
  0x9d   :  { %512 = vrot.lane.b32.xlu1 %v467_v34, %s4361_s14  ;;  %510 = vrot.lane.b32.xlu0 %v466_v35, %s4361_s14  ;;  %v653_v34 = vmul.f32 %v649_v19, %v4459_v3  ;;  %v652_v35 = vmul.f32 %v649_v19, %v4449_v0 }
  0x9f   :  { %v4660_v41 = vpop.permute.xlu1 %202  ;;  %v4662_v42 = vpop.permute.xlu0 %200 }
  0xa1   :  { %516 = vrot.lane.b32.xlu1 %v469_v38, %s4361_s14  ;;  %514 = vrot.lane.b32.xlu0 %v468_v39, %s4361_s14 }
  0xa3   :  { %v4668_v45 = vpop.permute.xlu1 %206  ;;  %v4670_v46 = vpop.permute.xlu0 %204 }
  0xa5   :  { %586 = vrot.lane.b32.xlu1 %v553_v43, %s4362_s16  ;;  %584 = vrot.lane.b32.xlu0 %v552_v44, %s4362_s16  ;;  %v654_v43 = vmul.f32 %v649_v19, %v4480_v10 }
  0xa7   :  { %v4676_v49 = vpop.permute.xlu1 %210  ;;  %v4678_v50 = vpop.permute.xlu0 %208 }
  0xa9   :  { %590 = vrot.lane.b32.xlu1 %v555_v47, %s4362_s16  ;;  %588 = vrot.lane.b32.xlu0 %v554_v48, %s4362_s16  ;;  %v657_v48 = vmul.f32 %v649_v19, %v4489_v13 }
  0xab   :  { %v4684_v53 = vpop.permute.xlu1 %214  ;;  %v4686_v54 = vpop.permute.xlu0 %212 }
  0xad   :  { %594 = vrot.lane.b32.xlu1 %v557_v51, %s4362_s16  ;;  %592 = vrot.lane.b32.xlu0 %v556_v52, %s4362_s16  ;;  %v656_v51 = vmul.f32 %v649_v19, %v4494_v14 }
  0xaf   :  { %v4692_v57 = vpop.permute.xlu1 %218  ;;  %v4694_v58 = vpop.permute.xlu0 %216 }
  0xb1   :  { %598 = vrot.lane.b32.xlu1 %v559_v55, %s4362_s16  ;;  %596 = vrot.lane.b32.xlu0 %v558_v56, %s4362_s16  ;;  %v659_v56 = vmul.f32 %v649_v19, %v4503_v17 }
  0xb3   :  { %v4700_v61 = vpop.permute.xlu1 %222  ;;  %v4702_v62 = vpop.permute.xlu0 %220 }
  0xb5   :  { %602 = vrot.lane.b32.xlu1 %v561_v59, %s4362_s16  ;;  %600 = vrot.lane.b32.xlu0 %v560_v60, %s4362_s16  ;;  %v658_v59 = vmul.f32 %v649_v19, %v4508_v18 }
  0xb7   :  { %v4708_v5 = vpop.permute.xlu1 %292  ;;  %v4710_v6 = vpop.permute.xlu0 %290 }
  0xb9   :  { %606 = vrot.lane.b32.xlu1 %v563_v63, %s4362_s16  ;;  %604 = vrot.lane.b32.xlu0 %v562_v2, %s4362_s16  ;;  %v661_v2 = vmul.f32 %v649_v19, %v4517_v21 }
  0xbb   :  { %v4716_v11 = vpop.permute.xlu1 %296  ;;  %v4718_v12 = vpop.permute.xlu0 %294 }
  0xbd   :  { %610 = vrot.lane.b32.xlu1 %v565_v7, %s4362_s16  ;;  %608 = vrot.lane.b32.xlu0 %v564_v8, %s4362_s16  ;;  %v660_v7 = vmul.f32 %v649_v19, %v4522_v22 }
  0xbf   :  { %v4724_v20 = vpop.permute.xlu1 %300  ;;  %v4726_v23 = vpop.permute.xlu0 %298 }
  0xc1   :  { %614 = vrot.lane.b32.xlu1 %v567_v15, %s4362_s16  ;;  %612 = vrot.lane.b32.xlu0 %v566_v16, %s4362_s16  ;;  %v663_v16 = vmul.f32 %v649_v19, %v4531_v25 }
  0xc3   :  { %v4732_v28 = vpop.permute.xlu1 %304  ;;  %v4734_v31 = vpop.permute.xlu0 %302 }
  0xc5   :  { %684 = vrot.lane.b32.xlu1 %v651_v24, %s4363_s18  ;;  %682 = vrot.lane.b32.xlu0 %v650_v27, %s4363_s18  ;;  %v662_v24 = vmul.f32 %v649_v19, %v4536_v26 }
  0xc7   :  { %v4740_v38 = vpop.permute.xlu1 %308  ;;  %v4742_v39 = vpop.permute.xlu0 %306 }
  0xc9   :  { %688 = vrot.lane.b32.xlu1 %v653_v34, %s4363_s18  ;;  %686 = vrot.lane.b32.xlu0 %v652_v35, %s4363_s18  ;;  %v665_v35 = vmul.f32 %v649_v19, %v4545_v29 }
  0xcb   :  { %v4748_v44 = vpop.permute.xlu1 %312  ;;  %v4750_v47 = vpop.permute.xlu0 %310 }
  0xcd   :  { %692 = vrot.lane.b32.xlu1 %v655_v40, %s4363_s18  ;;  %690 = vrot.lane.b32.xlu0 %v654_v43, %s4363_s18  ;;  %v664_v40 = vmul.f32 %v649_v19, %v4550_v30  ;;  %v747_v43 = vstv %s4143_s19  ;;  %s4377_s19 = smov 109  }
  0xce   :  { %v751_v19 = vmul.f32 %v747_v43, %v4459_v3 }
  0xcf   :  { %v4756_v52 = vpop.permute.xlu1 %316  ;;  %v4758_v55 = vpop.permute.xlu0 %314 }
  0xd1   :  { %696 = vrot.lane.b32.xlu1 %v657_v48, %s4363_s18  ;;  %694 = vrot.lane.b32.xlu0 %v656_v51, %s4363_s18 }
  0xd3   :  { %v4764_v60 = vpop.permute.xlu1 %320  ;;  %v4766_v63 = vpop.permute.xlu0 %318 }
  0xd4   :  { %7908 = vst [vmem:[#allocation12_spill] sm:$0xff] %v4764_v60  ;;  %7909 = vst [vmem:[#allocation13_spill] sm:$0xff] %v4766_v63 }
  0xd5   :  { %700 = vrot.lane.b32.xlu1 %v659_v56, %s4363_s18  ;;  %698 = vrot.lane.b32.xlu0 %v658_v59, %s4363_s18  ;;  %v749_v56 = vmul.f32 %v747_v43, %v4464_v4  ;;  %v748_v59 = vmul.f32 %v747_v43, %v4454_v1 }
  0xd7   :  { %v4772_v8 = vpop.permute.xlu1 %390  ;;  %v4774_v15 = vpop.permute.xlu0 %388 }
  0xd8   :  { %7910 = vst [vmem:[#allocation14_spill] sm:$0xff] %v4772_v8  ;;  %7911 = vst [vmem:[#allocation15_spill] sm:$0xff] %v4774_v15 }
  0xd9   :  { %704 = vrot.lane.b32.xlu1 %v661_v2, %s4363_s18  ;;  %702 = vrot.lane.b32.xlu0 %v660_v7, %s4363_s18 }
  0xdb   :  { %v4780_v27 = vpop.permute.xlu1 %394  ;;  %v4782_v34 = vpop.permute.xlu0 %392 }
  0xdc   :  { %7912 = vst [vmem:[#allocation16_spill] sm:$0xff] %v4780_v27  ;;  %7913 = vst [vmem:[#allocation17_spill] sm:$0xff] %v4782_v34 }
  0xdd   :  { %708 = vrot.lane.b32.xlu1 %v663_v16, %s4363_s18  ;;  %706 = vrot.lane.b32.xlu0 %v662_v24, %s4363_s18  ;;  %v750_v16 = vmul.f32 %v747_v43, %v4449_v0 }
  0xdf   :  { %v4788_v48 = vpop.permute.xlu1 %398  ;;  %v4790_v51 = vpop.permute.xlu0 %396 }
  0xe0   :  { %7914 = vst [vmem:[#allocation18_spill] sm:$0xff] %v4788_v48  ;;  %7915 = vst [vmem:[#allocation19_spill] sm:$0xff] %v4790_v51  ;;  %v4373_v51 = vmov 0  }
  0xe1   :  { %712 = vrot.lane.b32.xlu1 %v665_v35, %s4363_s18  ;;  %710 = vrot.lane.b32.xlu0 %v664_v40, %s4363_s18  ;;  %v753_v40 = vmul.f32 %v747_v43, %v4475_v9 }
  0xe2   :  { %4237 = vset.pattern.permute.xlu1 %v4373_v51  ;;  %4236 = vset.pattern.permute.xlu0 %v4373_v51 }
  0xe3   :  { %v4796_v2 = vpop.permute.xlu1 %402  ;;  %v4798_v7 = vpop.permute.xlu0 %400 }
  0xe4   :  { %7916 = vst [vmem:[#allocation20_spill] sm:$0xff] %v4796_v2  ;;  %7917 = vst [vmem:[#allocation21_spill] sm:$0xff] %v4798_v7  ;;  %v752_v7 = vmul.f32 %v747_v43, %v4480_v10 }
  0xe5   :  { %782 = vrot.lane.b32.xlu1 %v749_v56, %s4364_s20  ;;  %780 = vrot.lane.b32.xlu0 %v748_v59, %s4364_s20  ;;  %v755_v59 = vmul.f32 %v747_v43, %v4489_v13 }
  0xe7   :  { %v4804_v24 = vpop.permute.xlu1 %406  ;;  %v4806_v35 = vpop.permute.xlu0 %404 }
  0xe8   :  { %7918 = vst [vmem:[#allocation22_spill] sm:$0xff] %v4804_v24  ;;  %7919 = vst [vmem:[#allocation23_spill] sm:$0xff] %v4806_v35  ;;  %v754_v35 = vmul.f32 %v747_v43, %v4494_v14 }
  0xe9   :  { %786 = vrot.lane.b32.xlu1 %v751_v19, %s4364_s20  ;;  %784 = vrot.lane.b32.xlu0 %v750_v16, %s4364_s20  ;;  %v757_v16 = vmul.f32 %v747_v43, %v4503_v17 }
  0xeb   :  { %v4812_v2 = vpop.permute.xlu1 %410  ;;  %v4814_v56 = vpop.permute.xlu0 %408 }
  0xec   :  { %7920 = vst [vmem:[#allocation24_spill] sm:$0xff] %v4812_v2  ;;  %7921 = vst [vmem:[#allocation25_spill] sm:$0xff] %v4814_v56  ;;  %v756_v56 = vmul.f32 %v747_v43, %v4508_v18 }
  0xed   :  { %790 = vrot.lane.b32.xlu1 %v753_v40, %s4364_s20  ;;  %788 = vrot.lane.b32.xlu0 %v752_v7, %s4364_s20  ;;  %v759_v7 = vmul.f32 %v747_v43, %v4517_v21 }
  0xef   :  { %v4820_v24 = vpop.permute.xlu1 %414  ;;  %v4822_v19 = vpop.permute.xlu0 %412 }
  0xf0   :  { %7922 = vst [vmem:[#allocation26_spill] sm:$0xff] %v4820_v24  ;;  %7923 = vst [vmem:[#allocation27_spill] sm:$0xff] %v4822_v19  ;;  %v758_v19 = vmul.f32 %v747_v43, %v4522_v22  ;;  %v845_v24 = vstv %s4144_s21  ;;  %s124_s21 = sld [smem:[#allocation3]] }
  0xf1   :  { %794 = vrot.lane.b32.xlu1 %v755_v59, %s4364_s20  ;;  %792 = vrot.lane.b32.xlu0 %v754_v35, %s4364_s20 }
  0xf3   :  { %v4828_v2 = vpop.permute.xlu1 %418  ;;  %v4830_v40 = vpop.permute.xlu0 %416 }
  0xf4   :  { %7924 = vst [vmem:[#allocation28_spill] sm:$0xff] %v4828_v2  ;;  %7925 = vst [vmem:[#allocation29_spill] sm:$0xff] %v4830_v40  ;;  %v761_v2 = vmul.f32 %v747_v43, %v4531_v25  ;;  %v760_v40 = vmul.f32 %v747_v43, %v4536_v26 }
  0xf5   :  { %798 = vrot.lane.b32.xlu1 %v757_v16, %s4364_s20  ;;  %796 = vrot.lane.b32.xlu0 %v756_v56, %s4364_s20 }
  0xf7   :  { %v4836_v59 = vpop.permute.xlu1 %488  ;;  %v4838_v35 = vpop.permute.xlu0 %486 }
  0xf8   :  { %7926 = vst [vmem:[#allocation30_spill] sm:$0xff] %v4836_v59  ;;  %7927 = vst [vmem:[#allocation31_spill] sm:$0xff] %v4838_v35  ;;  %v763_v59 = vmul.f32 %v747_v43, %v4545_v29  ;;  %v762_v35 = vmul.f32 %v747_v43, %v4550_v30  ;;  %v849_v43 = vmul.f32 %v845_v24, %v4459_v3 }
  0xf9   :  { %802 = vrot.lane.b32.xlu1 %v759_v7, %s4364_s20  ;;  %800 = vrot.lane.b32.xlu0 %v758_v19, %s4364_s20 }
  0xfb   :  { %v4844_v16 = vpop.permute.xlu1 %492  ;;  %v4846_v56 = vpop.permute.xlu0 %490 }
  0xfc   :  { %7928 = vst [vmem:[#allocation32_spill] sm:$0xff] %v4844_v16  ;;  %7929 = vst [vmem:[#allocation33_spill] sm:$0xff] %v4846_v56  ;;  %v847_v16 = vmul.f32 %v845_v24, %v4464_v4  ;;  %v846_v56 = vmul.f32 %v845_v24, %v4454_v1 }
  0xfd   :  { %806 = vrot.lane.b32.xlu1 %v761_v2, %s4364_s20  ;;  %804 = vrot.lane.b32.xlu0 %v760_v40, %s4364_s20 }
  0xff   :  { %v4852_v7 = vpop.permute.xlu1 %496  ;;  %v4854_v19 = vpop.permute.xlu0 %494 }
 0x100   :  { %7930 = vst [vmem:[#allocation34_spill] sm:$0xff] %v4852_v7  ;;  %7931 = vst [vmem:[#allocation35_spill] sm:$0xff] %v4854_v19  ;;  %v848_v19 = vmul.f32 %v845_v24, %v4449_v0 }
 0x101   :  { %810 = vrot.lane.b32.xlu1 %v763_v59, %s4364_s20  ;;  %808 = vrot.lane.b32.xlu0 %v762_v35, %s4364_s20 }
 0x103   :  { %v4860_v2 = vpop.permute.xlu1 %500  ;;  %v4862_v40 = vpop.permute.xlu0 %498 }
 0x104   :  { %7932 = vst [vmem:[#allocation36_spill] sm:$0xff] %v4860_v2  ;;  %7933 = vst [vmem:[#allocation37_spill] sm:$0xff] %v4862_v40  ;;  %v851_v2 = vmul.f32 %v845_v24, %v4475_v9  ;;  %v850_v40 = vmul.f32 %v845_v24, %v4480_v10 }
 0x105   :  { %880 = vrot.lane.b32.xlu1 %v847_v16, %s4365_s22  ;;  %878 = vrot.lane.b32.xlu0 %v846_v56, %s4365_s22  ;;  %v853_v56 = vmul.f32 %v845_v24, %v4489_v13 }
 0x107   :  { %v4868_v59 = vpop.permute.xlu1 %504  ;;  %v4870_v35 = vpop.permute.xlu0 %502 }
 0x108   :  { %7934 = vst [vmem:[#allocation38_spill] sm:$0xff] %v4868_v59  ;;  %7935 = vst [vmem:[#allocation39_spill] sm:$0xff] %v4870_v35  ;;  %v852_v35 = vmul.f32 %v845_v24, %v4494_v14 }
 0x109   :  { %884 = vrot.lane.b32.xlu1 %v849_v43, %s4365_s22  ;;  %882 = vrot.lane.b32.xlu0 %v848_v19, %s4365_s22  ;;  %v855_v19 = vmul.f32 %v845_v24, %v4503_v17 }
 0x10b   :  { %v4876_v7 = vpop.permute.xlu1 %508  ;;  %v4878_v16 = vpop.permute.xlu0 %506 }
 0x10c   :  { %7936 = vst [vmem:[#allocation40_spill] sm:$0xff] %v4876_v7  ;;  %7937 = vst [vmem:[#allocation41_spill] sm:$0xff] %v4878_v16  ;;  %v854_v16 = vmul.f32 %v845_v24, %v4508_v18 }
 0x10d   :  { %888 = vrot.lane.b32.xlu1 %v851_v2, %s4365_s22  ;;  %886 = vrot.lane.b32.xlu0 %v850_v40, %s4365_s22  ;;  %v857_v40 = vmul.f32 %v845_v24, %v4517_v21 }
 0x10f   :  { %v4884_v59 = vpop.permute.xlu1 %512  ;;  %v4886_v43 = vpop.permute.xlu0 %510 }
 0x110   :  { %7938 = vst [vmem:[#allocation42_spill] sm:$0xff] %v4884_v59  ;;  %7939 = vst [vmem:[#allocation43_spill] sm:$0xff] %v4886_v43  ;;  %v856_v43 = vmul.f32 %v845_v24, %v4522_v22  ;;  %v943_v59 = vstv %s4145_s23  ;;  %s6303_s23 = sld [smem:[#allocation3 + $0x1e]] }
 0x111   :  { %892 = vrot.lane.b32.xlu1 %v853_v56, %s4365_s22  ;;  %890 = vrot.lane.b32.xlu0 %v852_v35, %s4365_s22 }
 0x113   :  { %v4892_v7 = vpop.permute.xlu1 %516  ;;  %v4894_v2 = vpop.permute.xlu0 %514 }
 0x114   :  { %7940 = vst [vmem:[#allocation44_spill] sm:$0xff] %v4892_v7  ;;  %7941 = vst [vmem:[#allocation45_spill] sm:$0xff] %v4894_v2  ;;  %v859_v7 = vmul.f32 %v845_v24, %v4531_v25  ;;  %v858_v2 = vmul.f32 %v845_v24, %v4536_v26 }
 0x115   :  { %896 = vrot.lane.b32.xlu1 %v855_v19, %s4365_s22  ;;  %894 = vrot.lane.b32.xlu0 %v854_v16, %s4365_s22 }
 0x117   :  { %v4900_v56 = vpop.permute.xlu1 %586  ;;  %v4902_v35 = vpop.permute.xlu0 %584 }
 0x118   :  { %7942 = vst [vmem:[#allocation46_spill] sm:$0xff] %v4900_v56  ;;  %7943 = vst [vmem:[#allocation47_spill] sm:$0xff] %v4902_v35  ;;  %v861_v56 = vmul.f32 %v845_v24, %v4545_v29  ;;  %v860_v35 = vmul.f32 %v845_v24, %v4550_v30  ;;  %v947_v24 = vmul.f32 %v943_v59, %v4459_v3 }
 0x119   :  { %900 = vrot.lane.b32.xlu1 %v857_v40, %s4365_s22  ;;  %898 = vrot.lane.b32.xlu0 %v856_v43, %s4365_s22 }
 0x11b   :  { %v4908_v19 = vpop.permute.xlu1 %590  ;;  %v4910_v16 = vpop.permute.xlu0 %588 }
 0x11c   :  { %7944 = vst [vmem:[#allocation48_spill] sm:$0xff] %v4908_v19  ;;  %7945 = vst [vmem:[#allocation49_spill] sm:$0xff] %v4910_v16  ;;  %v945_v19 = vmul.f32 %v943_v59, %v4464_v4  ;;  %v944_v16 = vmul.f32 %v943_v59, %v4454_v1 }
 0x11d   :  { %904 = vrot.lane.b32.xlu1 %v859_v7, %s4365_s22  ;;  %902 = vrot.lane.b32.xlu0 %v858_v2, %s4365_s22 }
 0x11f   :  { %v4916_v40 = vpop.permute.xlu1 %594  ;;  %v4918_v43 = vpop.permute.xlu0 %592 }
 0x120   :  { %7946 = vst [vmem:[#allocation50_spill] sm:$0xff] %v4916_v40  ;;  %7947 = vst [vmem:[#allocation51_spill] sm:$0xff] %v4918_v43  ;;  %v946_v43 = vmul.f32 %v943_v59, %v4449_v0 }
 0x121   :  { %908 = vrot.lane.b32.xlu1 %v861_v56, %s4365_s22  ;;  %906 = vrot.lane.b32.xlu0 %v860_v35, %s4365_s22 }
 0x123   :  { %v4924_v7 = vpop.permute.xlu1 %598  ;;  %v4926_v2 = vpop.permute.xlu0 %596 }
 0x124   :  { %7948 = vst [vmem:[#allocation52_spill] sm:$0xff] %v4924_v7  ;;  %7949 = vst [vmem:[#allocation53_spill] sm:$0xff] %v4926_v2  ;;  %v949_v7 = vmul.f32 %v943_v59, %v4475_v9  ;;  %v948_v2 = vmul.f32 %v943_v59, %v4480_v10 }
 0x125   :  { %978 = vrot.lane.b32.xlu1 %v945_v19, %s4366_s24  ;;  %976 = vrot.lane.b32.xlu0 %v944_v16, %s4366_s24  ;;  %v951_v16 = vmul.f32 %v943_v59, %v4489_v13 }
 0x127   :  { %v4932_v56 = vpop.permute.xlu1 %602  ;;  %v4934_v35 = vpop.permute.xlu0 %600 }
 0x128   :  { %7950 = vst [vmem:[#allocation54_spill] sm:$0xff] %v4932_v56  ;;  %7951 = vst [vmem:[#allocation55_spill] sm:$0xff] %v4934_v35  ;;  %v950_v35 = vmul.f32 %v943_v59, %v4494_v14 }
 0x129   :  { %982 = vrot.lane.b32.xlu1 %v947_v24, %s4366_s24  ;;  %980 = vrot.lane.b32.xlu0 %v946_v43, %s4366_s24  ;;  %v953_v43 = vmul.f32 %v943_v59, %v4503_v17 }
 0x12b   :  { %v4940_v40 = vpop.permute.xlu1 %606  ;;  %v4942_v19 = vpop.permute.xlu0 %604 }
 0x12c   :  { %7952 = vst [vmem:[#allocation56_spill] sm:$0xff] %v4940_v40  ;;  %7953 = vst [vmem:[#allocation57_spill] sm:$0xff] %v4942_v19  ;;  %v952_v19 = vmul.f32 %v943_v59, %v4508_v18 }
 0x12d   :  { %986 = vrot.lane.b32.xlu1 %v949_v7, %s4366_s24  ;;  %984 = vrot.lane.b32.xlu0 %v948_v2, %s4366_s24  ;;  %v955_v2 = vmul.f32 %v943_v59, %v4517_v21 }
 0x12f   :  { %v4948_v56 = vpop.permute.xlu1 %610  ;;  %v4950_v24 = vpop.permute.xlu0 %608 }
 0x130   :  { %7954 = vst [vmem:[#allocation58_spill] sm:$0xff] %v4948_v56  ;;  %7955 = vst [vmem:[#allocation59_spill] sm:$0xff] %v4950_v24  ;;  %v954_v24 = vmul.f32 %v943_v59, %v4522_v22  ;;  %v1041_v56 = vstv %s4146_s25  ;;  %s6396_s25 = sld [smem:[#allocation6]] }
 0x131   :  { %990 = vrot.lane.b32.xlu1 %v951_v16, %s4366_s24  ;;  %988 = vrot.lane.b32.xlu0 %v950_v35, %s4366_s24 }
 0x133   :  { %v4956_v40 = vpop.permute.xlu1 %614  ;;  %v4958_v7 = vpop.permute.xlu0 %612 }
 0x134   :  { %7956 = vst [vmem:[#allocation60_spill] sm:$0xff] %v4956_v40  ;;  %7957 = vst [vmem:[#allocation61_spill] sm:$0xff] %v4958_v7  ;;  %v957_v40 = vmul.f32 %v943_v59, %v4531_v25  ;;  %v956_v7 = vmul.f32 %v943_v59, %v4536_v26 }
 0x135   :  { %994 = vrot.lane.b32.xlu1 %v953_v43, %s4366_s24  ;;  %992 = vrot.lane.b32.xlu0 %v952_v19, %s4366_s24 }
 0x137   :  { %v4964_v16 = vpop.permute.xlu1 %684  ;;  %v4966_v35 = vpop.permute.xlu0 %682 }
 0x138   :  { %7958 = vst [vmem:[#allocation62_spill] sm:$0xff] %v4964_v16  ;;  %7959 = vst [vmem:[#allocation63_spill] sm:$0xff] %v4966_v35  ;;  %v959_v16 = vmul.f32 %v943_v59, %v4545_v29  ;;  %v958_v35 = vmul.f32 %v943_v59, %v4550_v30  ;;  %v1045_v59 = vmul.f32 %v1041_v56, %v4459_v3 }
 0x139   :  { %998 = vrot.lane.b32.xlu1 %v955_v2, %s4366_s24  ;;  %996 = vrot.lane.b32.xlu0 %v954_v24, %s4366_s24 }
 0x13b   :  { %v4972_v43 = vpop.permute.xlu1 %688  ;;  %v4974_v19 = vpop.permute.xlu0 %686 }
 0x13c   :  { %7960 = vst [vmem:[#allocation64_spill] sm:$0xff] %v4972_v43  ;;  %7961 = vst [vmem:[#allocation65_spill] sm:$0xff] %v4974_v19  ;;  %v1043_v43 = vmul.f32 %v1041_v56, %v4464_v4  ;;  %v1042_v19 = vmul.f32 %v1041_v56, %v4454_v1 }
 0x13d   :  { %1002 = vrot.lane.b32.xlu1 %v957_v40, %s4366_s24  ;;  %1000 = vrot.lane.b32.xlu0 %v956_v7, %s4366_s24 }
 0x13f   :  { %v4980_v2 = vpop.permute.xlu1 %692  ;;  %v4982_v24 = vpop.permute.xlu0 %690 }
 0x140   :  { %7962 = vst [vmem:[#allocation66_spill] sm:$0xff] %v4980_v2  ;;  %7963 = vst [vmem:[#allocation67_spill] sm:$0xff] %v4982_v24  ;;  %v1044_v24 = vmul.f32 %v1041_v56, %v4449_v0 }
 0x141   :  { %1006 = vrot.lane.b32.xlu1 %v959_v16, %s4366_s24  ;;  %1004 = vrot.lane.b32.xlu0 %v958_v35, %s4366_s24  ;;  %s6328_s24 = sld [smem:[#allocation3 + $0x1a]] }
 0x143   :  { %v4988_v40 = vpop.permute.xlu1 %696  ;;  %v4990_v7 = vpop.permute.xlu0 %694 }
 0x144   :  { %7964 = vst [vmem:[#allocation68_spill] sm:$0xff] %v4988_v40  ;;  %7965 = vst [vmem:[#allocation69_spill] sm:$0xff] %v4990_v7  ;;  %v1047_v40 = vmul.f32 %v1041_v56, %v4475_v9  ;;  %v1046_v7 = vmul.f32 %v1041_v56, %v4480_v10 }
 0x145   :  { %1076 = vrot.lane.b32.xlu1 %v1043_v43, %s4367_s26  ;;  %1074 = vrot.lane.b32.xlu0 %v1042_v19, %s4367_s26  ;;  %v1049_v19 = vmul.f32 %v1041_v56, %v4489_v13 }
 0x147   :  { %v4996_v16 = vpop.permute.xlu1 %700  ;;  %v4998_v35 = vpop.permute.xlu0 %698 }
 0x148   :  { %7966 = vst [vmem:[#allocation70_spill] sm:$0xff] %v4996_v16  ;;  %7967 = vst [vmem:[#allocation71_spill] sm:$0xff] %v4998_v35  ;;  %v1048_v35 = vmul.f32 %v1041_v56, %v4494_v14 }
 0x149   :  { %1080 = vrot.lane.b32.xlu1 %v1045_v59, %s4367_s26  ;;  %1078 = vrot.lane.b32.xlu0 %v1044_v24, %s4367_s26  ;;  %v1051_v24 = vmul.f32 %v1041_v56, %v4503_v17 }
 0x14b   :  { %v5004_v2 = vpop.permute.xlu1 %704  ;;  %v5006_v43 = vpop.permute.xlu0 %702 }
 0x14c   :  { %7968 = vst [vmem:[#allocation72_spill] sm:$0xff] %v5004_v2  ;;  %7969 = vst [vmem:[#allocation73_spill] sm:$0xff] %v5006_v43  ;;  %v1050_v43 = vmul.f32 %v1041_v56, %v4508_v18 }
 0x14d   :  { %1084 = vrot.lane.b32.xlu1 %v1047_v40, %s4367_s26  ;;  %1082 = vrot.lane.b32.xlu0 %v1046_v7, %s4367_s26  ;;  %v1053_v7 = vmul.f32 %v1041_v56, %v4517_v21 }
 0x14f   :  { %v5012_v16 = vpop.permute.xlu1 %708  ;;  %v5014_v59 = vpop.permute.xlu0 %706 }
 0x150   :  { %7970 = vst [vmem:[#allocation74_spill] sm:$0xff] %v5012_v16  ;;  %7971 = vst [vmem:[#allocation75_spill] sm:$0xff] %v5014_v59  ;;  %v1052_v59 = vmul.f32 %v1041_v56, %v4522_v22  ;;  %v1139_v16 = vstv %s4147_s1  ;;  %s4370_s1 = smov 115  }
 0x151   :  { %1088 = vrot.lane.b32.xlu1 %v1049_v19, %s4367_s26  ;;  %1086 = vrot.lane.b32.xlu0 %v1048_v35, %s4367_s26 }
 0x153   :  { %v5020_v2 = vpop.permute.xlu1 %712  ;;  %v5022_v40 = vpop.permute.xlu0 %710 }
 0x154   :  { %7972 = vst [vmem:[#allocation76_spill] sm:$0xff] %v5020_v2  ;;  %7973 = vst [vmem:[#allocation77_spill] sm:$0xff] %v5022_v40  ;;  %v1055_v2 = vmul.f32 %v1041_v56, %v4531_v25  ;;  %v1054_v40 = vmul.f32 %v1041_v56, %v4536_v26 }
 0x155   :  { %1092 = vrot.lane.b32.xlu1 %v1051_v24, %s4367_s26  ;;  %1090 = vrot.lane.b32.xlu0 %v1050_v43, %s4367_s26 }
 0x157   :  { %v5028_v19 = vpop.permute.xlu1 %782  ;;  %v5030_v35 = vpop.permute.xlu0 %780 }
 0x158   :  { %7974 = vst [vmem:[#allocation78_spill] sm:$0xff] %v5028_v19  ;;  %7975 = vst [vmem:[#allocation79_spill] sm:$0xff] %v5030_v35  ;;  %v1057_v19 = vmul.f32 %v1041_v56, %v4545_v29  ;;  %v1056_v35 = vmul.f32 %v1041_v56, %v4550_v30  ;;  %v1143_v56 = vmul.f32 %v1139_v16, %v4459_v3 }
 0x159   :  { %1096 = vrot.lane.b32.xlu1 %v1053_v7, %s4367_s26  ;;  %1094 = vrot.lane.b32.xlu0 %v1052_v59, %s4367_s26  ;;  %v1146_v3 = vmul.f32 %v1139_v16, %v4494_v14  ;;  %v1150_v14 = vmul.f32 %v1139_v16, %v4522_v22  ;;  %v1154_v22 = vmul.f32 %v1139_v16, %v4550_v30 }
 0x15b   :  { %v5036_v24 = vpop.permute.xlu1 %786  ;;  %v5038_v43 = vpop.permute.xlu0 %784 }
 0x15c   :  { %7976 = vst [vmem:[#allocation80_spill] sm:$0xff] %v5036_v24  ;;  %7977 = vst [vmem:[#allocation81_spill] sm:$0xff] %v5038_v43  ;;  %v1141_v24 = vmul.f32 %v1139_v16, %v4464_v4  ;;  %v1140_v43 = vmul.f32 %v1139_v16, %v4454_v1  ;;  %v1145_v1 = vmul.f32 %v1139_v16, %v4475_v9 }
 0x15d   :  { %1100 = vrot.lane.b32.xlu1 %v1055_v2, %s4367_s26  ;;  %1098 = vrot.lane.b32.xlu0 %v1054_v40, %s4367_s26  ;;  %v1144_v4 = vmul.f32 %v1139_v16, %v4480_v10  ;;  %v1149_v9 = vmul.f32 %v1139_v16, %v4503_v17  ;;  %v1148_v10 = vmul.f32 %v1139_v16, %v4508_v18 }
 0x15e   :  { %v1153_v17 = vmul.f32 %v1139_v16, %v4531_v25  ;;  %v1152_v18 = vmul.f32 %v1139_v16, %v4536_v26  ;;  %v5119_v25 = vld [vmem:[%s7853_s0 + $0x8] sm:$0xff] }
 0x15f   :  { %v5044_v7 = vpop.permute.xlu1 %790  ;;  %v5046_v59 = vpop.permute.xlu0 %788 }
 0x160   :  { %7978 = vst [vmem:[#allocation82_spill] sm:$0xff] %v5044_v7  ;;  %7979 = vst [vmem:[#allocation83_spill] sm:$0xff] %v5046_v59  ;;  %v1142_v59 = vmul.f32 %v1139_v16, %v4449_v0  ;;  %v1147_v0 = vmul.f32 %v1139_v16, %v4489_v13  ;;  %v1151_v13 = vmul.f32 %v1139_v16, %v4517_v21 }
 0x161   :  { %1104 = vrot.lane.b32.xlu1 %v1057_v19, %s4367_s26  ;;  %1102 = vrot.lane.b32.xlu0 %v1056_v35, %s4367_s26  ;;  %v1155_v21 = vmul.f32 %v1139_v16, %v4545_v29  ;;  %v5126_v29 = vld [vmem:[%s7853_s0] sm:$0xff]  ;;  %s6555_s26 = sld [smem:[#allocation3 + $0x1f]] }
 0x163   :  { %v5052_v2 = vpop.permute.xlu1 %794  ;;  %v5054_v40 = vpop.permute.xlu0 %792 }
 0x164   :  { %7980 = vst [vmem:[#allocation84_spill] sm:$0xff] %v5052_v2  ;;  %7981 = vst [vmem:[#allocation85_spill] sm:$0xff] %v5054_v40 }
 0x165   :  { %1174 = vrot.lane.b32.xlu1 %v1141_v24, %s4368_s2  ;;  %1172 = vrot.lane.b32.xlu0 %v1140_v43, %s4368_s2 }
 0x167   :  { %v5060_v19 = vpop.permute.xlu1 %798  ;;  %v5062_v35 = vpop.permute.xlu0 %796 }
 0x168   :  { %7982 = vst [vmem:[#allocation86_spill] sm:$0xff] %v5060_v19  ;;  %7983 = vst [vmem:[#allocation87_spill] sm:$0xff] %v5062_v35 }
 0x169   :  { %1178 = vrot.lane.b32.xlu1 %v1143_v56, %s4368_s2  ;;  %1176 = vrot.lane.b32.xlu0 %v1142_v59, %s4368_s2 }
 0x16b   :  { %v5068_v40 = vpop.permute.xlu1 %802  ;;  %v5070_v24 = vpop.permute.xlu0 %800 }
 0x16c   :  { %7984 = vst [vmem:[#allocation88_spill] sm:$0xff] %v5068_v40  ;;  %7985 = vst [vmem:[#allocation89_spill] sm:$0xff] %v5070_v24  ;;  %v5266_v40 = vld [vmem:[%s7853_s0 + $0x70] sm:$0xff] }
 0x16d   :  { %1182 = vrot.lane.b32.xlu1 %v1145_v1, %s4368_s2  ;;  %1180 = vrot.lane.b32.xlu0 %v1144_v4, %s4368_s2 }
 0x16f   :  { %v5076_v43 = vpop.permute.xlu1 %806  ;;  %v5078_v56 = vpop.permute.xlu0 %804 }
 0x170   :  { %7986 = vst [vmem:[#allocation90_spill] sm:$0xff] %v5076_v43  ;;  %7987 = vst [vmem:[#allocation91_spill] sm:$0xff] %v5078_v56  ;;  %v5246_v43 = vld [vmem:[%s7853_s0 + $0x60] sm:$0xff] }
 0x171   :  { %1186 = vrot.lane.b32.xlu1 %v1147_v0, %s4368_s2  ;;  %1184 = vrot.lane.b32.xlu0 %v1146_v3, %s4368_s2  ;;  %8009 = vst [vmem:[#allocation113_spill] sm:$0xff] %v5246_v43 }
 0x173   :  { %v5084_v59 = vpop.permute.xlu1 %810  ;;  %v5086_v1 = vpop.permute.xlu0 %808 }
 0x174   :  { %7988 = vst [vmem:[#allocation92_spill] sm:$0xff] %v5084_v59  ;;  %7989 = vst [vmem:[#allocation93_spill] sm:$0xff] %v5086_v1  ;;  %v5226_v59 = vld [vmem:[%s7853_s0 + $0x50] sm:$0xff] }
 0x175   :  { %1190 = vrot.lane.b32.xlu1 %v1149_v9, %s4368_s2  ;;  %1188 = vrot.lane.b32.xlu0 %v1148_v10, %s4368_s2  ;;  %v5108_v10 = vstv %s4148_s27  ;;  %s4371_s27 = smov 114  }
 0x176   :  { %v1239_v26 = vmul.f32 %v5119_v25, %v5108_v10  ;;  %v1238_v30 = vmul.f32 %v5126_v29, %v5108_v10 }
 0x177   :  { %v5092_v4 = vpop.permute.xlu1 %880  ;;  %v5094_v0 = vpop.permute.xlu0 %878 }
 0x178   :  { %7990 = vst [vmem:[#allocation94_spill] sm:$0xff] %v5092_v4  ;;  %7991 = vst [vmem:[#allocation95_spill] sm:$0xff] %v5094_v0  ;;  %v5206_v4 = vld [vmem:[%s7853_s0 + $0x40] sm:$0xff] }
 0x179   :  { %1194 = vrot.lane.b32.xlu1 %v1151_v13, %s4368_s2  ;;  %1192 = vrot.lane.b32.xlu0 %v1150_v14, %s4368_s2 }
 0x17b   :  { %v5100_v3 = vpop.permute.xlu1 %884  ;;  %v5102_v9 = vpop.permute.xlu0 %882 }
 0x17c   :  { %7992 = vst [vmem:[#allocation96_spill] sm:$0xff] %v5100_v3  ;;  %7993 = vst [vmem:[#allocation97_spill] sm:$0xff] %v5102_v9  ;;  %v5186_v3 = vld [vmem:[%s7853_s0 + $0x30] sm:$0xff] }
 0x17d   :  { %1198 = vrot.lane.b32.xlu1 %v1153_v17, %s4368_s2  ;;  %1196 = vrot.lane.b32.xlu0 %v1152_v18, %s4368_s2  ;;  %v5139_v18 = vld [vmem:[%s7853_s0 + $0x18] sm:$0xff] }
 0x17f   :  { %v5110_v13 = vpop.permute.xlu1 %888  ;;  %v5112_v14 = vpop.permute.xlu0 %886 }
 0x180   :  { %7994 = vst [vmem:[#allocation98_spill] sm:$0xff] %v5110_v13  ;;  %7995 = vst [vmem:[#allocation99_spill] sm:$0xff] %v5112_v14  ;;  %v5166_v13 = vld [vmem:[%s7853_s0 + $0x20] sm:$0xff] }
 0x181   :  { %1202 = vrot.lane.b32.xlu1 %v1155_v21, %s4368_s2  ;;  %1200 = vrot.lane.b32.xlu0 %v1154_v22, %s4368_s2  ;;  %v1241_v21 = vmul.f32 %v5139_v18, %v5108_v10  ;;  %v5146_v22 = vld [vmem:[%s7853_s0 + $0x10] sm:$0xff]  ;;  %s4150_s2 = sld [smem:[#allocation3 + $0xe]] }
 0x183   :  { %v5130_v16 = vpop.permute.xlu1 %892  ;;  %v5132_v17 = vpop.permute.xlu0 %890 }
 0x184   :  { %7996 = vst [vmem:[#allocation100_spill] sm:$0xff] %v5130_v16  ;;  %7997 = vst [vmem:[#allocation101_spill] sm:$0xff] %v5132_v17  ;;  %v1240_v17 = vmul.f32 %v5146_v22, %v5108_v10 }
 0x185   :  { %1272 = vrot.lane.b32.xlu1 %v1239_v26, %s4369_s7  ;;  %1270 = vrot.lane.b32.xlu0 %v1238_v30, %s4369_s7  ;;  %v5159_v30 = vld [vmem:[%s7853_s0 + $0x28] sm:$0xff] }
 0x186   :  { %v1243_v14 = vmul.f32 %v5159_v30, %v5108_v10 }
 0x187   :  { %v5150_v16 = vpop.permute.xlu1 %896  ;;  %v5152_v26 = vpop.permute.xlu0 %894 }
 0x188   :  { %7998 = vst [vmem:[#allocation102_spill] sm:$0xff] %v5150_v16  ;;  %7999 = vst [vmem:[#allocation103_spill] sm:$0xff] %v5152_v26  ;;  %v1242_v26 = vmul.f32 %v5166_v13, %v5108_v10 }
 0x189   :  { %1276 = vrot.lane.b32.xlu1 %v1241_v21, %s4369_s7  ;;  %1274 = vrot.lane.b32.xlu0 %v1240_v17, %s4369_s7  ;;  %v5179_v17 = vld [vmem:[%s7853_s0 + $0x38] sm:$0x7f] }
 0x18a   :  { %v1245_v9 = vmul.f32 %v5179_v17, %v5108_v10 }
 0x18b   :  { %v5170_v16 = vpop.permute.xlu1 %900  ;;  %v5172_v21 = vpop.permute.xlu0 %898 }
 0x18c   :  { %8000 = vst [vmem:[#allocation104_spill] sm:$0xff] %v5170_v16  ;;  %8001 = vst [vmem:[#allocation105_spill] sm:$0xff] %v5172_v21  ;;  %v1244_v21 = vmul.f32 %v5186_v3, %v5108_v10 }
 0x18d   :  { %1280 = vrot.lane.b32.xlu1 %v1243_v14, %s4369_s7  ;;  %1278 = vrot.lane.b32.xlu0 %v1242_v26, %s4369_s7  ;;  %v5199_v26 = vld [vmem:[%s7853_s0 + $0x48] sm:$0xff] }
 0x18e   :  { %v1247_v0 = vmul.f32 %v5199_v26, %v5108_v10 }
 0x18f   :  { %v5190_v16 = vpop.permute.xlu1 %904  ;;  %v5192_v14 = vpop.permute.xlu0 %902 }
 0x190   :  { %8002 = vst [vmem:[#allocation106_spill] sm:$0xff] %v5190_v16  ;;  %8003 = vst [vmem:[#allocation107_spill] sm:$0xff] %v5192_v14  ;;  %v1246_v14 = vmul.f32 %v5206_v4, %v5108_v10 }
 0x191   :  { %1284 = vrot.lane.b32.xlu1 %v1245_v9, %s4369_s7  ;;  %1282 = vrot.lane.b32.xlu0 %v1244_v21, %s4369_s7  ;;  %v5219_v21 = vld [vmem:[%s7853_s0 + $0x58] sm:$0xff] }
 0x192   :  { %v1249_v1 = vmul.f32 %v5219_v21, %v5108_v10 }
 0x193   :  { %v5210_v16 = vpop.permute.xlu1 %908  ;;  %v5212_v9 = vpop.permute.xlu0 %906 }
 0x194   :  { %8004 = vst [vmem:[#allocation108_spill] sm:$0xff] %v5210_v16  ;;  %8005 = vst [vmem:[#allocation109_spill] sm:$0xff] %v5212_v9  ;;  %v1248_v9 = vmul.f32 %v5226_v59, %v5108_v10  ;;  %v5239_v16 = vld [vmem:[%s7853_s0 + $0x68] sm:$0xff] }
 0x195   :  { %1288 = vrot.lane.b32.xlu1 %v1247_v0, %s4369_s7  ;;  %1286 = vrot.lane.b32.xlu0 %v1246_v14, %s4369_s7  ;;  %8008 = vst [vmem:[#allocation112_spill] sm:$0xff] %v5239_v16  ;;  %v1251_v56 = vmul.f32 %v5239_v16, %v5108_v10 }
 0x197   :  { %v5230_v0 = vpop.permute.xlu1 %978  ;;  %v5232_v14 = vpop.permute.xlu0 %976 }
 0x198   :  { %8006 = vst [vmem:[#allocation110_spill] sm:$0xff] %v5230_v0  ;;  %8007 = vst [vmem:[#allocation111_spill] sm:$0xff] %v5232_v14  ;;  %v1250_v14 = vmul.f32 %v5246_v43, %v5108_v10 }
 0x199   :  { %1292 = vrot.lane.b32.xlu1 %v1249_v1, %s4369_s7  ;;  %1290 = vrot.lane.b32.xlu0 %v1248_v9, %s4369_s7  ;;  %v5259_v9 = vld [vmem:[%s7853_s0 + $0x78] sm:$0x7f] }
 0x19a   :  { %8012 = vst [vmem:[#allocation116_spill] sm:$0xff] %v5259_v9  ;;  %v1253_v24 = vmul.f32 %v5259_v9, %v5108_v10 }
 0x19b   :  { %v5250_v0 = vpop.permute.xlu1 %982  ;;  %v5252_v1 = vpop.permute.xlu0 %980 }
 0x19c   :  { %8010 = vst [vmem:[#allocation114_spill] sm:$0xff] %v5250_v0  ;;  %8011 = vst [vmem:[#allocation115_spill] sm:$0xff] %v5252_v1  ;;  %v1252_v1 = vmul.f32 %v5266_v40, %v5108_v10  ;;  %v1335_v0 = vstv %s4149_s13  ;;  %s4154_s13 = sld [smem:[#allocation3 + $0x12]] }
 0x19d   :  { %1296 = vrot.lane.b32.xlu1 %v1251_v56, %s4369_s7  ;;  %1294 = vrot.lane.b32.xlu0 %v1250_v14, %s4369_s7  ;;  %v1337_v35 = vmul.f32 %v5119_v25, %v1335_v0  ;;  %v1336_v19 = vmul.f32 %v5126_v29, %v1335_v0  ;;  %v1339_v10 = vmul.f32 %v5139_v18, %v1335_v0 }
 0x19f   :  { %v5270_v56 = vpop.permute.xlu1 %986  ;;  %v5272_v14 = vpop.permute.xlu0 %984 }
 0x1a0   :  { %8013 = vst [vmem:[#allocation117_spill] sm:$0xff] %v5270_v56  ;;  %8014 = vst [vmem:[#allocation118_spill] sm:$0xff] %v5272_v14  ;;  %v1338_v14 = vmul.f32 %v5146_v22, %v1335_v0 }
 0x1a1   :  { %1300 = vrot.lane.b32.xlu1 %v1253_v24, %s4369_s7  ;;  %1298 = vrot.lane.b32.xlu0 %v1252_v1, %s4369_s7 }
 0x1a3   :  { %v5278_v2 = vpop.permute.xlu1 %990  ;;  %v5280_v7 = vpop.permute.xlu0 %988 }
 0x1a4   :  { %8015 = vst [vmem:[#allocation119_spill] sm:$0xff] %v5278_v2  ;;  %8016 = vst [vmem:[#allocation120_spill] sm:$0xff] %v5280_v7  ;;  %v1341_v2 = vmul.f32 %v5159_v30, %v1335_v0  ;;  %v1340_v7 = vmul.f32 %v5166_v13, %v1335_v0 }
 0x1a5   :  { %1370 = vrot.lane.b32.xlu1 %v1337_v35, %s4370_s1  ;;  %1368 = vrot.lane.b32.xlu0 %v1336_v19, %s4370_s1  ;;  %v1343_v19 = vmul.f32 %v5179_v17, %v1335_v0 }
 0x1a7   :  { %v5286_v24 = vpop.permute.xlu1 %994  ;;  %v5288_v1 = vpop.permute.xlu0 %992 }
 0x1a8   :  { %8017 = vst [vmem:[#allocation121_spill] sm:$0xff] %v5286_v24  ;;  %8018 = vst [vmem:[#allocation122_spill] sm:$0xff] %v5288_v1  ;;  %v1342_v1 = vmul.f32 %v5186_v3, %v1335_v0 }
 0x1a9   :  { %1374 = vrot.lane.b32.xlu1 %v1339_v10, %s4370_s1  ;;  %1372 = vrot.lane.b32.xlu0 %v1338_v14, %s4370_s1  ;;  %v1345_v14 = vmul.f32 %v5199_v26, %v1335_v0 }
 0x1ab   :  { %v5294_v56 = vpop.permute.xlu1 %998  ;;  %v5296_v35 = vpop.permute.xlu0 %996 }
 0x1ac   :  { %8019 = vst [vmem:[#allocation123_spill] sm:$0xff] %v5294_v56  ;;  %8020 = vst [vmem:[#allocation124_spill] sm:$0xff] %v5296_v35  ;;  %v1344_v35 = vmul.f32 %v5206_v4, %v1335_v0 }
 0x1ad   :  { %1378 = vrot.lane.b32.xlu1 %v1341_v2, %s4370_s1  ;;  %1376 = vrot.lane.b32.xlu0 %v1340_v7, %s4370_s1  ;;  %v1347_v7 = vmul.f32 %v5219_v21, %v1335_v0 }
 0x1af   :  { %v5302_v24 = vpop.permute.xlu1 %1002  ;;  %v5304_v10 = vpop.permute.xlu0 %1000 }
 0x1b0   :  { %8021 = vst [vmem:[#allocation125_spill] sm:$0xff] %v5302_v24  ;;  %8022 = vst [vmem:[#allocation126_spill] sm:$0xff] %v5304_v10  ;;  %v1346_v10 = vmul.f32 %v5226_v59, %v1335_v0  ;;  %v1433_v24 = vstv %s4150_s2  ;;  %s4382_s2 = smov 108  }
 0x1b1   :  { %1382 = vrot.lane.b32.xlu1 %v1343_v19, %s4370_s1  ;;  %1380 = vrot.lane.b32.xlu0 %v1342_v1, %s4370_s1 }
 0x1b3   :  { %v5310_v56 = vpop.permute.xlu1 %1006  ;;  %v5312_v2 = vpop.permute.xlu0 %1004 }
 0x1b4   :  { %8023 = vst [vmem:[#allocation127_spill] sm:$0xff] %v5310_v56  ;;  %8024 = vst [vmem:[#allocation128_spill] sm:$0xff] %v5312_v2  ;;  %v1349_v56 = vmul.f32 %v5239_v16, %v1335_v0  ;;  %v1348_v2 = vmul.f32 %v5246_v43, %v1335_v0 }
 0x1b5   :  { %1386 = vrot.lane.b32.xlu1 %v1345_v14, %s4370_s1  ;;  %1384 = vrot.lane.b32.xlu0 %v1344_v35, %s4370_s1 }
 0x1b7   :  { %v5318_v19 = vpop.permute.xlu1 %1076  ;;  %v5320_v1 = vpop.permute.xlu0 %1074 }
 0x1b8   :  { %8025 = vst [vmem:[#allocation129_spill] sm:$0xff] %v5318_v19  ;;  %8026 = vst [vmem:[#allocation130_spill] sm:$0xff] %v5320_v1  ;;  %v1351_v19 = vmul.f32 %v5259_v9, %v1335_v0  ;;  %v1350_v1 = vmul.f32 %v5266_v40, %v1335_v0  ;;  %v1437_v0 = vmul.f32 %v5139_v18, %v1433_v24 }
 0x1b9   :  { %1390 = vrot.lane.b32.xlu1 %v1347_v7, %s4370_s1  ;;  %1388 = vrot.lane.b32.xlu0 %v1346_v10, %s4370_s1 }
 0x1bb   :  { %v5326_v14 = vpop.permute.xlu1 %1080  ;;  %v5328_v35 = vpop.permute.xlu0 %1078 }
 0x1bc   :  { %8027 = vst [vmem:[#allocation131_spill] sm:$0xff] %v5326_v14  ;;  %8028 = vst [vmem:[#allocation132_spill] sm:$0xff] %v5328_v35  ;;  %v1435_v14 = vmul.f32 %v5119_v25, %v1433_v24  ;;  %v1434_v35 = vmul.f32 %v5126_v29, %v1433_v24 }
 0x1bd   :  { %1394 = vrot.lane.b32.xlu1 %v1349_v56, %s4370_s1  ;;  %1392 = vrot.lane.b32.xlu0 %v1348_v2, %s4370_s1 }
 0x1bf   :  { %v5334_v7 = vpop.permute.xlu1 %1084  ;;  %v5336_v10 = vpop.permute.xlu0 %1082 }
 0x1c0   :  { %8029 = vst [vmem:[#allocation133_spill] sm:$0xff] %v5334_v7  ;;  %8030 = vst [vmem:[#allocation134_spill] sm:$0xff] %v5336_v10  ;;  %v1436_v10 = vmul.f32 %v5146_v22, %v1433_v24 }
 0x1c1   :  { %1398 = vrot.lane.b32.xlu1 %v1351_v19, %s4370_s1  ;;  %1396 = vrot.lane.b32.xlu0 %v1350_v1, %s4370_s1  ;;  %s4164_s1 = sld [smem:[#allocation3 + $0x1b]] }
 0x1c3   :  { %v5342_v56 = vpop.permute.xlu1 %1088  ;;  %v5344_v2 = vpop.permute.xlu0 %1086 }
 0x1c4   :  { %8031 = vst [vmem:[#allocation135_spill] sm:$0xff] %v5342_v56  ;;  %8032 = vst [vmem:[#allocation136_spill] sm:$0xff] %v5344_v2  ;;  %v1439_v56 = vmul.f32 %v5159_v30, %v1433_v24  ;;  %v1438_v2 = vmul.f32 %v5166_v13, %v1433_v24 }
 0x1c5   :  { %1468 = vrot.lane.b32.xlu1 %v1435_v14, %s4371_s27  ;;  %1466 = vrot.lane.b32.xlu0 %v1434_v35, %s4371_s27  ;;  %v1441_v35 = vmul.f32 %v5179_v17, %v1433_v24 }
 0x1c7   :  { %v5350_v19 = vpop.permute.xlu1 %1092  ;;  %v5352_v1 = vpop.permute.xlu0 %1090 }
 0x1c8   :  { %8033 = vst [vmem:[#allocation137_spill] sm:$0xff] %v5350_v19  ;;  %8034 = vst [vmem:[#allocation138_spill] sm:$0xff] %v5352_v1  ;;  %v1440_v1 = vmul.f32 %v5186_v3, %v1433_v24 }
 0x1c9   :  { %1472 = vrot.lane.b32.xlu1 %v1437_v0, %s4371_s27  ;;  %1470 = vrot.lane.b32.xlu0 %v1436_v10, %s4371_s27  ;;  %v1443_v10 = vmul.f32 %v5199_v26, %v1433_v24 }
 0x1cb   :  { %v5358_v7 = vpop.permute.xlu1 %1096  ;;  %v5360_v14 = vpop.permute.xlu0 %1094 }
 0x1cc   :  { %8035 = vst [vmem:[#allocation139_spill] sm:$0xff] %v5358_v7  ;;  %8036 = vst [vmem:[#allocation140_spill] sm:$0xff] %v5360_v14  ;;  %v1442_v14 = vmul.f32 %v5206_v4, %v1433_v24 }
 0x1cd   :  { %1476 = vrot.lane.b32.xlu1 %v1439_v56, %s4371_s27  ;;  %1474 = vrot.lane.b32.xlu0 %v1438_v2, %s4371_s27  ;;  %v1445_v2 = vmul.f32 %v5219_v21, %v1433_v24 }
 0x1cf   :  { %v5366_v19 = vpop.permute.xlu1 %1100  ;;  %v5368_v0 = vpop.permute.xlu0 %1098 }
 0x1d0   :  { %8037 = vst [vmem:[#allocation141_spill] sm:$0xff] %v5366_v19  ;;  %8038 = vst [vmem:[#allocation142_spill] sm:$0xff] %v5368_v0  ;;  %v1444_v0 = vmul.f32 %v5226_v59, %v1433_v24  ;;  %v1531_v19 = vstv %s4151_s28  ;;  %s4158_s28 = sld [smem:[#allocation3 + $0x15]] }
 0x1d1   :  { %1480 = vrot.lane.b32.xlu1 %v1441_v35, %s4371_s27  ;;  %1478 = vrot.lane.b32.xlu0 %v1440_v1, %s4371_s27 }
 0x1d3   :  { %v5374_v7 = vpop.permute.xlu1 %1104  ;;  %v5376_v56 = vpop.permute.xlu0 %1102 }
 0x1d4   :  { %8039 = vst [vmem:[#allocation143_spill] sm:$0xff] %v5374_v7  ;;  %8040 = vst [vmem:[#allocation144_spill] sm:$0xff] %v5376_v56  ;;  %v1447_v7 = vmul.f32 %v5239_v16, %v1433_v24  ;;  %v1446_v56 = vmul.f32 %v5246_v43, %v1433_v24 }
 0x1d5   :  { %1484 = vrot.lane.b32.xlu1 %v1443_v10, %s4371_s27  ;;  %1482 = vrot.lane.b32.xlu0 %v1442_v14, %s4371_s27 }
 0x1d7   :  { %v5382_v35 = vpop.permute.xlu1 %1174  ;;  %v5384_v1 = vpop.permute.xlu0 %1172 }
 0x1d8   :  { %8041 = vst [vmem:[#allocation145_spill] sm:$0xff] %v5382_v35  ;;  %8042 = vst [vmem:[#allocation146_spill] sm:$0xff] %v5384_v1  ;;  %v1449_v35 = vmul.f32 %v5259_v9, %v1433_v24  ;;  %v1448_v1 = vmul.f32 %v5266_v40, %v1433_v24  ;;  %v1535_v24 = vmul.f32 %v5139_v18, %v1531_v19 }
 0x1d9   :  { %1488 = vrot.lane.b32.xlu1 %v1445_v2, %s4371_s27  ;;  %1486 = vrot.lane.b32.xlu0 %v1444_v0, %s4371_s27 }
 0x1db   :  { %v5390_v10 = vpop.permute.xlu1 %1178  ;;  %v5392_v14 = vpop.permute.xlu0 %1176 }
 0x1dc   :  { %8043 = vst [vmem:[#allocation147_spill] sm:$0xff] %v5390_v10  ;;  %8044 = vst [vmem:[#allocation148_spill] sm:$0xff] %v5392_v14  ;;  %v1533_v10 = vmul.f32 %v5119_v25, %v1531_v19  ;;  %v1532_v14 = vmul.f32 %v5126_v29, %v1531_v19 }
 0x1dd   :  { %1492 = vrot.lane.b32.xlu1 %v1447_v7, %s4371_s27  ;;  %1490 = vrot.lane.b32.xlu0 %v1446_v56, %s4371_s27 }
 0x1df   :  { %v5398_v2 = vpop.permute.xlu1 %1182  ;;  %v5400_v0 = vpop.permute.xlu0 %1180 }
 0x1e0   :  { %8045 = vst [vmem:[#allocation149_spill] sm:$0xff] %v5398_v2  ;;  %8046 = vst [vmem:[#allocation150_spill] sm:$0xff] %v5400_v0  ;;  %v1534_v0 = vmul.f32 %v5146_v22, %v1531_v19 }
 0x1e1   :  { %1496 = vrot.lane.b32.xlu1 %v1449_v35, %s4371_s27  ;;  %1494 = vrot.lane.b32.xlu0 %v1448_v1, %s4371_s27  ;;  %s6100_s27 = sld [smem:[#allocation3 + $0x17]] }
 0x1e3   :  { %v5406_v7 = vpop.permute.xlu1 %1186  ;;  %v5408_v56 = vpop.permute.xlu0 %1184 }
 0x1e4   :  { %8047 = vst [vmem:[#allocation151_spill] sm:$0xff] %v5406_v7  ;;  %8048 = vst [vmem:[#allocation152_spill] sm:$0xff] %v5408_v56  ;;  %v1537_v7 = vmul.f32 %v5159_v30, %v1531_v19  ;;  %v1536_v56 = vmul.f32 %v5166_v13, %v1531_v19 }
 0x1e5   :  { %1566 = vrot.lane.b32.xlu1 %v1533_v10, %s4372_s29  ;;  %1564 = vrot.lane.b32.xlu0 %v1532_v14, %s4372_s29  ;;  %v1539_v14 = vmul.f32 %v5179_v17, %v1531_v19 }
 0x1e7   :  { %v5414_v35 = vpop.permute.xlu1 %1190  ;;  %v5416_v1 = vpop.permute.xlu0 %1188 }
 0x1e8   :  { %8049 = vst [vmem:[#allocation153_spill] sm:$0xff] %v5414_v35  ;;  %8050 = vst [vmem:[#allocation154_spill] sm:$0xff] %v5416_v1  ;;  %v1538_v1 = vmul.f32 %v5186_v3, %v1531_v19 }
 0x1e9   :  { %1570 = vrot.lane.b32.xlu1 %v1535_v24, %s4372_s29  ;;  %1568 = vrot.lane.b32.xlu0 %v1534_v0, %s4372_s29  ;;  %v1541_v0 = vmul.f32 %v5199_v26, %v1531_v19 }
 0x1eb   :  { %v5422_v2 = vpop.permute.xlu1 %1194  ;;  %v5424_v10 = vpop.permute.xlu0 %1192 }
 0x1ec   :  { %8051 = vst [vmem:[#allocation155_spill] sm:$0xff] %v5422_v2  ;;  %8052 = vst [vmem:[#allocation156_spill] sm:$0xff] %v5424_v10  ;;  %v1540_v10 = vmul.f32 %v5206_v4, %v1531_v19 }
 0x1ed   :  { %1574 = vrot.lane.b32.xlu1 %v1537_v7, %s4372_s29  ;;  %1572 = vrot.lane.b32.xlu0 %v1536_v56, %s4372_s29  ;;  %v1543_v56 = vmul.f32 %v5219_v21, %v1531_v19 }
 0x1ef   :  { %v5430_v35 = vpop.permute.xlu1 %1198  ;;  %v5432_v24 = vpop.permute.xlu0 %1196 }
 0x1f0   :  { %8053 = vst [vmem:[#allocation157_spill] sm:$0xff] %v5430_v35  ;;  %8054 = vst [vmem:[#allocation158_spill] sm:$0xff] %v5432_v24  ;;  %v1542_v24 = vmul.f32 %v5226_v59, %v1531_v19  ;;  %v1629_v35 = vstv %s4152_s30  ;;  %s4390_s30 = smov 76  }
 0x1f1   :  { %1578 = vrot.lane.b32.xlu1 %v1539_v14, %s4372_s29  ;;  %1576 = vrot.lane.b32.xlu0 %v1538_v1, %s4372_s29  ;;  %v1634_v51 = vmul.f32 %v5166_v13, %v1629_v35 }
 0x1f3   :  { %v5438_v2 = vpop.permute.xlu1 %1202  ;;  %v5440_v7 = vpop.permute.xlu0 %1200 }
 0x1f4   :  { %8055 = vst [vmem:[#allocation159_spill] sm:$0xff] %v5438_v2  ;;  %8056 = vst [vmem:[#allocation160_spill] sm:$0xff] %v5440_v7  ;;  %v1545_v2 = vmul.f32 %v5239_v16, %v1531_v19  ;;  %v1544_v7 = vmul.f32 %v5246_v43, %v1531_v19 }
 0x1f5   :  { %1582 = vrot.lane.b32.xlu1 %v1541_v0, %s4372_s29  ;;  %1580 = vrot.lane.b32.xlu0 %v1540_v10, %s4372_s29 }
 0x1f7   :  { %v5446_v14 = vpop.permute.xlu1 %1272  ;;  %v5448_v1 = vpop.permute.xlu0 %1270 }
 0x1f8   :  { %8057 = vst [vmem:[#allocation161_spill] sm:$0xff] %v5446_v14  ;;  %8058 = vst [vmem:[#allocation162_spill] sm:$0xff] %v5448_v1  ;;  %v1547_v14 = vmul.f32 %v5259_v9, %v1531_v19  ;;  %v1546_v1 = vmul.f32 %v5266_v40, %v1531_v19  ;;  %v1633_v19 = vmul.f32 %v5139_v18, %v1629_v35 }
 0x1f9   :  { %1586 = vrot.lane.b32.xlu1 %v1543_v56, %s4372_s29  ;;  %1584 = vrot.lane.b32.xlu0 %v1542_v24, %s4372_s29 }
 0x1fb   :  { %v5454_v0 = vpop.permute.xlu1 %1276  ;;  %v5456_v10 = vpop.permute.xlu0 %1274 }
 0x1fc   :  { %8059 = vst [vmem:[#allocation163_spill] sm:$0xff] %v5454_v0  ;;  %8060 = vst [vmem:[#allocation164_spill] sm:$0xff] %v5456_v10  ;;  %v1631_v0 = vmul.f32 %v5119_v25, %v1629_v35  ;;  %v1630_v10 = vmul.f32 %v5126_v29, %v1629_v35 }
 0x1fd   :  { %1590 = vrot.lane.b32.xlu1 %v1545_v2, %s4372_s29  ;;  %1588 = vrot.lane.b32.xlu0 %v1544_v7, %s4372_s29 }
 0x1ff   :  { %v5462_v56 = vpop.permute.xlu1 %1280  ;;  %v5464_v24 = vpop.permute.xlu0 %1278 }
 0x200   :  { %8061 = vst [vmem:[#allocation165_spill] sm:$0xff] %v5462_v56  ;;  %8062 = vst [vmem:[#allocation166_spill] sm:$0xff] %v5464_v24 }
 0x201   :  { %1594 = vrot.lane.b32.xlu1 %v1547_v14, %s4372_s29  ;;  %1592 = vrot.lane.b32.xlu0 %v1546_v1, %s4372_s29  ;;  %v1632_v14 = vmul.f32 %v5146_v22, %v1629_v35  ;;  %s4389_s29 = smov 72  }
 0x203   :  { %v5470_v2 = vpop.permute.xlu1 %1284  ;;  %v5472_v7 = vpop.permute.xlu0 %1282 }
 0x204   :  { %8063 = vst [vmem:[#allocation167_spill] sm:$0xff] %v5470_v2  ;;  %8064 = vst [vmem:[#allocation168_spill] sm:$0xff] %v5472_v7  ;;  %v1635_v7 = vmul.f32 %v5159_v30, %v1629_v35 }
 0x205   :  { %1664 = vrot.lane.b32.xlu1 %v1631_v0, %s4374_s6  ;;  %1662 = vrot.lane.b32.xlu0 %v1630_v10, %s4374_s6  ;;  %v1637_v10 = vmul.f32 %v5179_v17, %v1629_v35 }
 0x207   :  { %v5478_v1 = vpop.permute.xlu1 %1288  ;;  %v5480_v24 = vpop.permute.xlu0 %1286 }
 0x208   :  { %8065 = vst [vmem:[#allocation169_spill] sm:$0xff] %v5478_v1  ;;  %8066 = vst [vmem:[#allocation170_spill] sm:$0xff] %v5480_v24  ;;  %v1636_v24 = vmul.f32 %v5186_v3, %v1629_v35 }
 0x209   :  { %1668 = vrot.lane.b32.xlu1 %v1633_v19, %s4374_s6  ;;  %1666 = vrot.lane.b32.xlu0 %v1632_v14, %s4374_s6  ;;  %v1639_v14 = vmul.f32 %v5199_v26, %v1629_v35 }
 0x20b   :  { %v5486_v2 = vpop.permute.xlu1 %1292  ;;  %v5488_v0 = vpop.permute.xlu0 %1290 }
 0x20c   :  { %8067 = vst [vmem:[#allocation171_spill] sm:$0xff] %v5486_v2  ;;  %8068 = vst [vmem:[#allocation172_spill] sm:$0xff] %v5488_v0  ;;  %v1638_v0 = vmul.f32 %v5206_v4, %v1629_v35 }
 0x20d   :  { %1672 = vrot.lane.b32.xlu1 %v1635_v7, %s4374_s6  ;;  %1670 = vrot.lane.b32.xlu0 %v1634_v51, %s4374_s6  ;;  %v1641_v51 = vmul.f32 %v5219_v21, %v1629_v35 }
 0x20f   :  { %v5494_v1 = vpop.permute.xlu1 %1296  ;;  %v5496_v19 = vpop.permute.xlu0 %1294 }
 0x210   :  { %8069 = vst [vmem:[#allocation173_spill] sm:$0xff] %v5494_v1  ;;  %8070 = vst [vmem:[#allocation174_spill] sm:$0xff] %v5496_v19  ;;  %v1640_v19 = vmul.f32 %v5226_v59, %v1629_v35  ;;  %v1727_v1 = vstv %s4153_s8  ;;  %s4391_s8 = smov 64  }
 0x211   :  { %1676 = vrot.lane.b32.xlu1 %v1637_v10, %s4374_s6  ;;  %1674 = vrot.lane.b32.xlu0 %v1636_v24, %s4374_s6 }
 0x213   :  { %v5502_v2 = vpop.permute.xlu1 %1300  ;;  %v5504_v7 = vpop.permute.xlu0 %1298 }
 0x214   :  { %8071 = vst [vmem:[#allocation175_spill] sm:$0xff] %v5502_v2  ;;  %8072 = vst [vmem:[#allocation176_spill] sm:$0xff] %v5504_v7  ;;  %v1643_v2 = vmul.f32 %v5239_v16, %v1629_v35  ;;  %v1642_v7 = vmul.f32 %v5246_v43, %v1629_v35 }
 0x215   :  { %1680 = vrot.lane.b32.xlu1 %v1639_v14, %s4374_s6  ;;  %1678 = vrot.lane.b32.xlu0 %v1638_v0, %s4374_s6 }
 0x217   :  { %v5510_v10 = vpop.permute.xlu1 %1370  ;;  %v5512_v24 = vpop.permute.xlu0 %1368 }
 0x218   :  { %8073 = vst [vmem:[#allocation177_spill] sm:$0xff] %v5510_v10  ;;  %8074 = vst [vmem:[#allocation178_spill] sm:$0xff] %v5512_v24  ;;  %v1645_v10 = vmul.f32 %v5259_v9, %v1629_v35  ;;  %v1644_v24 = vmul.f32 %v5266_v40, %v1629_v35  ;;  %v1731_v35 = vmul.f32 %v5139_v18, %v1727_v1 }
 0x219   :  { %1684 = vrot.lane.b32.xlu1 %v1641_v51, %s4374_s6  ;;  %1682 = vrot.lane.b32.xlu0 %v1640_v19, %s4374_s6 }
 0x21b   :  { %v5518_v14 = vpop.permute.xlu1 %1374  ;;  %v5520_v0 = vpop.permute.xlu0 %1372 }
 0x21c   :  { %8075 = vst [vmem:[#allocation179_spill] sm:$0xff] %v5518_v14  ;;  %8076 = vst [vmem:[#allocation180_spill] sm:$0xff] %v5520_v0  ;;  %v1729_v14 = vmul.f32 %v5119_v25, %v1727_v1  ;;  %v1728_v0 = vmul.f32 %v5126_v29, %v1727_v1 }
 0x21d   :  { %1688 = vrot.lane.b32.xlu1 %v1643_v2, %s4374_s6  ;;  %1686 = vrot.lane.b32.xlu0 %v1642_v7, %s4374_s6 }
 0x21f   :  { %v5526_v51 = vpop.permute.xlu1 %1378  ;;  %v5528_v19 = vpop.permute.xlu0 %1376 }
 0x220   :  { %8077 = vst [vmem:[#allocation181_spill] sm:$0xff] %v5526_v51  ;;  %8078 = vst [vmem:[#allocation182_spill] sm:$0xff] %v5528_v19  ;;  %v1730_v19 = vmul.f32 %v5146_v22, %v1727_v1 }
 0x221   :  { %1692 = vrot.lane.b32.xlu1 %v1645_v10, %s4374_s6  ;;  %1690 = vrot.lane.b32.xlu0 %v1644_v24, %s4374_s6 }
 0x223   :  { %v5534_v2 = vpop.permute.xlu1 %1382  ;;  %v5536_v7 = vpop.permute.xlu0 %1380 }
 0x224   :  { %8079 = vst [vmem:[#allocation183_spill] sm:$0xff] %v5534_v2  ;;  %8080 = vst [vmem:[#allocation184_spill] sm:$0xff] %v5536_v7  ;;  %v1733_v2 = vmul.f32 %v5159_v30, %v1727_v1  ;;  %v1732_v7 = vmul.f32 %v5166_v13, %v1727_v1 }
 0x225   :  { %1762 = vrot.lane.b32.xlu1 %v1729_v14, %s4375_s11  ;;  %1760 = vrot.lane.b32.xlu0 %v1728_v0, %s4375_s11  ;;  %v1735_v0 = vmul.f32 %v5179_v17, %v1727_v1 }
 0x227   :  { %v5542_v10 = vpop.permute.xlu1 %1386  ;;  %v5544_v24 = vpop.permute.xlu0 %1384 }
 0x228   :  { %8081 = vst [vmem:[#allocation185_spill] sm:$0xff] %v5542_v10  ;;  %8082 = vst [vmem:[#allocation186_spill] sm:$0xff] %v5544_v24  ;;  %v1734_v24 = vmul.f32 %v5186_v3, %v1727_v1 }
 0x229   :  { %1766 = vrot.lane.b32.xlu1 %v1731_v35, %s4375_s11  ;;  %1764 = vrot.lane.b32.xlu0 %v1730_v19, %s4375_s11  ;;  %v1737_v19 = vmul.f32 %v5199_v26, %v1727_v1 }
 0x22b   :  { %v5550_v51 = vpop.permute.xlu1 %1390  ;;  %v5552_v14 = vpop.permute.xlu0 %1388 }
 0x22c   :  { %8083 = vst [vmem:[#allocation187_spill] sm:$0xff] %v5550_v51  ;;  %8084 = vst [vmem:[#allocation188_spill] sm:$0xff] %v5552_v14  ;;  %v1736_v14 = vmul.f32 %v5206_v4, %v1727_v1 }
 0x22d   :  { %1770 = vrot.lane.b32.xlu1 %v1733_v2, %s4375_s11  ;;  %1768 = vrot.lane.b32.xlu0 %v1732_v7, %s4375_s11  ;;  %v1739_v7 = vmul.f32 %v5219_v21, %v1727_v1 }
 0x22f   :  { %v5558_v10 = vpop.permute.xlu1 %1394  ;;  %v5560_v35 = vpop.permute.xlu0 %1392 }
 0x230   :  { %8085 = vst [vmem:[#allocation189_spill] sm:$0xff] %v5558_v10  ;;  %8086 = vst [vmem:[#allocation190_spill] sm:$0xff] %v5560_v35  ;;  %v1738_v35 = vmul.f32 %v5226_v59, %v1727_v1  ;;  %v1825_v10 = vstv %s4154_s13  ;;  %s4393_s13 = smov 56  }
 0x231   :  { %1774 = vrot.lane.b32.xlu1 %v1735_v0, %s4375_s11  ;;  %1772 = vrot.lane.b32.xlu0 %v1734_v24, %s4375_s11 }
 0x233   :  { %v5566_v51 = vpop.permute.xlu1 %1398  ;;  %v5568_v2 = vpop.permute.xlu0 %1396 }
 0x234   :  { %8087 = vst [vmem:[#allocation191_spill] sm:$0xff] %v5566_v51  ;;  %8088 = vst [vmem:[#allocation192_spill] sm:$0xff] %v5568_v2  ;;  %v1741_v51 = vmul.f32 %v5239_v16, %v1727_v1  ;;  %v1740_v2 = vmul.f32 %v5246_v43, %v1727_v1 }
 0x235   :  { %1778 = vrot.lane.b32.xlu1 %v1737_v19, %s4375_s11  ;;  %1776 = vrot.lane.b32.xlu0 %v1736_v14, %s4375_s11 }
 0x237   :  { %v5574_v0 = vpop.permute.xlu1 %1468  ;;  %v5576_v24 = vpop.permute.xlu0 %1466 }
 0x238   :  { %8089 = vst [vmem:[#allocation193_spill] sm:$0xff] %v5574_v0  ;;  %8090 = vst [vmem:[#allocation194_spill] sm:$0xff] %v5576_v24  ;;  %v1743_v0 = vmul.f32 %v5259_v9, %v1727_v1  ;;  %v1742_v24 = vmul.f32 %v5266_v40, %v1727_v1  ;;  %v1829_v1 = vmul.f32 %v5139_v18, %v1825_v10 }
 0x239   :  { %1782 = vrot.lane.b32.xlu1 %v1739_v7, %s4375_s11  ;;  %1780 = vrot.lane.b32.xlu0 %v1738_v35, %s4375_s11 }
 0x23b   :  { %v5582_v19 = vpop.permute.xlu1 %1472  ;;  %v5584_v14 = vpop.permute.xlu0 %1470 }
 0x23c   :  { %8091 = vst [vmem:[#allocation195_spill] sm:$0xff] %v5582_v19  ;;  %8092 = vst [vmem:[#allocation196_spill] sm:$0xff] %v5584_v14  ;;  %v1827_v19 = vmul.f32 %v5119_v25, %v1825_v10  ;;  %v1826_v14 = vmul.f32 %v5126_v29, %v1825_v10 }
 0x23d   :  { %1786 = vrot.lane.b32.xlu1 %v1741_v51, %s4375_s11  ;;  %1784 = vrot.lane.b32.xlu0 %v1740_v2, %s4375_s11 }
 0x23f   :  { %v5590_v7 = vpop.permute.xlu1 %1476  ;;  %v5592_v35 = vpop.permute.xlu0 %1474 }
 0x240   :  { %8093 = vst [vmem:[#allocation197_spill] sm:$0xff] %v5590_v7  ;;  %8094 = vst [vmem:[#allocation198_spill] sm:$0xff] %v5592_v35  ;;  %v1828_v35 = vmul.f32 %v5146_v22, %v1825_v10 }
 0x241   :  { %1790 = vrot.lane.b32.xlu1 %v1743_v0, %s4375_s11  ;;  %1788 = vrot.lane.b32.xlu0 %v1742_v24, %s4375_s11  ;;  %s4392_s11 = smov 68  }
 0x243   :  { %v5598_v51 = vpop.permute.xlu1 %1480  ;;  %v5600_v2 = vpop.permute.xlu0 %1478 }
 0x244   :  { %8095 = vst [vmem:[#allocation199_spill] sm:$0xff] %v5598_v51  ;;  %8096 = vst [vmem:[#allocation200_spill] sm:$0xff] %v5600_v2  ;;  %v1831_v51 = vmul.f32 %v5159_v30, %v1825_v10  ;;  %v1830_v2 = vmul.f32 %v5166_v13, %v1825_v10 }
 0x245   :  { %1860 = vrot.lane.b32.xlu1 %v1827_v19, %s4376_s15  ;;  %1858 = vrot.lane.b32.xlu0 %v1826_v14, %s4376_s15  ;;  %v1833_v14 = vmul.f32 %v5179_v17, %v1825_v10 }
 0x247   :  { %v5606_v0 = vpop.permute.xlu1 %1484  ;;  %v5608_v24 = vpop.permute.xlu0 %1482 }
 0x248   :  { %8097 = vst [vmem:[#allocation201_spill] sm:$0xff] %v5606_v0  ;;  %8098 = vst [vmem:[#allocation202_spill] sm:$0xff] %v5608_v24  ;;  %v1832_v24 = vmul.f32 %v5186_v3, %v1825_v10 }
 0x249   :  { %1864 = vrot.lane.b32.xlu1 %v1829_v1, %s4376_s15  ;;  %1862 = vrot.lane.b32.xlu0 %v1828_v35, %s4376_s15  ;;  %v1835_v35 = vmul.f32 %v5199_v26, %v1825_v10 }
 0x24b   :  { %v5614_v7 = vpop.permute.xlu1 %1488  ;;  %v5616_v19 = vpop.permute.xlu0 %1486 }
 0x24c   :  { %8099 = vst [vmem:[#allocation203_spill] sm:$0xff] %v5614_v7  ;;  %8100 = vst [vmem:[#allocation204_spill] sm:$0xff] %v5616_v19  ;;  %v1834_v19 = vmul.f32 %v5206_v4, %v1825_v10 }
 0x24d   :  { %1868 = vrot.lane.b32.xlu1 %v1831_v51, %s4376_s15  ;;  %1866 = vrot.lane.b32.xlu0 %v1830_v2, %s4376_s15  ;;  %v1837_v2 = vmul.f32 %v5219_v21, %v1825_v10 }
 0x24f   :  { %v5622_v0 = vpop.permute.xlu1 %1492  ;;  %v5624_v1 = vpop.permute.xlu0 %1490 }
 0x250   :  { %8101 = vst [vmem:[#allocation205_spill] sm:$0xff] %v5622_v0  ;;  %8102 = vst [vmem:[#allocation206_spill] sm:$0xff] %v5624_v1  ;;  %v1836_v1 = vmul.f32 %v5226_v59, %v1825_v10  ;;  %v1923_v0 = vstv %s4155_s17  ;;  %s4395_s17 = smov 48  }
 0x251   :  { %1872 = vrot.lane.b32.xlu1 %v1833_v14, %s4376_s15  ;;  %1870 = vrot.lane.b32.xlu0 %v1832_v24, %s4376_s15 }
 0x253   :  { %v5630_v7 = vpop.permute.xlu1 %1496  ;;  %v5632_v51 = vpop.permute.xlu0 %1494 }
 0x254   :  { %8103 = vst [vmem:[#allocation207_spill] sm:$0xff] %v5630_v7  ;;  %8104 = vst [vmem:[#allocation208_spill] sm:$0xff] %v5632_v51  ;;  %v1839_v7 = vmul.f32 %v5239_v16, %v1825_v10  ;;  %v1838_v51 = vmul.f32 %v5246_v43, %v1825_v10 }
 0x255   :  { %1876 = vrot.lane.b32.xlu1 %v1835_v35, %s4376_s15  ;;  %1874 = vrot.lane.b32.xlu0 %v1834_v19, %s4376_s15 }
 0x257   :  { %v5638_v14 = vpop.permute.xlu1 %1566  ;;  %v5640_v24 = vpop.permute.xlu0 %1564 }
 0x258   :  { %8105 = vst [vmem:[#allocation209_spill] sm:$0xff] %v5638_v14  ;;  %8106 = vst [vmem:[#allocation210_spill] sm:$0xff] %v5640_v24  ;;  %v1841_v14 = vmul.f32 %v5259_v9, %v1825_v10  ;;  %v1840_v24 = vmul.f32 %v5266_v40, %v1825_v10  ;;  %v1927_v10 = vmul.f32 %v5139_v18, %v1923_v0 }
 0x259   :  { %1880 = vrot.lane.b32.xlu1 %v1837_v2, %s4376_s15  ;;  %1878 = vrot.lane.b32.xlu0 %v1836_v1, %s4376_s15 }
 0x25b   :  { %v5646_v35 = vpop.permute.xlu1 %1570  ;;  %v5648_v19 = vpop.permute.xlu0 %1568 }
 0x25c   :  { %8107 = vst [vmem:[#allocation211_spill] sm:$0xff] %v5646_v35  ;;  %8108 = vst [vmem:[#allocation212_spill] sm:$0xff] %v5648_v19  ;;  %v1925_v35 = vmul.f32 %v5119_v25, %v1923_v0  ;;  %v1924_v19 = vmul.f32 %v5126_v29, %v1923_v0 }
 0x25d   :  { %1884 = vrot.lane.b32.xlu1 %v1839_v7, %s4376_s15  ;;  %1882 = vrot.lane.b32.xlu0 %v1838_v51, %s4376_s15 }
 0x25f   :  { %v5654_v2 = vpop.permute.xlu1 %1574  ;;  %v5656_v1 = vpop.permute.xlu0 %1572 }
 0x260   :  { %8109 = vst [vmem:[#allocation213_spill] sm:$0xff] %v5654_v2  ;;  %8110 = vst [vmem:[#allocation214_spill] sm:$0xff] %v5656_v1  ;;  %v1926_v1 = vmul.f32 %v5146_v22, %v1923_v0 }
 0x261   :  { %1888 = vrot.lane.b32.xlu1 %v1841_v14, %s4376_s15  ;;  %1886 = vrot.lane.b32.xlu0 %v1840_v24, %s4376_s15  ;;  %s4394_s15 = smov 60  }
 0x263   :  { %v5662_v7 = vpop.permute.xlu1 %1578  ;;  %v5664_v51 = vpop.permute.xlu0 %1576 }
 0x264   :  { %8111 = vst [vmem:[#allocation215_spill] sm:$0xff] %v5662_v7  ;;  %8112 = vst [vmem:[#allocation216_spill] sm:$0xff] %v5664_v51  ;;  %v1929_v7 = vmul.f32 %v5159_v30, %v1923_v0  ;;  %v1928_v51 = vmul.f32 %v5166_v13, %v1923_v0 }
 0x265   :  { %1958 = vrot.lane.b32.xlu1 %v1925_v35, %s4377_s19  ;;  %1956 = vrot.lane.b32.xlu0 %v1924_v19, %s4377_s19  ;;  %v1931_v19 = vmul.f32 %v5179_v17, %v1923_v0 }
 0x267   :  { %v5670_v14 = vpop.permute.xlu1 %1582  ;;  %v5672_v24 = vpop.permute.xlu0 %1580 }
 0x268   :  { %8113 = vst [vmem:[#allocation217_spill] sm:$0xff] %v5670_v14  ;;  %8114 = vst [vmem:[#allocation218_spill] sm:$0xff] %v5672_v24  ;;  %v1930_v24 = vmul.f32 %v5186_v3, %v1923_v0 }
 0x269   :  { %1962 = vrot.lane.b32.xlu1 %v1927_v10, %s4377_s19  ;;  %1960 = vrot.lane.b32.xlu0 %v1926_v1, %s4377_s19  ;;  %v1933_v1 = vmul.f32 %v5199_v26, %v1923_v0 }
 0x26b   :  { %v5678_v2 = vpop.permute.xlu1 %1586  ;;  %v5680_v35 = vpop.permute.xlu0 %1584 }
 0x26c   :  { %8115 = vst [vmem:[#allocation219_spill] sm:$0xff] %v5678_v2  ;;  %8116 = vst [vmem:[#allocation220_spill] sm:$0xff] %v5680_v35  ;;  %v1932_v35 = vmul.f32 %v5206_v4, %v1923_v0 }
 0x26d   :  { %1966 = vrot.lane.b32.xlu1 %v1929_v7, %s4377_s19  ;;  %1964 = vrot.lane.b32.xlu0 %v1928_v51, %s4377_s19  ;;  %v1935_v51 = vmul.f32 %v5219_v21, %v1923_v0 }
 0x26f   :  { %v5686_v14 = vpop.permute.xlu1 %1590  ;;  %v5688_v10 = vpop.permute.xlu0 %1588 }
 0x270   :  { %8117 = vst [vmem:[#allocation221_spill] sm:$0xff] %v5686_v14  ;;  %8118 = vst [vmem:[#allocation222_spill] sm:$0xff] %v5688_v10  ;;  %v1934_v10 = vmul.f32 %v5226_v59, %v1923_v0 }
 0x271   :  { %1970 = vrot.lane.b32.xlu1 %v1931_v19, %s4377_s19  ;;  %1968 = vrot.lane.b32.xlu0 %v1930_v24, %s4377_s19  ;;  %v1937_v24 = vmul.f32 %v5239_v16, %v1923_v0 }
 0x273   :  { %v5694_v2 = vpop.permute.xlu1 %1594  ;;  %v5696_v7 = vpop.permute.xlu0 %1592 }
 0x274   :  { %8119 = vst [vmem:[#allocation223_spill] sm:$0xff] %v5694_v2  ;;  %8120 = vst [vmem:[#allocation224_spill] sm:$0xff] %v5696_v7  ;;  %v1936_v7 = vmul.f32 %v5246_v43, %v1923_v0 }
 0x275   :  { %1974 = vrot.lane.b32.xlu1 %v1933_v1, %s4377_s19  ;;  %1972 = vrot.lane.b32.xlu0 %v1932_v35, %s4377_s19  ;;  %v1939_v35 = vmul.f32 %v5259_v9, %v1923_v0 }
 0x277   :  { %v5702_v14 = vpop.permute.xlu1 %1664  ;;  %v5704_v19 = vpop.permute.xlu0 %1662 }
 0x278   :  { %8121 = vst [vmem:[#allocation225_spill] sm:$0xff] %v5702_v14  ;;  %8122 = vst [vmem:[#allocation226_spill] sm:$0xff] %v5704_v19  ;;  %v1938_v19 = vmul.f32 %v5266_v40, %v1923_v0  ;;  %v117_v0 = vld [vmem:[%s7856_s3 + $0x10] sm:$0xff] }
 0x279   :  { %1978 = vrot.lane.b32.xlu1 %v1935_v51, %s4377_s19  ;;  %1976 = vrot.lane.b32.xlu0 %v1934_v10, %s4377_s19  ;;  %v116_v10 = vld [vmem:[%s7856_s3 + $0x8] sm:$0xff] }
 0x27b   :  { %v5710_v2 = vpop.permute.xlu1 %1668  ;;  %v5712_v1 = vpop.permute.xlu0 %1666 }
 0x27c   :  { %8123 = vst [vmem:[#allocation227_spill] sm:$0xff] %v5710_v2  ;;  %8124 = vst [vmem:[#allocation228_spill] sm:$0xff] %v5712_v1 }
 0x27d   :  { %1982 = vrot.lane.b32.xlu1 %v1937_v24, %s4377_s19  ;;  %1980 = vrot.lane.b32.xlu0 %v1936_v7, %s4377_s19  ;;  %v115_v7 = vld [vmem:[%s7856_s3] sm:$0xff] }
 0x27f   :  { %v5718_v14 = vpop.permute.xlu1 %1672  ;;  %v5720_v51 = vpop.permute.xlu0 %1670 }
 0x280   :  { %8125 = vst [vmem:[#allocation229_spill] sm:$0xff] %v5718_v14  ;;  %8126 = vst [vmem:[#allocation230_spill] sm:$0xff] %v5720_v51 }
 0x281   :  { %1986 = vrot.lane.b32.xlu1 %v1939_v35, %s4377_s19  ;;  %1984 = vrot.lane.b32.xlu0 %v1938_v19, %s4377_s19  ;;  %v118_v19 = vld [vmem:[%s7856_s3 + $0x18] sm:$0xff]  ;;  %s6216_s19 = sld [smem:[#allocation3 + $0x18]] }
 0x283   :  { %v5730_v24 = vpop.permute.xlu1 %1676  ;;  %v5732_v1 = vpop.permute.xlu0 %1674 }
 0x284   :  { %8127 = vst [vmem:[#allocation231_spill] sm:$0xff] %v5730_v24  ;;  %8128 = vst [vmem:[#allocation232_spill] sm:$0xff] %v5732_v1 }
 0x285   :  { %2060 = vperm.xlu1 %4237, %v116_v10   ;;  %2055 = vperm.xlu0 %4236, %v115_v7   ;;  %v119_v10 = vld [vmem:[%s7856_s3 + $0x20] sm:$0xff]  ;;  %v120_v7 = vld [vmem:[%s7856_s3 + $0x28] sm:$0xff] }
 0x287   :  { %v5740_v35 = vpop.permute.xlu1 %1680  ;;  %v5742_v51 = vpop.permute.xlu0 %1678 }
 0x288   :  { %8129 = vst [vmem:[#allocation233_spill] sm:$0xff] %v5740_v35  ;;  %8130 = vst [vmem:[#allocation234_spill] sm:$0xff] %v5742_v51  ;;  %v121_v51 = vld [vmem:[%s7856_s3 + $0x30] sm:$0xff] }
 0x289   :  { %2065 = vperm.xlu1 %4237, %v117_v0   ;;  %2070 = vperm.xlu0 %4236, %v118_v19   ;;  %v122_v0 = vld [vmem:[%s7856_s3 + $0x38] sm:$0x7f]  ;;  %v5760_v19 = vstv %s4158_s28  ;;  %s5861_s3 = sld [smem:[#allocation3 + $0x16]]  ;;  %s4384_s28 = smov 100  }
 0x28b   :  { %v5750_v1 = vpop.permute.xlu1 %1684  ;;  %v5752_v24 = vpop.permute.xlu0 %1682 }
 0x28c   :  { %8131 = vst [vmem:[#allocation235_spill] sm:$0xff] %v5750_v1  ;;  %8132 = vst [vmem:[#allocation236_spill] sm:$0xff] %v5752_v24 }
 0x28d   :  { %2075 = vperm.xlu1 %4237, %v119_v10   ;;  %2080 = vperm.xlu0 %4236, %v120_v7   ;;  %v2222_v10 = vmul.f32 %v5126_v29, %v5760_v19  ;;  %v2223_v7 = vmul.f32 %v5119_v25, %v5760_v19 }
 0x28f   :  { %v5762_v35 = vpop.permute.xlu1 %1688  ;;  %v5764_v14 = vpop.permute.xlu0 %1686 }
 0x290   :  { %8133 = vst [vmem:[#allocation237_spill] sm:$0xff] %v5762_v35  ;;  %8134 = vst [vmem:[#allocation238_spill] sm:$0xff] %v5764_v14  ;;  %v2224_v35 = vmul.f32 %v5146_v22, %v5760_v19 }
 0x291   :  { %2085 = vperm.xlu1 %4237, %v121_v51   ;;  %2090 = vperm.xlu0 %4236, %v122_v0   ;;  %v2225_v51 = vmul.f32 %v5139_v18, %v5760_v19  ;;  %v125_v0 = vstv %s124_s21  ;;  %s6241_s21 = sld [smem:[#allocation3 + $0x1d]] }
 0x292   :  { %v129_v56 = vmul.f32 %v5139_v18, %v125_v0  ;;  %v133_v34 = vmul.f32 %v5179_v17, %v125_v0  ;;  %v132_v27 = vmul.f32 %v5186_v3, %v125_v0  ;;  %v137_v18 = vmul.f32 %v5219_v21, %v125_v0 }
 0x293   :  { %v5770_v24 = vpop.permute.xlu1 %1692  ;;  %v5772_v1 = vpop.permute.xlu0 %1690  ;;  %v141_v15 = vmul.f32 %v5259_v9, %v125_v0  ;;  %v140_v63 = vmul.f32 %v5266_v40, %v125_v0 }
 0x294   :  { %8135 = vst [vmem:[#allocation239_spill] sm:$0xff] %v5770_v24  ;;  %8136 = vst [vmem:[#allocation240_spill] sm:$0xff] %v5772_v1  ;;  %v128_v1 = vmul.f32 %v5146_v22, %v125_v0  ;;  %v126_v24 = vmul.f32 %v5126_v29, %v125_v0  ;;  %v135_v22 = vmul.f32 %v5199_v26, %v125_v0 }
 0x295   :  { %2254 = vrot.lane.b32.xlu1 %v2222_v10, %s4358_s10  ;;  %2256 = vrot.lane.b32.xlu0 %v2223_v7, %s4358_s10  ;;  %v2226_v10 = vmul.f32 %v5166_v13, %v5760_v19  ;;  %v2227_v7 = vmul.f32 %v5159_v30, %v5760_v19  ;;  %v134_v29 = vmul.f32 %v5206_v4, %v125_v0 }
 0x296   :  { %v242_v8 = vadd.f32 %v4644_v32, %v128_v1  ;;  %v247_v9 = vadd.f32 %v4668_v45, %v133_v34  ;;  %v246_v32 = vadd.f32 %v4670_v46, %v132_v27  ;;  %v255_v34 = vadd.f32 %v4700_v61, %v141_v15 }
 0x297   :  { %v5780_v14 = vpop.permute.xlu1 %1762  ;;  %v5782_v2 = vpop.permute.xlu0 %1760  ;;  %v2233_v61 = vmul.f32 %v5219_v21, %v5760_v19 }
 0x298   :  { %8137 = vst [vmem:[#allocation241_spill] sm:$0xff] %v5780_v14  ;;  %8138 = vst [vmem:[#allocation242_spill] sm:$0xff] %v5782_v2  ;;  %v127_v14 = vmul.f32 %v5119_v25, %v125_v0  ;;  %v131_v2 = vmul.f32 %v5159_v30, %v125_v0  ;;  %v2229_v25 = vmul.f32 %v5179_v17, %v5760_v19 }
 0x299   :  { %2258 = vrot.lane.b32.xlu1 %v2224_v35, %s4358_s10  ;;  %2260 = vrot.lane.b32.xlu0 %v2225_v51, %s4358_s10  ;;  %v130_v35 = vmul.f32 %v5166_v13, %v125_v0  ;;  %v2228_v13 = vmul.f32 %v5186_v3, %v5760_v19  ;;  %v136_v30 = vmul.f32 %v5226_v59, %v125_v0 }
 0x29a   :  { %v241_v17 = vadd.f32 %v4654_v37, %v127_v14  ;;  %v249_v37 = vadd.f32 %v4676_v49, %v135_v22  ;;  %v8148_v14 = vld [vmem:[#allocation17_spill] sm:$0xff]  ;;  %v8151_v22 = vld [vmem:[#allocation20_spill] sm:$0xff] }
 0x29b   :  { %v5796_v48 = vpop.permute.xlu1 %1766  ;;  %v5798_v51 = vpop.permute.xlu0 %1764  ;;  %v250_v45 = vadd.f32 %v4686_v54, %v136_v30  ;;  %v340_v54 = vadd.f32 %v4718_v12, %v242_v8 }
 0x29c   :  { %8139 = vst [vmem:[#allocation243_spill] sm:$0xff] %v5796_v48  ;;  %8140 = vst [vmem:[#allocation244_spill] sm:$0xff] %v5798_v51  ;;  %v139_v51 = vmul.f32 %v5239_v16, %v125_v0  ;;  %v138_v48 = vmul.f32 %v5246_v43, %v125_v0  ;;  %v245_v16 = vadd.f32 %v4660_v41, %v131_v2 }
 0x29d   :  { %2262 = vrot.lane.b32.xlu1 %v2226_v10, %s4358_s10  ;;  %2264 = vrot.lane.b32.xlu0 %v2227_v7, %s4358_s10  ;;  %v240_v10 = vadd.f32 %v4646_v33, %v126_v24  ;;  %v243_v7 = vadd.f32 %v4652_v36, %v129_v56  ;;  %v244_v43 = vadd.f32 %v4662_v42, %v130_v35  ;;  %v8149_v24 = vld [vmem:[#allocation18_spill] sm:$0xff]  ;;  %v8150_v35 = vld [vmem:[#allocation19_spill] sm:$0xff] }
 0x29e   :  { %v2230_v33 = vmul.f32 %v5206_v4, %v5760_v19  ;;  %v2231_v36 = vmul.f32 %v5199_v26, %v5760_v19  ;;  %v248_v41 = vadd.f32 %v4678_v50, %v134_v29  ;;  %v251_v42 = vadd.f32 %v4684_v53, %v137_v18  ;;  %v8144_v26 = vld [vmem:[#allocation15_spill] sm:$0xff]  ;;  %v8152_v18 = vld [vmem:[#allocation21_spill] sm:$0xff] }
 0x29f   :  { %v5819_v3 = vpop.permute.xlu1 %1770  ;;  %v5821_v60 = vpop.permute.xlu0 %1768  ;;  %v253_v46 = vadd.f32 %v4692_v57, %v139_v51  ;;  %v252_v27 = vadd.f32 %v4694_v58, %v138_v48  ;;  %v254_v56 = vadd.f32 %v4702_v62, %v140_v63  ;;  %v339_v49 = vadd.f32 %v4708_v5, %v241_v17 }
 0x2a0   :  { %v338_v50 = vadd.f32 %v4710_v6, %v240_v10  ;;  %v341_v53 = vadd.f32 %v4716_v11, %v243_v7  ;;  %v343_v57 = vadd.f32 %v4724_v20, %v245_v16  ;;  %v2232_v58 = vmul.f32 %v5226_v59, %v5760_v19  ;;  %v8143_v59 = vld [vmem:[#allocation14_spill] sm:$0xff]  ;;  %v8154_v10 = vld [vmem:[#allocation23_spill] sm:$0xff] }
 0x2a1   :  { %2266 = vrot.lane.b32.xlu1 %v2228_v13, %s4358_s10  ;;  %2268 = vrot.lane.b32.xlu0 %v2229_v25, %s4358_s10  ;;  %v342_v62 = vadd.f32 %v4726_v23, %v244_v43  ;;  %v345_v5 = vadd.f32 %v4732_v28, %v247_v9  ;;  %v344_v6 = vadd.f32 %v4734_v31, %v246_v32  ;;  %v8141_v28 = vld [vmem:[#allocation12_spill] sm:$0xff]  ;;  %v8142_v43 = vld [vmem:[#allocation13_spill] sm:$0xff]  ;;  %v8153_v25 = vld [vmem:[#allocation22_spill] sm:$0xff] }
 0x2a2   :  { %v347_v11 = vadd.f32 %v4740_v38, %v249_v37  ;;  %v346_v12 = vadd.f32 %v4742_v39, %v248_v41  ;;  %v349_v20 = vadd.f32 %v4748_v44, %v251_v42  ;;  %v348_v63 = vadd.f32 %v4750_v47, %v250_v45  ;;  %v8145_v44 = vld [vmem:[#allocation113_spill] sm:$0xff]  ;;  %v8147_v9 = vld [vmem:[#allocation16_spill] sm:$0xff]  ;;  %v8157_v42 = vld [vmem:[#allocation26_spill] sm:$0xff] }
 0x2a3   :  { %v5842_v4 = vpop.permute.xlu1 %1774  ;;  %v5844_v2 = vpop.permute.xlu0 %1772  ;;  %v351_v8 = vadd.f32 %v4756_v52, %v253_v46  ;;  %v350_v23 = vadd.f32 %v4758_v55, %v252_v27  ;;  %v353_v31 = vadd.f32 %v8141_v28, %v255_v34  ;;  %v352_v38 = vadd.f32 %v8142_v43, %v254_v56  ;;  %v8146_v52 = vld [vmem:[#allocation112_spill] sm:$0xff]  ;;  %v8156_v37 = vld [vmem:[#allocation25_spill] sm:$0xff]  ;;  %v8158_v46 = vld [vmem:[#allocation27_spill] sm:$0xff] }
 0x2a4   :  { %v437_v16 = vadd.f32 %v8143_v59, %v339_v49  ;;  %v436_v39 = vadd.f32 %v8144_v26, %v338_v50  ;;  %v2234_v47 = vmul.f32 %v8145_v44, %v5760_v19  ;;  %v2235_v21 = vmul.f32 %v8146_v52, %v5760_v19  ;;  %v8159_v34 = vld [vmem:[#allocation28_spill] sm:$0xff]  ;;  %v8167_v28 = vld [vmem:[#allocation35_spill] sm:$0xff]  ;;  %v8170_v59 = vld [vmem:[#allocation37_spill] sm:$0xff] }
 0x2a5   :  { %2270 = vrot.lane.b32.xlu1 %v2230_v33, %s4358_s10  ;;  %2272 = vrot.lane.b32.xlu0 %v2231_v36, %s4358_s10  ;;  %v439_v55 = vadd.f32 %v8147_v9, %v341_v53  ;;  %v438_v1 = vadd.f32 %v8148_v14, %v340_v54  ;;  %v441_v0 = vadd.f32 %v8149_v24, %v343_v57  ;;  %v8155_v33 = vld [vmem:[#allocation24_spill] sm:$0xff]  ;;  %v8161_v54 = vld [vmem:[#allocation29_spill] sm:$0xff]  ;;  %v8171_v26 = vld [vmem:[#allocation38_spill] sm:$0xff] }
 0x2a6   :  { %v440_v51 = vadd.f32 %v8150_v35, %v342_v62  ;;  %v443_v29 = vadd.f32 %v8151_v22, %v345_v5  ;;  %v442_v13 = vadd.f32 %v8152_v18, %v344_v6  ;;  %v445_v30 = vadd.f32 %v8153_v25, %v347_v11  ;;  %v8160_v50 = vld [vmem:[#allocation116_spill] sm:$0xff]  ;;  %v8163_v62 = vld [vmem:[#allocation31_spill] sm:$0xff]  ;;  %v8176_v24 = vld [vmem:[#allocation41_spill] sm:$0xff] }
 0x2a7   :  { %v5867_v15 = vpop.permute.xlu1 %1778  ;;  %v5869_v48 = vpop.permute.xlu0 %1776  ;;  %v444_v7 = vadd.f32 %v8154_v10, %v346_v12  ;;  %v447_v36 = vadd.f32 %v8155_v33, %v349_v20  ;;  %v446_v41 = vadd.f32 %v8156_v37, %v348_v63  ;;  %v449_v45 = vadd.f32 %v8157_v42, %v351_v8  ;;  %v8164_v11 = vld [vmem:[#allocation32_spill] sm:$0xff]  ;;  %v8165_v20 = vld [vmem:[#allocation33_spill] sm:$0xff]  ;;  %v8166_v8 = vld [vmem:[#allocation34_spill] sm:$0xff] }
 0x2a8   :  { %v448_v27 = vadd.f32 %v8158_v46, %v350_v23  ;;  %v451_v56 = vadd.f32 %v8159_v34, %v353_v31  ;;  %v2236_v49 = vmul.f32 %v5266_v40, %v5760_v19  ;;  %v2237_v53 = vmul.f32 %v8160_v50, %v5760_v19  ;;  %v8169_v19 = vld [vmem:[#allocation36_spill] sm:$0xff]  ;;  %v8172_v44 = vld [vmem:[#allocation39_spill] sm:$0xff]  ;;  %v8177_v35 = vld [vmem:[#allocation42_spill] sm:$0xff] }
 0x2a9   :  { %2274 = vrot.lane.b32.xlu1 %v2232_v58, %s4358_s10  ;;  %2276 = vrot.lane.b32.xlu0 %v2233_v61, %s4358_s10  ;;  %v450_v57 = vadd.f32 %v8161_v54, %v352_v38  ;;  %v8162_v58 = vld [vmem:[#allocation30_spill] sm:$0xff]  ;;  %v534_v5 = vadd.f32 %v8163_v62, %v436_v39  ;;  %v5909_v6 = vstv %s5861_s3  ;;  %v537_v12 = vadd.f32 %v8164_v11, %v439_v55  ;;  %v8173_v52 = vld [vmem:[#allocation40_spill] sm:$0xff]  ;;  %v8178_v22 = vld [vmem:[#allocation43_spill] sm:$0xff]  ;;  %s6283_s3 = sld [smem:[#allocation3 + $0x19]] }
 0x2aa   :  { %v535_v61 = vadd.f32 %v8162_v58, %v437_v16  ;;  %v536_v63 = vadd.f32 %v8165_v20, %v438_v1  ;;  %v539_v23 = vadd.f32 %v8166_v8, %v441_v0  ;;  %v538_v31 = vadd.f32 %v8167_v28, %v440_v51  ;;  %v5929_v9 = vld [vmem:[%s7853_s0] sm:$0xff]  ;;  %v5936_v14 = vld [vmem:[%s7853_s0 + $0x8] sm:$0xff]  ;;  %v8181_v10 = vld [vmem:[#allocation46_spill] sm:$0xff] }
 0x2ab   :  { %v5890_v17 = vpop.permute.xlu1 %1782  ;;  %v5892_v32 = vpop.permute.xlu0 %1780  ;;  %v541_v38 = vadd.f32 %v8169_v19, %v443_v29  ;;  %v540_v16 = vadd.f32 %v8170_v59, %v442_v13  ;;  %v543_v39 = vadd.f32 %v8171_v26, %v445_v30  ;;  %8174 = vst [vmem:[#allocation13_spill] sm:$0xff] %v5929_v9  ;;  %v2320_v55 = vmul.f32 %v5929_v9, %v5909_v6  ;;  %v8179_v18 = vld [vmem:[#allocation44_spill] sm:$0xff]  ;;  %v8180_v25 = vld [vmem:[#allocation45_spill] sm:$0xff]  ;;  %v8182_v33 = vld [vmem:[#allocation47_spill] sm:$0xff] }
 0x2ac   :  { %8175 = vst [vmem:[#allocation14_spill] sm:$0xff] %v5936_v14  ;;  %v2321_v1 = vmul.f32 %v5936_v14, %v5909_v6  ;;  %v544_v0 = vadd.f32 %v8176_v24, %v446_v41  ;;  %v547_v51 = vadd.f32 %v8177_v35, %v449_v45  ;;  %v546_v29 = vadd.f32 %v8178_v22, %v448_v27  ;;  %v8183_v37 = vld [vmem:[#allocation48_spill] sm:$0xff]  ;;  %v8187_v50 = vld [vmem:[#allocation50_spill] sm:$0xff]  ;;  %v8190_v58 = vld [vmem:[#allocation53_spill] sm:$0xff] }
 0x2ad   :  { %2278 = vrot.lane.b32.xlu1 %v2234_v47, %s4358_s10  ;;  %2280 = vrot.lane.b32.xlu0 %v2235_v21, %s4358_s10  ;;  %v542_v47 = vadd.f32 %v8172_v44, %v444_v7  ;;  %v545_v21 = vadd.f32 %v8173_v52, %v447_v36  ;;  %v549_v13 = vadd.f32 %v8179_v18, %v451_v56  ;;  %v8189_v54 = vld [vmem:[#allocation52_spill] sm:$0xff]  ;;  %v8200_v22 = vld [vmem:[#allocation62_spill] sm:$0xff]  ;;  %v8201_v18 = vld [vmem:[#allocation63_spill] sm:$0xff] }
 0x2ae   :  { %v548_v30 = vadd.f32 %v8180_v25, %v450_v57  ;;  %v633_v7 = vadd.f32 %v8181_v10, %v535_v61  ;;  %v632_v36 = vadd.f32 %v8182_v33, %v534_v5  ;;  %v635_v42 = vadd.f32 %v8183_v37, %v537_v12  ;;  %v5962_v61 = vld [vmem:[%s7853_s0 + $0x10] sm:$0xff]  ;;  %v5969_v5 = vld [vmem:[%s7853_s0 + $0x18] sm:$0xff]  ;;  %v8198_v44 = vld [vmem:[#allocation60_spill] sm:$0xff] }
 0x2af   :  { %v5915_v40 = vpop.permute.xlu1 %1786  ;;  %v5917_v43 = vpop.permute.xlu0 %1784  ;;  %v637_v45 = vadd.f32 %v8187_v50, %v539_v23  ;;  %v639_v56 = vadd.f32 %v8189_v54, %v541_v38  ;;  %v638_v57 = vadd.f32 %v8190_v58, %v540_v16  ;;  %v2322_v62 = vmul.f32 %v5962_v61, %v5909_v6  ;;  %8191 = vst [vmem:[#allocation112_spill] sm:$0xff] %v5969_v5  ;;  %v8192_v12 = vld [vmem:[#allocation54_spill] sm:$0xff]  ;;  %v8194_v23 = vld [vmem:[#allocation56_spill] sm:$0xff]  ;;  %v8197_v16 = vld [vmem:[#allocation59_spill] sm:$0xff] }
 0x2b0   :  { %8168 = vst [vmem:[#allocation12_spill] sm:$0xff] %v5917_v43  ;;  %v2323_v11 = vmul.f32 %v5969_v5, %v5909_v6  ;;  %v641_v20 = vadd.f32 %v8192_v12, %v543_v39  ;;  %v643_v28 = vadd.f32 %v8194_v23, %v545_v21  ;;  %v8196_v38 = vld [vmem:[#allocation58_spill] sm:$0xff]  ;;  %v644_v26 = vadd.f32 %v8197_v16, %v546_v29  ;;  %v8202_v25 = vld [vmem:[#allocation64_spill] sm:$0xff]  ;;  %v8203_v10 = vld [vmem:[#allocation65_spill] sm:$0xff] }
 0x2b1   :  { %2282 = vrot.lane.b32.xlu1 %v2236_v49, %s4358_s10  ;;  %2284 = vrot.lane.b32.xlu0 %v2237_v53, %s4358_s10  ;;  %v8186_v49 = vld [vmem:[#allocation49_spill] sm:$0xff]  ;;  %v8188_v53 = vld [vmem:[#allocation51_spill] sm:$0xff]  ;;  %v645_v59 = vadd.f32 %v8196_v38, %v547_v51  ;;  %v647_v52 = vadd.f32 %v8198_v44, %v549_v13  ;;  %v731_v39 = vadd.f32 %v8200_v22, %v633_v7  ;;  %v8204_v33 = vld [vmem:[#allocation66_spill] sm:$0xff] }
 0x2b2   :  { %v634_v41 = vadd.f32 %v8186_v49, %v536_v63  ;;  %v636_v27 = vadd.f32 %v8188_v53, %v538_v31  ;;  %v8193_v63 = vld [vmem:[#allocation55_spill] sm:$0xff]  ;;  %v8195_v31 = vld [vmem:[#allocation57_spill] sm:$0xff]  ;;  %v733_v21 = vadd.f32 %v8202_v25, %v635_v42  ;;  %v735_v51 = vadd.f32 %v8204_v33, %v637_v45  ;;  %v8206_v42 = vld [vmem:[#allocation68_spill] sm:$0xff] }
 0x2b3   :  { %v5948_v46 = vpop.permute.xlu1 %1790  ;;  %v5950_v34 = vpop.permute.xlu0 %1788  ;;  %v640_v8 = vadd.f32 %v8193_v63, %v542_v47  ;;  %v642_v19 = vadd.f32 %v8195_v31, %v544_v0  ;;  %v730_v47 = vadd.f32 %v8201_v18, %v632_v36  ;;  %v5995_v29 = vld [vmem:[%s7853_s0 + $0x20] sm:$0xff]  ;;  %v737_v49 = vadd.f32 %v8206_v42, %v639_v56  ;;  %v8208_v45 = vld [vmem:[#allocation70_spill] sm:$0xff]  ;;  %v8211_v12 = vld [vmem:[#allocation73_spill] sm:$0xff] }
 0x2b4   :  { %8184 = vst [vmem:[#allocation15_spill] sm:$0xff] %v5948_v46  ;;  %8185 = vst [vmem:[#allocation113_spill] sm:$0xff] %v5950_v34  ;;  %v732_v0 = vadd.f32 %v8203_v10, %v634_v41  ;;  %v2324_v13 = vmul.f32 %v5995_v29, %v5909_v6  ;;  %v8205_v36 = vld [vmem:[#allocation67_spill] sm:$0xff]  ;;  %v8207_v41 = vld [vmem:[#allocation69_spill] sm:$0xff]  ;;  %v739_v53 = vadd.f32 %v8208_v45, %v641_v20 }
 0x2b5   :  { %2352 = vrot.lane.b32.xlu1 %v2320_v55, %s4359_s9  ;;  %2354 = vrot.lane.b32.xlu0 %v2321_v1, %s4359_s9  ;;  %v8199_v55 = vld [vmem:[#allocation61_spill] sm:$0xff]  ;;  %v734_v37 = vadd.f32 %v8205_v36, %v636_v27  ;;  %v736_v50 = vadd.f32 %v8207_v41, %v638_v57  ;;  %v8209_v54 = vld [vmem:[#allocation71_spill] sm:$0xff]  ;;  %v740_v63 = vadd.f32 %v8211_v12, %v642_v19  ;;  %v8212_v23 = vld [vmem:[#allocation74_spill] sm:$0xff] }
 0x2b6   :  { %v646_v1 = vadd.f32 %v8199_v55, %v548_v30  ;;  %v4261_v30 = vld [vmem:[%s7853_s0 + $0x28] sm:$0xff]  ;;  %v738_v58 = vadd.f32 %v8209_v54, %v640_v8  ;;  %v743_v31 = vadd.f32 %v8212_v23, %v645_v59  ;;  %v8213_v44 = vld [vmem:[#allocation75_spill] sm:$0xff]  ;;  %v8216_v18 = vld [vmem:[#allocation78_spill] sm:$0xff] }
 0x2b7   :  { %v5981_v24 = vpop.permute.xlu1 %1860  ;;  %v5983_v35 = vpop.permute.xlu0 %1858  ;;  %v2325_v7 = vmul.f32 %v4261_v30, %v5909_v6  ;;  %v742_v27 = vadd.f32 %v8213_v44, %v644_v26  ;;  %v8214_v55 = vld [vmem:[#allocation76_spill] sm:$0xff]  ;;  %v8215_v22 = vld [vmem:[#allocation77_spill] sm:$0xff]  ;;  %v829_v20 = vadd.f32 %v8216_v18, %v731_v39  ;;  %v8217_v25 = vld [vmem:[#allocation79_spill] sm:$0xff] }
 0x2b8   :  { %v745_v56 = vadd.f32 %v8214_v55, %v647_v52  ;;  %v744_v57 = vadd.f32 %v8215_v22, %v646_v1  ;;  %v828_v8 = vadd.f32 %v8217_v25, %v730_v47  ;;  %v4263_v59 = vld [vmem:[%s7853_s0 + $0x38] sm:$0x7f]  ;;  %v8218_v52 = vld [vmem:[#allocation80_spill] sm:$0xff]  ;;  %v8219_v39 = vld [vmem:[#allocation81_spill] sm:$0xff] }
 0x2b9   :  { %2356 = vrot.lane.b32.xlu1 %v2322_v62, %s4359_s9  ;;  %2358 = vrot.lane.b32.xlu0 %v2323_v11, %s4359_s9  ;;  %v8210_v62 = vld [vmem:[#allocation72_spill] sm:$0xff]  ;;  %v2327_v26 = vmul.f32 %v4263_v59, %v5909_v6  ;;  %v831_v1 = vadd.f32 %v8218_v52, %v733_v21  ;;  %v830_v47 = vadd.f32 %v8219_v39, %v732_v0  ;;  %v8220_v10 = vld [vmem:[#allocation82_spill] sm:$0xff]  ;;  %v8223_v42 = vld [vmem:[#allocation85_spill] sm:$0xff] }
 0x2ba   :  { %v741_v11 = vadd.f32 %v8210_v62, %v643_v28  ;;  %v4262_v28 = vld [vmem:[%s7853_s0 + $0x30] sm:$0xff]  ;;  %v833_v33 = vadd.f32 %v8220_v10, %v735_v51  ;;  %v834_v41 = vadd.f32 %v8223_v42, %v736_v50  ;;  %v8225_v62 = vld [vmem:[#allocation87_spill] sm:$0xff]  ;;  %v8228_v55 = vld [vmem:[#allocation88_spill] sm:$0xff] }
 0x2bb   :  { %v6011_v38 = vpop.permute.xlu1 %1864  ;;  %v6013_v16 = vpop.permute.xlu0 %1862  ;;  %v2326_v19 = vmul.f32 %v4262_v28, %v5909_v6  ;;  %v8224_v45 = vld [vmem:[#allocation86_spill] sm:$0xff]  ;;  %v836_v12 = vadd.f32 %v8225_v62, %v738_v58  ;;  %v8229_v22 = vld [vmem:[#allocation89_spill] sm:$0xff]  ;;  %v8231_v25 = vld [vmem:[#allocation91_spill] sm:$0xff] }
 0x2bc   :  { %v837_v54 = vadd.f32 %v8224_v45, %v739_v53  ;;  %v839_v21 = vadd.f32 %v8228_v55, %v741_v11  ;;  %v838_v0 = vadd.f32 %v8229_v22, %v740_v63  ;;  %v8230_v18 = vld [vmem:[#allocation90_spill] sm:$0xff]  ;;  %v8232_v28 = vld [vmem:[#allocation92_spill] sm:$0xff]  ;;  %v8233_v63 = vld [vmem:[#allocation93_spill] sm:$0xff] }
 0x2bd   :  { %2360 = vrot.lane.b32.xlu1 %v2324_v13, %s4359_s9  ;;  %2362 = vrot.lane.b32.xlu0 %v2325_v7, %s4359_s9  ;;  %v8221_v13 = vld [vmem:[#allocation83_spill] sm:$0xff]  ;;  %v8222_v7 = vld [vmem:[#allocation84_spill] sm:$0xff]  ;;  %v841_v51 = vadd.f32 %v8230_v18, %v743_v31  ;;  %v842_v31 = vadd.f32 %v8233_v63, %v744_v57  ;;  %v8237_v39 = vld [vmem:[#allocation97_spill] sm:$0xff] }
 0x2be   :  { %v832_v30 = vadd.f32 %v8221_v13, %v734_v37  ;;  %v835_v36 = vadd.f32 %v8222_v7, %v737_v49  ;;  %v840_v37 = vadd.f32 %v8231_v25, %v742_v27  ;;  %v843_v49 = vadd.f32 %v8232_v28, %v745_v56  ;;  %v6052_v50 = vld [vmem:[%s7853_s0 + $0x40] sm:$0xff]  ;;  %v6059_v58 = vld [vmem:[%s7853_s0 + $0x48] sm:$0xff]  ;;  %v8234_v27 = vld [vmem:[#allocation94_spill] sm:$0xff] }
 0x2bf   :  { %v6038_v23 = vpop.permute.xlu1 %1868  ;;  %v6040_v44 = vpop.permute.xlu0 %1866  ;;  %v2328_v53 = vmul.f32 %v6052_v50, %v5909_v6  ;;  %v2329_v11 = vmul.f32 %v6059_v58, %v5909_v6  ;;  %v927_v56 = vadd.f32 %v8234_v27, %v829_v20  ;;  %v928_v10 = vadd.f32 %v8237_v39, %v830_v47  ;;  %v8238_v13 = vld [vmem:[#allocation98_spill] sm:$0xff]  ;;  %v8239_v42 = vld [vmem:[#allocation99_spill] sm:$0xff]  ;;  %v8240_v62 = vld [vmem:[#allocation100_spill] sm:$0xff] }
 0x2c0   :  { %8226 = vst [vmem:[#allocation16_spill] sm:$0xff] %v6038_v23  ;;  %8227 = vst [vmem:[#allocation17_spill] sm:$0xff] %v6040_v44  ;;  %v931_v7 = vadd.f32 %v8238_v13, %v833_v33  ;;  %v930_v45 = vadd.f32 %v8239_v42, %v832_v30  ;;  %v933_v55 = vadd.f32 %v8240_v62, %v835_v36  ;;  %v8243_v25 = vld [vmem:[#allocation101_spill] sm:$0xff]  ;;  %v8244_v28 = vld [vmem:[#allocation102_spill] sm:$0xff] }
 0x2c1   :  { %2364 = vrot.lane.b32.xlu1 %v2326_v19, %s4359_s9  ;;  %2366 = vrot.lane.b32.xlu0 %v2327_v26, %s4359_s9  ;;  %v8235_v19 = vld [vmem:[#allocation95_spill] sm:$0xff]  ;;  %v8236_v26 = vld [vmem:[#allocation96_spill] sm:$0xff]  ;;  %v932_v57 = vadd.f32 %v8243_v25, %v834_v41  ;;  %v935_v20 = vadd.f32 %v8244_v28, %v837_v54  ;;  %v6085_v33 = vld [vmem:[%s7853_s0 + $0x50] sm:$0xff] }
 0x2c2   :  { %v926_v59 = vadd.f32 %v8235_v19, %v828_v8  ;;  %v929_v52 = vadd.f32 %v8236_v26, %v831_v1  ;;  %v8245_v63 = vld [vmem:[#allocation103_spill] sm:$0xff]  ;;  %v8246_v27 = vld [vmem:[#allocation104_spill] sm:$0xff]  ;;  %v8247_v19 = vld [vmem:[#allocation105_spill] sm:$0xff]  ;;  %v2330_v30 = vmul.f32 %v6085_v33, %v5909_v6 }
 0x2c3   :  { %v6071_v22 = vpop.permute.xlu1 %1872  ;;  %v6073_v18 = vpop.permute.xlu0 %1870  ;;  %v934_v8 = vadd.f32 %v8245_v63, %v836_v12  ;;  %v937_v1 = vadd.f32 %v8246_v27, %v839_v21  ;;  %v936_v47 = vadd.f32 %v8247_v19, %v838_v0  ;;  %v6092_v36 = vld [vmem:[%s7853_s0 + $0x58] sm:$0xff]  ;;  %v8251_v26 = vld [vmem:[#allocation109_spill] sm:$0xff] }
 0x2c4   :  { %8241 = vst [vmem:[#allocation18_spill] sm:$0xff] %v6071_v22  ;;  %8242 = vst [vmem:[#allocation19_spill] sm:$0xff] %v6073_v18  ;;  %v2331_v41 = vmul.f32 %v6092_v36, %v5909_v6  ;;  %v8248_v54 = vld [vmem:[#allocation106_spill] sm:$0xff]  ;;  %v8249_v21 = vld [vmem:[#allocation107_spill] sm:$0xff]  ;;  %v940_v39 = vadd.f32 %v8251_v26, %v842_v31 }
 0x2c5   :  { %2368 = vrot.lane.b32.xlu1 %v2328_v53, %s4359_s9  ;;  %2370 = vrot.lane.b32.xlu0 %v2329_v11, %s4359_s9  ;;  %v939_v12 = vadd.f32 %v8248_v54, %v841_v51  ;;  %v938_v0 = vadd.f32 %v8249_v21, %v840_v37  ;;  %v8250_v53 = vld [vmem:[#allocation108_spill] sm:$0xff]  ;;  %v8252_v13 = vld [vmem:[#allocation110_spill] sm:$0xff]  ;;  %v8253_v62 = vld [vmem:[#allocation111_spill] sm:$0xff] }
 0x2c6   :  { %v941_v11 = vadd.f32 %v8250_v53, %v843_v49  ;;  %v1025_v42 = vadd.f32 %v8252_v13, %v927_v56  ;;  %v1024_v25 = vadd.f32 %v8253_v62, %v926_v59  ;;  %v8254_v28 = vld [vmem:[#allocation114_spill] sm:$0xff]  ;;  %v8255_v27 = vld [vmem:[#allocation115_spill] sm:$0xff]  ;;  %v8256_v51 = vld [vmem:[#allocation117_spill] sm:$0xff] }
 0x2c7   :  { %v1027_v63 = vadd.f32 %v8254_v28, %v929_v52  ;;  %v1026_v19 = vadd.f32 %v8255_v27, %v928_v10  ;;  %v6106_v18 = vpop.permute.xlu1 %1876  ;;  %v6108_v22 = vpop.permute.xlu0 %1874  ;;  %v1029_v37 = vadd.f32 %v8256_v51, %v931_v7  ;;  %v8257_v54 = vld [vmem:[#allocation118_spill] sm:$0xff]  ;;  %v8258_v21 = vld [vmem:[#allocation119_spill] sm:$0xff]  ;;  %v8259_v53 = vld [vmem:[#allocation120_spill] sm:$0xff] }
 0x2c8   :  { %v1028_v49 = vadd.f32 %v8257_v54, %v930_v45  ;;  %v1031_v31 = vadd.f32 %v8258_v21, %v933_v55  ;;  %v1030_v26 = vadd.f32 %v8259_v53, %v932_v57  ;;  %v8260_v44 = vld [vmem:[#allocation121_spill] sm:$0xff]  ;;  %v6120_v59 = vld [vmem:[%s7853_s0 + $0x60] sm:$0xff]  ;;  %v8263_v7 = vld [vmem:[#allocation122_spill] sm:$0xff] }
 0x2c9   :  { %v1033_v56 = vadd.f32 %v8260_v44, %v935_v20  ;;  %2372 = vrot.lane.b32.xlu1 %v2330_v30, %s4359_s9  ;;  %2374 = vrot.lane.b32.xlu0 %v2331_v41, %s4359_s9  ;;  %8261 = vst [vmem:[#allocation20_spill] sm:$0xff] %v6120_v59  ;;  %v2332_v52 = vmul.f32 %v6120_v59, %v5909_v6  ;;  %v6127_v10 = vld [vmem:[%s7853_s0 + $0x68] sm:$0xff]  ;;  %v8264_v55 = vld [vmem:[#allocation123_spill] sm:$0xff]  ;;  %v8267_v62 = vld [vmem:[#allocation126_spill] sm:$0xff] }
 0x2ca   :  { %8262 = vst [vmem:[#allocation21_spill] sm:$0xff] %v6127_v10  ;;  %v2333_v44 = vmul.f32 %v6127_v10, %v5909_v6  ;;  %v1032_v45 = vadd.f32 %v8263_v7, %v934_v8  ;;  %v1035_v57 = vadd.f32 %v8264_v55, %v937_v1  ;;  %v8265_v20 = vld [vmem:[#allocation124_spill] sm:$0xff]  ;;  %v8266_v41 = vld [vmem:[#allocation125_spill] sm:$0xff]  ;;  %v1036_v28 = vadd.f32 %v8267_v62, %v938_v0  ;;  %v8268_v27 = vld [vmem:[#allocation127_spill] sm:$0xff] }
 0x2cb   :  { %v1034_v30 = vadd.f32 %v8265_v20, %v936_v47  ;;  %v1037_v13 = vadd.f32 %v8266_v41, %v939_v12  ;;  %v1039_v51 = vadd.f32 %v8268_v27, %v941_v11  ;;  %v8269_v54 = vld [vmem:[#allocation128_spill] sm:$0xff]  ;;  %v8270_v53 = vld [vmem:[#allocation129_spill] sm:$0xff]  ;;  %v6139_v34 = vpop.permute.xlu1 %1880  ;;  %v6141_v10 = vpop.permute.xlu0 %1878  ;;  %v8273_v8 = vld [vmem:[#allocation130_spill] sm:$0xff]  ;;  %v6168_v27 = vstv %s6100_s27  ;;  %s4383_s27 = smov 96  }
 0x2cc   :  { %v1038_v21 = vadd.f32 %v8269_v54, %v940_v39  ;;  %v1123_v23 = vadd.f32 %v8270_v53, %v1025_v42  ;;  %8271 = vst [vmem:[#allocation22_spill] sm:$0xff] %v6139_v34  ;;  %8272 = vst [vmem:[#allocation23_spill] sm:$0xff] %v6141_v10  ;;  %v1122_v7 = vadd.f32 %v8273_v8, %v1024_v25  ;;  %v8274_v1 = vld [vmem:[#allocation131_spill] sm:$0xff]  ;;  %v8275_v47 = vld [vmem:[#allocation132_spill] sm:$0xff] }
 0x2cd   :  { %v1125_v55 = vadd.f32 %v8274_v1, %v1027_v63  ;;  %v1124_v20 = vadd.f32 %v8275_v47, %v1026_v19  ;;  %v8276_v12 = vld [vmem:[#allocation133_spill] sm:$0xff]  ;;  %v8277_v0 = vld [vmem:[#allocation134_spill] sm:$0xff]  ;;  %2376 = vrot.lane.b32.xlu1 %v2332_v52, %s4359_s9  ;;  %2378 = vrot.lane.b32.xlu0 %v2333_v44, %s4359_s9  ;;  %v8280_v63 = vld [vmem:[#allocation135_spill] sm:$0xff]  ;;  %8283 = vst [vmem:[#allocation26_spill] sm:$0xff] %v6168_v27 }
 0x2ce   :  { %v1127_v41 = vadd.f32 %v8276_v12, %v1029_v37  ;;  %v1126_v62 = vadd.f32 %v8277_v0, %v1028_v49  ;;  %v6153_v11 = vld [vmem:[%s7853_s0 + $0x70] sm:$0xff]  ;;  %v6160_v42 = vld [vmem:[%s7853_s0 + $0x78] sm:$0x7f]  ;;  %v1129_v19 = vadd.f32 %v8280_v63, %v1031_v31  ;;  %v8281_v37 = vld [vmem:[#allocation136_spill] sm:$0xff] }
 0x2cf   :  { %8278 = vst [vmem:[#allocation24_spill] sm:$0xff] %v6153_v11  ;;  %v2334_v39 = vmul.f32 %v6153_v11, %v5909_v6  ;;  %8279 = vst [vmem:[#allocation25_spill] sm:$0xff] %v6160_v42  ;;  %v2335_v25 = vmul.f32 %v6160_v42, %v5909_v6  ;;  %v1128_v49 = vadd.f32 %v8281_v37, %v1030_v26  ;;  %v8282_v52 = vld [vmem:[#allocation137_spill] sm:$0xff]  ;;  %v8284_v54 = vld [vmem:[#allocation138_spill] sm:$0xff]  ;;  %v6174_v46 = vpop.permute.xlu1 %1884  ;;  %v6176_v43 = vpop.permute.xlu0 %1882 }
 0x2d0   :  { %v1131_v44 = vadd.f32 %v8282_v52, %v1033_v56  ;;  %v1130_v53 = vadd.f32 %v8284_v54, %v1032_v45  ;;  %v8285_v8 = vld [vmem:[#allocation139_spill] sm:$0xff]  ;;  %v8286_v47 = vld [vmem:[#allocation140_spill] sm:$0xff]  ;;  %v8287_v0 = vld [vmem:[#allocation141_spill] sm:$0xff]  ;;  %8288 = vst [vmem:[#allocation27_spill] sm:$0xff] %v6174_v46 }
 0x2d1   :  { %v1133_v1 = vadd.f32 %v8285_v8, %v1035_v57  ;;  %v1132_v12 = vadd.f32 %v8286_v47, %v1034_v30  ;;  %v1135_v11 = vadd.f32 %v8287_v0, %v1037_v13  ;;  %8289 = vst [vmem:[#allocation28_spill] sm:$0xff] %v6176_v43  ;;  %v8290_v6 = vld [vmem:[#allocation142_spill] sm:$0xff]  ;;  %v8291_v63 = vld [vmem:[#allocation143_spill] sm:$0xff]  ;;  %v8292_v37 = vld [vmem:[#allocation144_spill] sm:$0xff]  ;;  %2380 = vrot.lane.b32.xlu1 %v2334_v39, %s4359_s9 }
 0x2d2   :  { %v1134_v31 = vadd.f32 %v8290_v6, %v1036_v28  ;;  %v1137_v26 = vadd.f32 %v8291_v63, %v1039_v51  ;;  %v1136_v56 = vadd.f32 %v8292_v37, %v1038_v21  ;;  %v8293_v52 = vld [vmem:[#allocation145_spill] sm:$0xff]  ;;  %v8294_v10 = vld [vmem:[#allocation146_spill] sm:$0xff]  ;;  %2382 = vrot.lane.b32.xlu0 %v2335_v25, %s4359_s9  ;;  %v2418_v57 = vmul.f32 %v5929_v9, %v6168_v27  ;;  %v8295_v13 = vld [vmem:[#allocation147_spill] sm:$0xff] }
 0x2d3   :  { %v1221_v42 = vadd.f32 %v8293_v52, %v1123_v23  ;;  %v1220_v45 = vadd.f32 %v8294_v10, %v1122_v7  ;;  %v2419_v30 = vmul.f32 %v5936_v14, %v6168_v27  ;;  %v1223_v28 = vadd.f32 %v8295_v13, %v1125_v55  ;;  %v8296_v54 = vld [vmem:[#allocation148_spill] sm:$0xff]  ;;  %v8297_v8 = vld [vmem:[#allocation149_spill] sm:$0xff]  ;;  %v8298_v47 = vld [vmem:[#allocation150_spill] sm:$0xff]  ;;  %v6197_v52 = vpop.permute.xlu1 %1888  ;;  %v6199_v43 = vpop.permute.xlu0 %1886 }
 0x2d4   :  { %v1222_v51 = vadd.f32 %v8296_v54, %v1124_v20  ;;  %v1225_v21 = vadd.f32 %v8297_v8, %v1127_v41  ;;  %v1224_v23 = vadd.f32 %v8298_v47, %v1126_v62  ;;  %v8299_v0 = vld [vmem:[#allocation151_spill] sm:$0xff]  ;;  %v8300_v7 = vld [vmem:[#allocation152_spill] sm:$0xff]  ;;  %v8301_v6 = vld [vmem:[#allocation153_spill] sm:$0xff]  ;;  %8303 = vst [vmem:[#allocation116_spill] sm:$0xff] %v6197_v52 }
 0x2d5   :  { %v1227_v10 = vadd.f32 %v8299_v0, %v1129_v19  ;;  %v1226_v39 = vadd.f32 %v8300_v7, %v1128_v49  ;;  %v1229_v25 = vadd.f32 %v8301_v6, %v1131_v44  ;;  %v8302_v63 = vld [vmem:[#allocation154_spill] sm:$0xff]  ;;  %8304 = vst [vmem:[#allocation29_spill] sm:$0xff] %v6199_v43  ;;  %v8305_v46 = vld [vmem:[#allocation155_spill] sm:$0xff]  ;;  %v8306_v13 = vld [vmem:[#allocation156_spill] sm:$0xff]  ;;  %2450 = vrot.lane.b32.xlu1 %v2418_v57, %s4360_s12 }
 0x2d6   :  { %v1228_v37 = vadd.f32 %v8302_v63, %v1130_v53  ;;  %v1231_v55 = vadd.f32 %v8305_v46, %v1133_v1  ;;  %v1230_v20 = vadd.f32 %v8306_v13, %v1132_v12  ;;  %v8307_v54 = vld [vmem:[#allocation157_spill] sm:$0xff]  ;;  %v8308_v8 = vld [vmem:[#allocation158_spill] sm:$0xff]  ;;  %v8309_v47 = vld [vmem:[#allocation159_spill] sm:$0xff]  ;;  %2452 = vrot.lane.b32.xlu0 %v2419_v30, %s4360_s12  ;;  %v2420_v49 = vmul.f32 %v5962_v61, %v6168_v27 }
 0x2d7   :  { %v1233_v41 = vadd.f32 %v8307_v54, %v1135_v11  ;;  %v1232_v62 = vadd.f32 %v8308_v8, %v1134_v31  ;;  %v1235_v19 = vadd.f32 %v8309_v47, %v1137_v26  ;;  %v2421_v44 = vmul.f32 %v5969_v5, %v6168_v27  ;;  %v8310_v53 = vld [vmem:[#allocation160_spill] sm:$0xff]  ;;  %v8311_v1 = vld [vmem:[#allocation161_spill] sm:$0xff]  ;;  %v8312_v0 = vld [vmem:[#allocation162_spill] sm:$0xff]  ;;  %v6222_v47 = vpop.permute.xlu1 %1958  ;;  %v6224_v5 = vpop.permute.xlu0 %1956 }
 0x2d8   :  { %v1234_v46 = vadd.f32 %v8310_v53, %v1136_v56  ;;  %v1319_v12 = vadd.f32 %v8311_v1, %v1221_v42  ;;  %v1318_v11 = vadd.f32 %v8312_v0, %v1220_v45  ;;  %v8313_v7 = vld [vmem:[#allocation163_spill] sm:$0xff]  ;;  %v8314_v26 = vld [vmem:[#allocation164_spill] sm:$0xff]  ;;  %v8315_v6 = vld [vmem:[#allocation165_spill] sm:$0xff]  ;;  %8318 = vst [vmem:[#allocation30_spill] sm:$0xff] %v6222_v47 }
 0x2d9   :  { %v1321_v31 = vadd.f32 %v8313_v7, %v1223_v28  ;;  %v1320_v57 = vadd.f32 %v8314_v26, %v1222_v51  ;;  %v1323_v30 = vadd.f32 %v8315_v6, %v1225_v21  ;;  %v8316_v63 = vld [vmem:[#allocation166_spill] sm:$0xff]  ;;  %v8317_v54 = vld [vmem:[#allocation167_spill] sm:$0xff]  ;;  %8319 = vst [vmem:[#allocation31_spill] sm:$0xff] %v6224_v5  ;;  %v8320_v56 = vld [vmem:[#allocation168_spill] sm:$0xff]  ;;  %2454 = vrot.lane.b32.xlu1 %v2420_v49, %s4360_s12 }
 0x2da   :  { %v1322_v13 = vadd.f32 %v8316_v63, %v1224_v23  ;;  %v1325_v8 = vadd.f32 %v8317_v54, %v1227_v10  ;;  %v1324_v42 = vadd.f32 %v8320_v56, %v1226_v39  ;;  %v8321_v53 = vld [vmem:[#allocation169_spill] sm:$0xff]  ;;  %v8322_v1 = vld [vmem:[#allocation170_spill] sm:$0xff]  ;;  %v8323_v0 = vld [vmem:[#allocation171_spill] sm:$0xff]  ;;  %2456 = vrot.lane.b32.xlu0 %v2421_v44, %s4360_s12  ;;  %v2422_v21 = vmul.f32 %v5995_v29, %v6168_v27 }
 0x2db   :  { %v1327_v45 = vadd.f32 %v8321_v53, %v1229_v25  ;;  %v1326_v28 = vadd.f32 %v8322_v1, %v1228_v37  ;;  %v1329_v7 = vadd.f32 %v8323_v0, %v1231_v55  ;;  %v8324_v43 = vld [vmem:[#allocation172_spill] sm:$0xff]  ;;  %v2426_v23 = vmul.f32 %v6052_v50, %v6168_v27  ;;  %v8325_v10 = vld [vmem:[#allocation173_spill] sm:$0xff]  ;;  %v8326_v26 = vld [vmem:[#allocation174_spill] sm:$0xff] }
 0x2dc   :  { %v1328_v51 = vadd.f32 %v8324_v43, %v1230_v20  ;;  %v1331_v39 = vadd.f32 %v8325_v10, %v1233_v41  ;;  %v1330_v25 = vadd.f32 %v8326_v26, %v1232_v62  ;;  %v8327_v6 = vld [vmem:[#allocation175_spill] sm:$0xff]  ;;  %v8328_v63 = vld [vmem:[#allocation176_spill] sm:$0xff]  ;;  %v8329_v43 = vld [vmem:[#allocation177_spill] sm:$0xff] }
 0x2dd   :  { %v1333_v37 = vadd.f32 %v8327_v6, %v1235_v19  ;;  %v1332_v55 = vadd.f32 %v8328_v63, %v1234_v46  ;;  %v1417_v20 = vadd.f32 %v8329_v43, %v1319_v12  ;;  %v8330_v49 = vld [vmem:[#allocation178_spill] sm:$0xff]  ;;  %v8331_v54 = vld [vmem:[#allocation179_spill] sm:$0xff]  ;;  %v8332_v29 = vld [vmem:[#allocation180_spill] sm:$0xff]  ;;  %v6251_v46 = vpop.permute.xlu1 %1962  ;;  %v6253_v63 = vpop.permute.xlu0 %1960  ;;  %2458 = vrot.lane.b32.xlu1 %v2422_v21, %s4360_s12 }
 0x2de   :  { %v1416_v44 = vadd.f32 %v8330_v49, %v1318_v11  ;;  %v1419_v56 = vadd.f32 %v8331_v54, %v1321_v31  ;;  %v1418_v53 = vadd.f32 %v8332_v29, %v1320_v57  ;;  %v8333_v1 = vld [vmem:[#allocation181_spill] sm:$0xff]  ;;  %v8334_v41 = vld [vmem:[#allocation182_spill] sm:$0xff]  ;;  %v8335_v62 = vld [vmem:[#allocation183_spill] sm:$0xff]  ;;  %8337 = vst [vmem:[#allocation32_spill] sm:$0xff] %v6251_v46  ;;  %2466 = vrot.lane.b32.xlu0 %v2426_v23, %s4360_s12  ;;  %v6266_v54 = vstv %s6216_s19  ;;  %s7177_s19 = sld [smem:[#allocation6 + $0x2]] }
 0x2df   :  { %v1421_v0 = vadd.f32 %v8333_v1, %v1323_v30  ;;  %v1420_v10 = vadd.f32 %v8334_v41, %v1322_v13  ;;  %v1423_v26 = vadd.f32 %v8335_v62, %v1325_v8  ;;  %v8336_v19 = vld [vmem:[#allocation184_spill] sm:$0xff]  ;;  %8338 = vst [vmem:[#allocation33_spill] sm:$0xff] %v6253_v63  ;;  %v8339_v12 = vld [vmem:[#allocation185_spill] sm:$0xff]  ;;  %v2427_v11 = vmul.f32 %v6059_v58, %v6168_v27  ;;  %v8340_v57 = vld [vmem:[#allocation186_spill] sm:$0xff] }
 0x2e0   :  { %v1422_v6 = vadd.f32 %v8336_v19, %v1324_v42  ;;  %v1425_v43 = vadd.f32 %v8339_v12, %v1327_v45  ;;  %v2428_v31 = vmul.f32 %v6085_v33, %v6168_v27  ;;  %v1424_v30 = vadd.f32 %v8340_v57, %v1326_v28  ;;  %v8341_v13 = vld [vmem:[#allocation187_spill] sm:$0xff]  ;;  %v8342_v42 = vld [vmem:[#allocation188_spill] sm:$0xff]  ;;  %8343 = vst [vmem:[#allocation34_spill] sm:$0xff] %v6266_v54  ;;  %v8344_v29 = vld [vmem:[#allocation189_spill] sm:$0xff] }
 0x2e1   :  { %v1427_v8 = vadd.f32 %v8341_v13, %v1329_v7  ;;  %v1426_v49 = vadd.f32 %v8342_v42, %v1328_v51  ;;  %v1429_v45 = vadd.f32 %v8344_v29, %v1331_v39  ;;  %v8345_v1 = vld [vmem:[#allocation190_spill] sm:$0xff]  ;;  %v8346_v41 = vld [vmem:[#allocation191_spill] sm:$0xff]  ;;  %v8347_v62 = vld [vmem:[#allocation192_spill] sm:$0xff]  ;;  %2468 = vrot.lane.b32.xlu1 %v2427_v11, %s4360_s12  ;;  %v2524_v39 = vmul.f32 %v6052_v50, %v6266_v54 }
 0x2e2   :  { %v1428_v21 = vadd.f32 %v8345_v1, %v1330_v25  ;;  %v1431_v23 = vadd.f32 %v8346_v41, %v1333_v37  ;;  %v1430_v19 = vadd.f32 %v8347_v62, %v1332_v55  ;;  %v8348_v12 = vld [vmem:[#allocation193_spill] sm:$0xff]  ;;  %v8349_v63 = vld [vmem:[#allocation194_spill] sm:$0xff]  ;;  %v8350_v28 = vld [vmem:[#allocation195_spill] sm:$0xff]  ;;  %2470 = vrot.lane.b32.xlu0 %v2428_v31, %s4360_s12  ;;  %v2525_v25 = vmul.f32 %v6059_v58, %v6266_v54 }
 0x2e3   :  { %v1515_v52 = vadd.f32 %v8348_v12, %v1417_v20  ;;  %v1514_v46 = vadd.f32 %v8349_v63, %v1416_v44  ;;  %v1517_v57 = vadd.f32 %v8350_v28, %v1419_v56  ;;  %v8351_v7 = vld [vmem:[#allocation196_spill] sm:$0xff]  ;;  %v8352_v51 = vld [vmem:[#allocation197_spill] sm:$0xff]  ;;  %v8353_v37 = vld [vmem:[#allocation198_spill] sm:$0xff]  ;;  %v6288_v63 = vpop.permute.xlu1 %1966  ;;  %v6293_v11 = vstv %s6241_s21  ;;  %s7191_s21 = sld [smem:[#allocation6 + $0x1]] }
 0x2e4   :  { %v1516_v13 = vadd.f32 %v8351_v7, %v1418_v53  ;;  %v1519_v42 = vadd.f32 %v8352_v51, %v1421_v0  ;;  %v1518_v55 = vadd.f32 %v8353_v37, %v1420_v10  ;;  %v8354_v20 = vld [vmem:[#allocation199_spill] sm:$0xff]  ;;  %v8355_v56 = vld [vmem:[#allocation200_spill] sm:$0xff]  ;;  %8356 = vst [vmem:[#allocation35_spill] sm:$0xff] %v6288_v63  ;;  %v6290_v0 = vpop.permute.xlu0 %1964  ;;  %v8358_v31 = vld [vmem:[#allocation201_spill] sm:$0xff] }
 0x2e5   :  { %v1521_v44 = vadd.f32 %v8354_v20, %v1423_v26  ;;  %v1520_v53 = vadd.f32 %v8355_v56, %v1422_v6  ;;  %8357 = vst [vmem:[#allocation36_spill] sm:$0xff] %v6290_v0  ;;  %v1523_v29 = vadd.f32 %v8358_v31, %v1425_v43  ;;  %v8359_v1 = vld [vmem:[#allocation202_spill] sm:$0xff]  ;;  %v8360_v62 = vld [vmem:[#allocation203_spill] sm:$0xff]  ;;  %v8361_v28 = vld [vmem:[#allocation204_spill] sm:$0xff]  ;;  %2564 = vrot.lane.b32.xlu1 %v2524_v39, %s4361_s14 }
 0x2e6   :  { %v1522_v41 = vadd.f32 %v8359_v1, %v1424_v30  ;;  %v1525_v12 = vadd.f32 %v8360_v62, %v1427_v8  ;;  %v1524_v7 = vadd.f32 %v8361_v28, %v1426_v49  ;;  %v8362_v51 = vld [vmem:[#allocation205_spill] sm:$0xff]  ;;  %v8363_v37 = vld [vmem:[#allocation206_spill] sm:$0xff]  ;;  %v8364_v20 = vld [vmem:[#allocation207_spill] sm:$0xff]  ;;  %2566 = vrot.lane.b32.xlu0 %v2525_v25, %s4361_s14  ;;  %v3072_v43 = vmul.f32 %v6052_v50, %v6293_v11 }
 0x2e7   :  { %v1527_v10 = vadd.f32 %v8362_v51, %v1429_v45  ;;  %v1526_v26 = vadd.f32 %v8363_v37, %v1428_v21  ;;  %v1529_v6 = vadd.f32 %v8364_v20, %v1431_v23  ;;  %v8365_v56 = vld [vmem:[#allocation208_spill] sm:$0xff]  ;;  %v8366_v0 = vld [vmem:[#allocation209_spill] sm:$0xff]  ;;  %v3073_v30 = vmul.f32 %v6059_v58, %v6293_v11  ;;  %v8367_v8 = vld [vmem:[#allocation210_spill] sm:$0xff] }
 0x2e8   :  { %v1528_v63 = vadd.f32 %v8365_v56, %v1430_v19  ;;  %v1613_v34 = vadd.f32 %v8366_v0, %v1515_v52  ;;  %v1612_v49 = vadd.f32 %v8367_v8, %v1514_v46  ;;  %v8368_v45 = vld [vmem:[#allocation211_spill] sm:$0xff]  ;;  %v8369_v23 = vld [vmem:[#allocation212_spill] sm:$0xff]  ;;  %v8370_v31 = vld [vmem:[#allocation213_spill] sm:$0xff] }
 0x2e9   :  { %v1615_v21 = vadd.f32 %v8368_v45, %v1517_v57  ;;  %v1614_v19 = vadd.f32 %v8369_v23, %v1516_v13  ;;  %v1617_v1 = vadd.f32 %v8370_v31, %v1519_v42  ;;  %v8371_v62 = vld [vmem:[#allocation214_spill] sm:$0xff]  ;;  %v8372_v0 = vld [vmem:[#allocation215_spill] sm:$0xff]  ;;  %v8373_v25 = vld [vmem:[#allocation216_spill] sm:$0xff]  ;;  %v6324_v13 = vpop.permute.xlu1 %1970  ;;  %v6326_v42 = vpop.permute.xlu0 %1968  ;;  %3112 = vrot.lane.b32.xlu1 %v3072_v43, %s4358_s10 }
 0x2ea   :  { %v1616_v52 = vadd.f32 %v8371_v62, %v1518_v55  ;;  %v1619_v39 = vadd.f32 %v8372_v0, %v1521_v44  ;;  %v1618_v28 = vadd.f32 %v8373_v25, %v1520_v53  ;;  %v8374_v51 = vld [vmem:[#allocation217_spill] sm:$0xff]  ;;  %v8375_v20 = vld [vmem:[#allocation218_spill] sm:$0xff]  ;;  %v8376_v5 = vld [vmem:[#allocation219_spill] sm:$0xff]  ;;  %8379 = vst [vmem:[#allocation37_spill] sm:$0xff] %v6326_v42  ;;  %3114 = vrot.lane.b32.xlu0 %v3073_v30, %s4358_s10 }
 0x2eb   :  { %v1621_v37 = vadd.f32 %v8374_v51, %v1523_v29  ;;  %v1620_v56 = vadd.f32 %v8375_v20, %v1522_v41  ;;  %v1623_v47 = vadd.f32 %v8376_v5, %v1525_v12  ;;  %v8377_v46 = vld [vmem:[#allocation220_spill] sm:$0xff]  ;;  %v8378_v57 = vld [vmem:[#allocation221_spill] sm:$0xff]  ;;  %v8380_v55 = vld [vmem:[#allocation222_spill] sm:$0xff]  ;;  %v2429_v5 = vmul.f32 %v6092_v36, %v6168_v27 }
 0x2ec   :  { %v1622_v8 = vadd.f32 %v8377_v46, %v1524_v7  ;;  %v1625_v45 = vadd.f32 %v8378_v57, %v1527_v10  ;;  %v1624_v44 = vadd.f32 %v8380_v55, %v1526_v26  ;;  %v2516_v53 = vmul.f32 %v5929_v9, %v6266_v54  ;;  %v8381_v41 = vld [vmem:[#allocation223_spill] sm:$0xff]  ;;  %v8382_v7 = vld [vmem:[#allocation224_spill] sm:$0xff]  ;;  %v8383_v23 = vld [vmem:[#allocation225_spill] sm:$0xff] }
 0x2ed   :  { %v6338_v29 = vstv %s6283_s3  ;;  %v1627_v12 = vadd.f32 %v8381_v41, %v1529_v6  ;;  %v1626_v10 = vadd.f32 %v8382_v7, %v1528_v63  ;;  %v1711_v31 = vadd.f32 %v8383_v23, %v1613_v34  ;;  %v8384_v26 = vld [vmem:[#allocation226_spill] sm:$0xff]  ;;  %v8385_v43 = vld [vmem:[#allocation227_spill] sm:$0xff]  ;;  %v8386_v25 = vld [vmem:[#allocation228_spill] sm:$0xff]  ;;  %2472 = vrot.lane.b32.xlu1 %v2429_v5, %s4360_s12  ;;  %s4404_s3 = smov 20  }
 0x2ee   :  { %v1710_v62 = vadd.f32 %v8384_v26, %v1612_v49  ;;  %v1713_v0 = vadd.f32 %v8385_v43, %v1615_v21  ;;  %v1712_v30 = vadd.f32 %v8386_v25, %v1614_v19  ;;  %v2517_v51 = vmul.f32 %v5936_v14, %v6266_v54  ;;  %v8387_v46 = vld [vmem:[#allocation229_spill] sm:$0xff]  ;;  %v8389_v49 = vld [vmem:[#allocation230_spill] sm:$0xff]  ;;  %v8390_v55 = vld [vmem:[#allocation231_spill] sm:$0xff]  ;;  %2548 = vrot.lane.b32.xlu0 %v2516_v53, %s4361_s14  ;;  %v6365_v25 = vpop.permute.xlu1 %1974 }
 0x2ef   :  { %v2526_v20 = vmul.f32 %v6085_v33, %v6266_v54  ;;  %v1715_v57 = vadd.f32 %v8387_v46, %v1617_v1  ;;  %v2622_v6 = vmul.f32 %v6052_v50, %v6338_v29  ;;  %v2623_v34 = vmul.f32 %v6059_v58, %v6338_v29  ;;  %v8391_v41 = vld [vmem:[#allocation232_spill] sm:$0xff]  ;;  %v8392_v1 = vld [vmem:[#allocation233_spill] sm:$0xff]  ;;  %v8393_v26 = vld [vmem:[#allocation234_spill] sm:$0xff]  ;;  %v6367_v46 = vpop.permute.xlu0 %1972 }
 0x2f0   :  { %v6356_v63 = vstv %s6303_s23  ;;  %v1714_v21 = vadd.f32 %v8389_v49, %v1616_v52  ;;  %v1717_v19 = vadd.f32 %v8390_v55, %v1619_v39  ;;  %v1716_v7 = vadd.f32 %v8391_v41, %v1618_v28  ;;  %v8394_v28 = vld [vmem:[#allocation235_spill] sm:$0xff]  ;;  %v8395_v55 = vld [vmem:[#allocation236_spill] sm:$0xff]  ;;  %v8404_v42 = vld [vmem:[#allocation242_spill] sm:$0xff]  ;;  %s4405_s23 = smov 8  }
 0x2f1   :  { %8388 = vst [vmem:[#allocation38_spill] sm:$0xff] %v6356_v63  ;;  %v1719_v23 = vadd.f32 %v8392_v1, %v1621_v37  ;;  %v1718_v43 = vadd.f32 %v8393_v26, %v1620_v56  ;;  %v3064_v52 = vmul.f32 %v5929_v9, %v6293_v11  ;;  %v3065_v39 = vmul.f32 %v5936_v14, %v6293_v11  ;;  %v8396_v56 = vld [vmem:[#allocation237_spill] sm:$0xff] }
 0x2f2   :  { %v1721_v49 = vadd.f32 %v8394_v28, %v1623_v47  ;;  %v1720_v5 = vadd.f32 %v8395_v55, %v1622_v8  ;;  %v6377_v53 = vmul.f32 %v6085_v33, %v6293_v11  ;;  %v6381_v37 = vmul.f32 %v6052_v50, %v6356_v63  ;;  %v8397_v8 = vld [vmem:[#allocation238_spill] sm:$0xff]  ;;  %2550 = vrot.lane.b32.xlu1 %v2517_v51, %s4361_s14 }
 0x2f3   :  { %v1723_v41 = vadd.f32 %v8396_v56, %v1625_v45  ;;  %v6386_v1 = vmul.f32 %v6059_v58, %v6356_v63  ;;  %v6390_v26 = vmul.f32 %v6120_v59, %v6168_v27  ;;  %v6393_v47 = vstv %s6328_s24  ;;  %2568 = vrot.lane.b32.xlu0 %v2526_v20, %s4361_s14  ;;  %v8400_v56 = vld [vmem:[#allocation239_spill] sm:$0xff]  ;;  %v8401_v27 = vld [vmem:[#allocation240_spill] sm:$0xff]  ;;  %v8403_v20 = vld [vmem:[#allocation241_spill] sm:$0xff]  ;;  %s4379_s24 = smov 102  }
 0x2f4   :  { %v1722_v28 = vadd.f32 %v8397_v8, %v1624_v44  ;;  %v6402_v45 = vmul.f32 %v5962_v61, %v6266_v54  ;;  %v6406_v55 = vmul.f32 %v6092_v36, %v6266_v54  ;;  %v1725_v59 = vadd.f32 %v8400_v56, %v1627_v12  ;;  %v8406_v56 = vld [vmem:[#allocation244_spill] sm:$0xff] }
 0x2f5   :  { %v1724_v63 = vadd.f32 %v8401_v27, %v1626_v10  ;;  %v6412_v44 = vmul.f32 %v5929_v9, %v6338_v29  ;;  %v6416_v51 = vmul.f32 %v5936_v14, %v6338_v29  ;;  %v1809_v8 = vadd.f32 %v8403_v20, %v1711_v31  ;;  %v8405_v27 = vld [vmem:[#allocation243_spill] sm:$0xff] }
 0x2f6   :  { %8398 = vst [vmem:[#allocation39_spill] sm:$0xff] %v6402_v45  ;;  %8399 = vst [vmem:[#allocation40_spill] sm:$0xff] %v6406_v55  ;;  %v1808_v45 = vadd.f32 %v8404_v42, %v1710_v62  ;;  %v6422_v54 = vmul.f32 %v6085_v33, %v6338_v29  ;;  %v6426_v12 = vmul.f32 %v6052_v50, %v6393_v47  ;;  %v1977_v55 = vpop.permute.xlu0 %1976  ;;  %2662 = vrot.lane.b32.xlu1 %v2622_v6, %s4362_s16 }
 0x2f7   :  { %8402 = vst [vmem:[#allocation41_spill] sm:$0xff] %v6412_v44  ;;  %v1811_v10 = vadd.f32 %v8405_v27, %v1713_v0  ;;  %v1810_v9 = vadd.f32 %v8406_v56, %v1712_v30  ;;  %v1979_v44 = vpop.permute.xlu1 %1978  ;;  %v6432_v14 = vmul.f32 %v6059_v58, %v6393_v47  ;;  %v6436_v42 = vmul.f32 %v5962_v61, %v6293_v11 }
 0x2f8   :  { %v1813_v31 = vadd.f32 %v5819_v3, %v1715_v57  ;;  %v1812_v62 = vadd.f32 %v5821_v60, %v1714_v21  ;;  %2664 = vrot.lane.b32.xlu0 %v2623_v34, %s4362_s16  ;;  %v6444_v0 = vmul.f32 %v6092_v36, %v6293_v11  ;;  %v1815_v30 = vadd.f32 %v5842_v4, %v1717_v19 }
 0x2f9   :  { %v1814_v20 = vadd.f32 %v5844_v2, %v1716_v7  ;;  %v1817_v27 = vadd.f32 %v5867_v15, %v1719_v23  ;;  %v1816_v56 = vadd.f32 %v5869_v48, %v1718_v43  ;;  %v1819_v3 = vadd.f32 %v5890_v17, %v1721_v49  ;;  %v8407_v48 = vld [vmem:[#allocation30_spill] sm:$0xff]  ;;  %v8408_v7 = vld [vmem:[#allocation31_spill] sm:$0xff]  ;;  %v8411_v23 = vld [vmem:[#allocation32_spill] sm:$0xff] }
 0x2fa   :  { %v1818_v60 = vadd.f32 %v5892_v32, %v1720_v5  ;;  %v1907_v57 = vadd.f32 %v5981_v24, %v1809_v8  ;;  %v1906_v6 = vadd.f32 %v5983_v35, %v1808_v45  ;;  %v1821_v34 = vadd.f32 %v5915_v40, %v1723_v41  ;;  %3096 = vrot.lane.b32.xlu1 %v3064_v52, %s4358_s10  ;;  %v8409_v24 = vld [vmem:[#allocation22_spill] sm:$0xff]  ;;  %v8410_v35 = vld [vmem:[#allocation23_spill] sm:$0xff]  ;;  %v8413_v49 = vld [vmem:[#allocation12_spill] sm:$0xff] }
 0x2fb   :  { %v1909_v21 = vadd.f32 %v6011_v38, %v1811_v10  ;;  %v1908_v4 = vadd.f32 %v6013_v16, %v1810_v9  ;;  %v1915_v2 = vadd.f32 %v6106_v18, %v1817_v27  ;;  %v1914_v15 = vadd.f32 %v6108_v22, %v1816_v56  ;;  %v8412_v16 = vld [vmem:[#allocation33_spill] sm:$0xff]  ;;  %v1983_v43 = vpop.permute.xlu1 %1982  ;;  %v1981_v22 = vpop.permute.xlu0 %1980  ;;  %v8414_v41 = vld [vmem:[#allocation15_spill] sm:$0xff]  ;;  %v8416_v27 = vld [vmem:[#allocation16_spill] sm:$0xff] }
 0x2fc   :  { %v6460_v19 = vstv %s6396_s25  ;;  %v2005_v17 = vadd.f32 %v8407_v48, %v1907_v57  ;;  %v2004_v32 = vadd.f32 %v8408_v7, %v1906_v6  ;;  %3098 = vrot.lane.b32.xlu0 %v3065_v39, %s4358_s10  ;;  %v1917_v40 = vadd.f32 %v8409_v24, %v1819_v3  ;;  %v8415_v10 = vld [vmem:[#allocation113_spill] sm:$0xff]  ;;  %v8423_v7 = vld [vmem:[#allocation28_spill] sm:$0xff]  ;;  %s4380_s25 = smov 45  }
 0x2fd   :  { %v1916_v38 = vadd.f32 %v8410_v35, %v1818_v60  ;;  %v2007_v9 = vadd.f32 %v8411_v23, %v1909_v21  ;;  %v2006_v18 = vadd.f32 %v8412_v16, %v1908_v4  ;;  %v1820_v5 = vadd.f32 %v8413_v49, %v1722_v28  ;;  %v8417_v57 = vld [vmem:[#allocation17_spill] sm:$0xff] }
 0x2fe   :  { %v1823_v45 = vadd.f32 %v8414_v41, %v1725_v59  ;;  %v2013_v8 = vadd.f32 %v6365_v25, %v1915_v2  ;;  %v2012_v52 = vadd.f32 %v6367_v46, %v1914_v15  ;;  %v1822_v39 = vadd.f32 %v8415_v10, %v1724_v63  ;;  %3116 = vrot.lane.b32.xlu1 %v6377_v53, %s4358_s10  ;;  %v8418_v59 = vld [vmem:[#allocation18_spill] sm:$0xff]  ;;  %v8419_v63 = vld [vmem:[#allocation19_spill] sm:$0xff] }
 0x2ff   :  { %v1911_v56 = vadd.f32 %v8416_v27, %v1813_v31  ;;  %v2015_v3 = vadd.f32 %v1979_v44, %v1917_v40  ;;  %v2014_v60 = vadd.f32 %v1977_v55, %v1916_v38  ;;  %v1910_v6 = vadd.f32 %v8417_v57, %v1812_v62  ;;  %v8420_v44 = vld [vmem:[#allocation35_spill] sm:$0xff]  ;;  %v8421_v62 = vld [vmem:[#allocation36_spill] sm:$0xff]  ;;  %v1985_v24 = vpop.permute.xlu0 %1984  ;;  %v8425_v38 = vld [vmem:[#allocation29_spill] sm:$0xff] }
 0x300   :  { %v2022_v21 = vadd.f32 %v6460_v19, %v2005_v17  ;;  %v2021_v4 = vadd.f32 %v6460_v19, %v2004_v32  ;;  %3210 = vrot.lane.b32.xlu0 %v6381_v37, %s4359_s9  ;;  %v1913_v25 = vadd.f32 %v8418_v59, %v1815_v30  ;;  %v1912_v46 = vadd.f32 %v8419_v63, %v1814_v20  ;;  %v8422_v53 = vld [vmem:[#allocation27_spill] sm:$0xff]  ;;  %v1987_v32 = vpop.permute.xlu1 %1986  ;;  %v8424_v40 = vld [vmem:[#allocation116_spill] sm:$0xff] }
 0x301   :  { %v2024_v28 = vadd.f32 %v6460_v19, %v2007_v9  ;;  %v2023_v55 = vadd.f32 %v6460_v19, %v2006_v18  ;;  %v2009_v31 = vadd.f32 %v8420_v44, %v1911_v56  ;;  %v2008_v2 = vadd.f32 %v8421_v62, %v1910_v6  ;;  %v8429_v6 = vld [vmem:[#allocation39_spill] sm:$0xff] }
 0x302   :  { %v2030_v15 = vadd.f32 %v6460_v19, %v2013_v8  ;;  %v2029_v48 = vadd.f32 %v6460_v19, %v2012_v52  ;;  %v1919_v17 = vadd.f32 %v8422_v53, %v1821_v34  ;;  %v1918_v37 = vadd.f32 %v8423_v7, %v1820_v5  ;;  %3212 = vrot.lane.b32.xlu1 %v6386_v1, %s4359_s9 }
 0x303   :  { %v2032_v30 = vadd.f32 %v6460_v19, %v2015_v3  ;;  %v2031_v20 = vadd.f32 %v6460_v19, %v2014_v60  ;;  %v1921_v35 = vadd.f32 %v8424_v40, %v1823_v45  ;;  %v1920_v23 = vadd.f32 %v8425_v38, %v1822_v39  ;;  %v8426_v39 = vld [vmem:[#allocation37_spill] sm:$0xff] }
 0x304   :  { %v2038_v9 = vmax.f32 %v2022_v21, 0.0  ;;  %v2037_v16 = vmax.f32 %v2021_v4, 0.0  ;;  %2474 = vrot.lane.b32.xlu0 %v6390_v26, %s4360_s12  ;;  %v2040_v34 = vmax.f32 %v2024_v28, 0.0  ;;  %v2039_v18 = vmax.f32 %v2023_v55, 0.0  ;;  %v6505_v1 = vpop.permute.xlu1 %2060  ;;  %v6507_v60 = vpop.permute.xlu0 %2055 }
 0x305   :  { %v2017_v49 = vadd.f32 %v1983_v43, %v1919_v17  ;;  %v2016_v5 = vadd.f32 %v1981_v22, %v1918_v37  ;;  %v2026_v41 = vadd.f32 %v6460_v19, %v2009_v31  ;;  %v2025_v8 = vadd.f32 %v6460_v19, %v2008_v2  ;;  %8427 = vst [vmem:[#allocation42_spill] sm:$0xff] %v6505_v1 }
 0x306   :  { %v2046_v52 = vmax.f32 %v2030_v15, 0.0  ;;  %v2045_v45 = vmax.f32 %v2029_v48, 0.0  ;;  %v2011_v10 = vadd.f32 %v6324_v13, %v1913_v25  ;;  %v2010_v27 = vadd.f32 %v8426_v39, %v1912_v46  ;;  %8428 = vst [vmem:[#allocation43_spill] sm:$0xff] %v6507_v60  ;;  %2552 = vrot.lane.b32.xlu1 %v8429_v6, %s4361_s14  ;;  %v8430_v25 = vld [vmem:[#allocation40_spill] sm:$0xff] }
 0x307   :  { %v2048_v56 = vmax.f32 %v2032_v30, 0.0  ;;  %v2047_v3 = vmax.f32 %v2031_v20, 0.0  ;;  %v2094_v26 = vmul.f32 %v6505_v1, %v2038_v9  ;;  %v2093_v22 = vmul.f32 %v6507_v60, %v2037_v16  ;;  %v8433_v30 = vld [vmem:[#allocation41_spill] sm:$0xff] }
 0x308   :  { %v2102_v43 = vmul.f32 %v6505_v1, %v2046_v52  ;;  %v2101_v57 = vmul.f32 %v6507_v60, %v2045_v45  ;;  %v2034_v13 = vadd.f32 %v6460_v19, %v2017_v49  ;;  %v2033_v21 = vadd.f32 %v6460_v19, %v2016_v5  ;;  %2570 = vrot.lane.b32.xlu0 %v8430_v25, %s4361_s14  ;;  %v6525_v15 = vpop.permute.xlu1 %2065  ;;  %v6527_v48 = vpop.permute.xlu0 %2070 }
 0x309   :  { %v2019_v4 = vadd.f32 %v1987_v32, %v1921_v35  ;;  %v2018_v59 = vadd.f32 %v1985_v24, %v1920_v23  ;;  %v2111_v63 = vsel %vm2109_vm0, %v2094_v26, 0.0  ;;  %v2110_v28 = vsel %vm2109_vm0, %v2093_v22, 0.0  ;;  %8431 = vst [vmem:[#allocation44_spill] sm:$0xff] %v6525_v15  ;;  %8432 = vst [vmem:[#allocation45_spill] sm:$0xff] %v6527_v48 }
 0x30a   :  { %v2133_v46 = vsel %vm2109_vm0, %v2102_v43, 0.0  ;;  %v2132_v55 = vsel %vm2109_vm0, %v2101_v57, 0.0  ;;  %v2042_v44 = vmax.f32 %v2026_v41, 0.0  ;;  %v2041_v31 = vmax.f32 %v2025_v8, 0.0  ;;  %2646 = vrot.lane.b32.xlu1 %v8433_v30, %s4362_s16 }
 0x30b   :  { %v2028_v62 = vadd.f32 %v6460_v19, %v2011_v10  ;;  %v2027_v2 = vadd.f32 %v6460_v19, %v2010_v27  ;;  %v2095_v53 = vmul.f32 %v6525_v15, %v2039_v18  ;;  %v2103_v17 = vmul.f32 %v6525_v15, %v2047_v3 }
 0x30c   :  { %v2096_v7 = vmul.f32 %v6527_v48, %v2040_v34  ;;  %v2104_v37 = vmul.f32 %v6527_v48, %v2048_v56  ;;  %v2050_v20 = vmax.f32 %v2034_v13, 0.0  ;;  %v2049_v32 = vmax.f32 %v2033_v21, 0.0  ;;  %2648 = vrot.lane.b32.xlu0 %v6416_v51, %s4362_s16  ;;  %v6543_v5 = vpop.permute.xlu1 %2075  ;;  %v6545_v41 = vpop.permute.xlu0 %2080 }
 0x30d   :  { %v2112_v24 = vadd.f32 %v2111_v63, %v2110_v28  ;;  %v2134_v40 = vadd.f32 %v2133_v46, %v2132_v55  ;;  %v2036_v35 = vadd.f32 %v6460_v19, %v2019_v4  ;;  %v2035_v38 = vadd.f32 %v6460_v19, %v2018_v59  ;;  %8434 = vst [vmem:[#allocation46_spill] sm:$0xff] %v6543_v5  ;;  %v8438_v28 = vld [vmem:[#allocation38_spill] sm:$0xff]  ;;  %v8439_v55 = vld [vmem:[#allocation13_spill] sm:$0xff] }
 0x30e   :  { %v2113_v23 = vsel %vm2109_vm0, %v2095_v53, 0.0  ;;  %v2135_v9 = vsel %vm2109_vm0, %v2103_v17, 0.0  ;;  %v2115_v18 = vsel %vm2109_vm0, %v2096_v7, 0.0  ;;  %v2137_v49 = vsel %vm2109_vm0, %v2104_v37, 0.0  ;;  %8435 = vst [vmem:[#allocation47_spill] sm:$0xff] %v6545_v41  ;;  %2666 = vrot.lane.b32.xlu1 %v6422_v54, %s4362_s16 }
 0x30f   :  { %v2114_v16 = vadd.f32 %v2113_v23, %v2112_v24  ;;  %v2136_v34 = vadd.f32 %v2135_v9, %v2134_v40  ;;  %v2097_v51 = vmul.f32 %v6543_v5, %v2041_v31  ;;  %v2105_v8 = vmul.f32 %v6543_v5, %v2049_v32 }
 0x310   :  { %v2098_v19 = vmul.f32 %v6545_v41, %v2042_v44  ;;  %v2106_v52 = vmul.f32 %v6545_v41, %v2050_v20  ;;  %v2044_v45 = vmax.f32 %v2028_v62, 0.0  ;;  %v2043_v10 = vmax.f32 %v2027_v2, 0.0  ;;  %2760 = vrot.lane.b32.xlu0 %v6426_v12, %s4363_s18  ;;  %v6561_v13 = vpop.permute.xlu1 %2085  ;;  %v6563_v21 = vpop.permute.xlu0 %2090 }
 0x311   :  { %v2116_v39 = vadd.f32 %v2115_v18, %v2114_v16  ;;  %v2138_v27 = vadd.f32 %v2137_v49, %v2136_v34  ;;  %v2052_v56 = vmax.f32 %v2036_v35, 0.0  ;;  %v2051_v3 = vmax.f32 %v2035_v38, 0.0  ;;  %8436 = vst [vmem:[#allocation48_spill] sm:$0xff] %v6561_v13  ;;  %8437 = vst [vmem:[#allocation49_spill] sm:$0xff] %v6563_v21 }
 0x312   :  { %v2117_v26 = vsel %vm2109_vm0, %v2097_v51, 0.0  ;;  %v2139_v43 = vsel %vm2109_vm0, %v2105_v8, 0.0  ;;  %v2119_v6 = vsel %vm2109_vm0, %v2098_v19, 0.0  ;;  %v2141_v54 = vsel %vm2109_vm0, %v2106_v52, 0.0  ;;  %2762 = vrot.lane.b32.xlu1 %v6432_v14, %s4363_s18 }
 0x313   :  { %v2118_v22 = vadd.f32 %v2117_v26, %v2116_v39  ;;  %v2140_v57 = vadd.f32 %v2139_v43, %v2138_v27  ;;  %v2099_v12 = vmul.f32 %v6561_v13, %v2043_v10  ;;  %v2107_v4 = vmul.f32 %v6561_v13, %v2051_v3  ;;  %v8444_v3 = vld [vmem:[#allocation21_spill] sm:$0xff]  ;;  %v8445_v43 = vld [vmem:[#allocation34_spill] sm:$0xff] }
 0x314   :  { %v2100_v59 = vmul.f32 %v6563_v21, %v2044_v45  ;;  %v2108_v25 = vmul.f32 %v6563_v21, %v2052_v56  ;;  %3100 = vrot.lane.b32.xlu0 %v6436_v42, %s4358_s10  ;;  %v3162_v44 = vmul.f32 %v8439_v55, %v8438_v28  ;;  %v6577_v17 = vpop.permute.xlu1 %2254  ;;  %v6579_v7 = vpop.permute.xlu0 %2256  ;;  %v8440_v42 = vld [vmem:[#allocation14_spill] sm:$0xff]  ;;  %v3172_v24 = vmul.f32 %v6085_v33, %v8438_v28  ;;  %v8463_v13 = vld [vmem:[#allocation25_spill] sm:$0xff] }
 0x315   :  { %v2120_v63 = vadd.f32 %v2119_v6, %v2118_v22  ;;  %v2142_v46 = vadd.f32 %v2141_v54, %v2140_v57  ;;  %v2121_v31 = vsel %vm2109_vm0, %v2099_v12, 0.0  ;;  %v2143_v62 = vsel %vm2109_vm0, %v2107_v4, 0.0  ;;  %v8443_v56 = vld [vmem:[#allocation26_spill] sm:$0xff]  ;;  %v8446_v22 = vld [vmem:[#allocation112_spill] sm:$0xff] }
 0x316   :  { %v2124_v14 = vsel %vm2123_vm1, %v2100_v59, 0.0  ;;  %v2145_v37 = vsel %vm2123_vm1, %v2108_v25, 0.0  ;;  %3118 = vrot.lane.b32.xlu1 %v6444_v0, %s4358_s10  ;;  %v3163_v30 = vmul.f32 %v8440_v42, %v8438_v28  ;;  %v6589_v40 = vstv %s6555_s26  ;;  %s4170_s26 = sld [smem:[#allocation6 + $0x3]] }
 0x317   :  { %v2122_v2 = vadd.f32 %v2121_v31, %v2120_v63  ;;  %v2144_v53 = vadd.f32 %v2143_v62, %v2142_v46  ;;  %v4378_v16 = vmov 1983009808   ;;  %v7878_v34 = vlaneseq  ;;  %v8449_v46 = vld [vmem:[#allocation20_spill] sm:$0xff] }
 0x318   :  { %3194 = vrot.lane.b32.xlu0 %v3162_v44, %s4359_s9  ;;  %v6591_v23 = vpop.permute.xlu1 %2258  ;;  %v6593_v9 = vpop.permute.xlu0 %2260  ;;  %v2156_v0 = vunpack.c.l.s4 %v4378_v16  ;;  %v3268_v18 = vmul.f32 %v6052_v50, %v6589_v40  ;;  %v3269_v51 = vmul.f32 %v6059_v58, %v6589_v40  ;;  %v2431_v26 = vmul.f32 %v8444_v3, %v8443_v56 }
 0x319   :  { %v2125_v20 = vadd.f32 %v2124_v14, %v2122_v2  ;;  %v2146_v32 = vadd.f32 %v2145_v37, %v2144_v53  ;;  %v6606_v10 = vshrl.u32 %v7878_v34, 7  ;;  %v2519_v57 = vmul.f32 %v8446_v22, %v8445_v43 }
 0x31a   :  { %3196 = vrot.lane.b32.xlu1 %v3163_v30, %s4359_s9  ;;  %v2157_v45 = vunpack.c.0.s8 %v2156_v0  ;;  %v2528_v55 = vmul.f32 %v8449_v46, %v8445_v43  ;;  %v2616_v44 = vmul.f32 %v5962_v61, %v6338_v29  ;;  %v2625_v37 = vmul.f32 %v6092_v36, %v6338_v29  ;;  %v6639_v61 = vld [vmem:[%s7853_s0] sm:$0xff] }
 0x31b   :  { %v2126_v35 = vrot.slane %v2125_v20, 4  ;;  %v2147_v38 = vrot.slane %v2146_v32, 4  ;;  %8442 = vst [vmem:[#allocation51_spill] sm:$0xff] %v6606_v10  ;;  %v2712_v42 = vmul.f32 %v6639_v61, %v6393_v47  ;;  %vm4002_vm1 = vcmask 31744  }
 0x31c   :  { %3214 = vrot.lane.b32.xlu0 %v3172_v24, %s4359_s9  ;;  %v6601_v19 = vpop.permute.xlu1 %2262  ;;  %v6603_v52 = vpop.permute.xlu0 %2264  ;;  %v6619_v59 = vsub.s32 %v2157_v45, %v6606_v10 }
 0x31d   :  { %v2127_v49 = vadd.f32 %v2126_v35, %v2125_v20  ;;  %v2148_v8 = vadd.f32 %v2147_v38, %v2146_v32  ;;  %8441 = vst [vmem:[#allocation50_spill] sm:$0xff] %v6601_v19  ;;  %v6653_v38 = vld [vmem:[%s7853_s0 + $0x8] sm:$0xff] }
 0x31e   :  { %3308 = vrot.lane.b32.xlu1 %v3268_v18, %s4360_s12  ;;  %8448 = vst [vmem:[#allocation53_spill] sm:$0xff] %v6619_v59  ;;  %v2713_v16 = vmul.f32 %v6653_v38, %v6393_v47  ;;  %v2722_v18 = vmul.f32 %v6085_v33, %v6393_v47 }
 0x31f   :  { %v2149_v39 = vrot.slane %v2148_v8, 2  ;;  %v2128_v27 = vrot.slane %v2127_v49, 2 }
 0x320   :  { %3310 = vrot.lane.b32.xlu0 %v3269_v51, %s4360_s12  ;;  %v6614_v12 = vpop.permute.xlu1 %2266  ;;  %v6616_v4 = vpop.permute.xlu0 %2268 }
 0x321   :  { %v2150_v6 = vadd.f32 %v2149_v39, %v2148_v8  ;;  %v2129_v54 = vadd.f32 %v2128_v27, %v2127_v49  ;;  %8447 = vst [vmem:[#allocation52_spill] sm:$0xff] %v6616_v4  ;;  %v6661_v49 = vstv %s4164_s1  ;;  %s4381_s1 = smov 104  }
 0x322   :  { %2476 = vrot.lane.b32.xlu1 %v2431_v26, %s4360_s12  ;;  %v2818_v27 = vmul.f32 %v6052_v50, %v6661_v49  ;;  %v2819_v26 = vmul.f32 %v6059_v58, %v6661_v49  ;;  %v3076_v50 = vmul.f32 %v8449_v46, %v6293_v11  ;;  %v2811_v10 = vmul.f32 %v6653_v38, %v6661_v49 }
 0x323   :  { %v2151_v25 = vrot.slane %v2150_v6, 1  ;;  %v2130_v63 = vrot.slane %v2129_v54, 1 }
 0x324   :  { %2554 = vrot.lane.b32.xlu0 %v2519_v57, %s4361_s14  ;;  %v6627_v2 = vpop.permute.xlu1 %2270  ;;  %v6629_v53 = vpop.permute.xlu0 %2272 }
 0x325   :  { %v2152_v31 = vadd.f32 %v2151_v25, %v2150_v6  ;;  %v2131_v62 = vadd.f32 %v2130_v63, %v2129_v54  ;;  %v6683_v6 = vld [vmem:[%s7853_s0 + $0x18] sm:$0xff]  ;;  %v6698_v63 = vld [vmem:[%s7853_s0 + $0x10] sm:$0xff] }
 0x326   :  { %2572 = vrot.lane.b32.xlu1 %v2528_v55, %s4361_s14  ;;  %v3067_v54 = vmul.f32 %v6683_v6, %v6293_v11  ;;  %v3164_v55 = vmul.f32 %v6698_v63, %v8438_v28  ;;  %v3165_v4 = vmul.f32 %v6683_v6, %v8438_v28 }
 0x327   :  { %v2168_v14 = vrot.slane %v2152_v31, %v6619_v59  ;;  %v2161_v20 = vrot.slane %v2131_v62, %v6619_v59 }
 0x328   :  { %2650 = vrot.lane.b32.xlu0 %v2616_v44, %s4362_s16  ;;  %v6644_v32 = vpop.permute.xlu1 %2274  ;;  %v6646_v24 = vpop.permute.xlu0 %2276  ;;  %v3173_v44 = vmul.f32 %v6092_v36, %v8438_v28 }
 0x329   :  { %v2173_v30 = vrot.slane %v2168_v14, 7  ;;  %v3260_v14 = vmul.f32 %v6639_v61, %v6589_v40 }
 0x32a   :  { %2668 = vrot.lane.b32.xlu1 %v2625_v37, %s4362_s16  ;;  %v3261_v37 = vmul.f32 %v6653_v38, %v6589_v40 }
 0x32b   :  { %v2175_v35 = vsel %vm2174_vm2, %v2173_v30, %v2161_v20  ;;  %v3270_v20 = vmul.f32 %v6085_v33, %v6589_v40  ;;  %v6741_v33 = vld [vmem:[%s7853_s0 + $0x20] sm:$0xff] }
 0x32c   :  { %v2177_v0 = vsel %vm2176_vm3, %v2173_v30, %v2175_v35  ;;  %2744 = vrot.lane.b32.xlu0 %v2712_v42, %s4363_s18  ;;  %v6665_v45 = vpop.permute.xlu1 %2278  ;;  %v6667_v39 = vpop.permute.xlu0 %2280  ;;  %v6726_v35 = vld [vmem:[%s7853_s0 + $0x28] sm:$0xff] }
 0x32d   :  { %v2179_v51 = vsel %vm2178_vm4, %v2173_v30, %v2177_v0  ;;  %8450 = vst [vmem:[#allocation54_spill] sm:$0xff] %v6667_v39  ;;  %v3069_v1 = vmul.f32 %v6726_v35, %v6293_v11 }
 0x32e   :  { %v2181_v8 = vsel %vm2180_vm5, %v2173_v30, %v2179_v51  ;;  %2746 = vrot.lane.b32.xlu1 %v2713_v16, %s4363_s18  ;;  %v2423_v16 = vmul.f32 %v6726_v35, %v8443_v56  ;;  %v8455_v51 = vld [vmem:[#allocation24_spill] sm:$0xff] }
 0x32f   :  { %2184 = vst.msk [vmem:[#allocation2] sm:$0x3] %vm2183_vm6, %v2181_v8  ;;  %v2432_v8 = vmul.f32 %v8455_v51, %v8443_v56  ;;  %vm4071_vm6 = vcmask 195712  }
 0x330   :  { %2764 = vrot.lane.b32.xlu0 %v2722_v18, %s4363_s18  ;;  %v6675_v22 = vpop.permute.xlu1 %2282  ;;  %v6677_v57 = vpop.permute.xlu0 %2284 }
 0x331   :  { %8451 = vst [vmem:[#allocation55_spill] sm:$0xff] %v6675_v22  ;;  %8452 = vst [vmem:[#allocation56_spill] sm:$0xff] %v6677_v57 }
 0x332   :  { %2858 = vrot.lane.b32.xlu1 %v2818_v27, %s4364_s20  ;;  %v2520_v27 = vmul.f32 %v6741_v33, %v8445_v43 }
 0x334   :  { %2860 = vrot.lane.b32.xlu0 %v2819_v26, %s4364_s20  ;;  %v6690_v58 = vpop.permute.xlu1 %2352  ;;  %v6692_v25 = vpop.permute.xlu0 %2354 }
 0x336   :  { %3102 = vrot.lane.b32.xlu1 %v3067_v54, %s4358_s10 }
 0x338   :  { %3120 = vrot.lane.b32.xlu0 %v3076_v50, %s4358_s10  ;;  %v6705_v31 = vpop.permute.xlu1 %2356  ;;  %v6707_v62 = vpop.permute.xlu0 %2358  ;;  %v2529_v50 = vmul.f32 %v8444_v3, %v8445_v43 }
 0x33a   :  { %3198 = vrot.lane.b32.xlu1 %v3164_v55, %s4359_s9  ;;  %v2617_v55 = vmul.f32 %v6683_v6, %v6338_v29 }
 0x33c   :  { %3216 = vrot.lane.b32.xlu0 %v3173_v44, %s4359_s9  ;;  %v6715_v42 = vpop.permute.xlu1 %2360  ;;  %v6717_v30 = vpop.permute.xlu0 %2362 }
 0x33d   :  { %8453 = vst [vmem:[#allocation57_spill] sm:$0xff] %v6715_v42 }
 0x33e   :  { %3292 = vrot.lane.b32.xlu1 %v3260_v14, %s4360_s12 }
 0x340   :  { %3294 = vrot.lane.b32.xlu0 %v3261_v37, %s4360_s12  ;;  %v6730_v0 = vpop.permute.xlu1 %2364  ;;  %v6732_v18 = vpop.permute.xlu0 %2366  ;;  %v2626_v37 = vmul.f32 %v8449_v46, %v6338_v29 }
 0x341   :  { %8454 = vst [vmem:[#allocation58_spill] sm:$0xff] %v6732_v18 }
 0x342   :  { %3312 = vrot.lane.b32.xlu1 %v3270_v20, %s4360_s12  ;;  %v2714_v20 = vmul.f32 %v6698_v63, %v6393_v47 }
 0x344   :  { %2460 = vrot.lane.b32.xlu0 %v2423_v16, %s4360_s12  ;;  %v6745_v26 = vpop.permute.xlu1 %2368  ;;  %v6747_v54 = vpop.permute.xlu0 %2370 }
 0x346   :  { %2478 = vrot.lane.b32.xlu1 %v2432_v8, %s4360_s12 }
 0x348   :  { %2556 = vrot.lane.b32.xlu0 %v2520_v27, %s4361_s14  ;;  %v6755_v44 = vpop.permute.xlu1 %2372  ;;  %v6757_v14 = vpop.permute.xlu0 %2374  ;;  %v2723_v27 = vmul.f32 %v6092_v36, %v6393_v47  ;;  %v6786_v36 = vld [vmem:[%s7853_s0 + $0x50] sm:$0xff] }
 0x34a   :  { %2574 = vrot.lane.b32.xlu1 %v2529_v50, %s4361_s14  ;;  %v2810_v50 = vmul.f32 %v6639_v61, %v6661_v49 }
 0x34c   :  { %2652 = vrot.lane.b32.xlu0 %v2617_v55, %s4362_s16  ;;  %v6765_v16 = vpop.permute.xlu1 %2376  ;;  %v6767_v8 = vpop.permute.xlu0 %2378 }
 0x34d   :  { %8456 = vst [vmem:[#allocation59_spill] sm:$0xff] %v6767_v8 }
 0x34e   :  { %2670 = vrot.lane.b32.xlu1 %v2626_v37, %s4362_s16  ;;  %v2820_v37 = vmul.f32 %v6786_v36, %v6661_v49 }
 0x350   :  { %2748 = vrot.lane.b32.xlu0 %v2714_v20, %s4363_s18  ;;  %v6775_v34 = vpop.permute.xlu1 %2380  ;;  %v6777_v55 = vpop.permute.xlu0 %2382 }
 0x351   :  { %8457 = vst [vmem:[#allocation60_spill] sm:$0xff] %v6775_v34  ;;  %8458 = vst [vmem:[#allocation61_spill] sm:$0xff] %v6777_v55  ;;  %v2433_v34 = vmul.f32 %v8463_v13, %v8443_v56  ;;  %v2618_v13 = vmul.f32 %v6741_v33, %v6338_v29 }
 0x352   :  { %2766 = vrot.lane.b32.xlu1 %v2723_v27, %s4363_s18  ;;  %v3068_v27 = vmul.f32 %v6741_v33, %v6293_v11 }
 0x354   :  { %2842 = vrot.lane.b32.xlu0 %v2810_v50, %s4364_s20  ;;  %v6790_v20 = vpop.permute.xlu1 %2450  ;;  %v6792_v59 = vpop.permute.xlu0 %2452  ;;  %v3077_v50 = vmul.f32 %v8444_v3, %v6293_v11  ;;  %v3262_v3 = vmul.f32 %v6698_v63, %v6589_v40 }
 0x356   :  { %2844 = vrot.lane.b32.xlu1 %v2811_v10, %s4364_s20  ;;  %v3174_v10 = vmul.f32 %v8449_v46, %v8438_v28 }
 0x358   :  { %2862 = vrot.lane.b32.xlu0 %v2820_v37, %s4364_s20  ;;  %v6800_v21 = vpop.permute.xlu1 %2454  ;;  %v6802_v18 = vpop.permute.xlu0 %2456 }
 0x359   :  { %8459 = vst [vmem:[#allocation62_spill] sm:$0xff] %v6802_v18 }
 0x35a   :  { %3104 = vrot.lane.b32.xlu1 %v3068_v27, %s4358_s10  ;;  %v6821_v27 = vld [vmem:[%s7853_s0 + $0x58] sm:$0xff] }
 0x35c   :  { %3122 = vrot.lane.b32.xlu0 %v3077_v50, %s4358_s10  ;;  %v6810_v55 = vpop.permute.xlu1 %2458  ;;  %v6812_v37 = vpop.permute.xlu0 %2466  ;;  %v3271_v50 = vmul.f32 %v6821_v27, %v6589_v40 }
 0x35d   :  { %8460 = vst [vmem:[#allocation63_spill] sm:$0xff] %v6810_v55  ;;  %v2530_v55 = vmul.f32 %v8455_v51, %v8445_v43 }
 0x35e   :  { %3200 = vrot.lane.b32.xlu1 %v3165_v4, %s4359_s9  ;;  %v6833_v4 = vld [vmem:[%s7853_s0 + $0x30] sm:$0xff] }
 0x35f   :  { %8462 = vst [vmem:[#allocation65_spill] sm:$0xff] %v6833_v4 }
 0x360   :  { %3218 = vrot.lane.b32.xlu0 %v3174_v10, %s4359_s9  ;;  %v6825_v46 = vpop.permute.xlu1 %2468  ;;  %v6827_v57 = vpop.permute.xlu0 %2470  ;;  %v2424_v10 = vmul.f32 %v6833_v4, %v8443_v56 }
 0x361   :  { %8461 = vst [vmem:[#allocation64_spill] sm:$0xff] %v6827_v57 }
 0x362   :  { %3296 = vrot.lane.b32.xlu1 %v3262_v3, %s4360_s12  ;;  %v2521_v3 = vmul.f32 %v6726_v35, %v8445_v43 }
 0x364   :  { %3314 = vrot.lane.b32.xlu0 %v3271_v50, %s4360_s12  ;;  %v6840_v22 = vpop.permute.xlu1 %2564  ;;  %v6842_v41 = vpop.permute.xlu0 %2566 }
 0x366   :  { %2462 = vrot.lane.b32.xlu1 %v2424_v10, %s4360_s12  ;;  %v6861_v10 = vld [vmem:[%s7853_s0 + $0x68] sm:$0xff] }
 0x368   :  { %2480 = vrot.lane.b32.xlu0 %v2433_v34, %s4360_s12  ;;  %v6850_v8 = vpop.permute.xlu1 %3112  ;;  %v6852_v50 = vpop.permute.xlu0 %3114  ;;  %v2627_v34 = vmul.f32 %v6861_v10, %v6338_v29 }
 0x369   :  { %8464 = vst [vmem:[#allocation66_spill] sm:$0xff] %v6850_v8  ;;  %8465 = vst [vmem:[#allocation67_spill] sm:$0xff] %v6852_v50 }
 0x36a   :  { %2558 = vrot.lane.b32.xlu1 %v2521_v3, %s4361_s14  ;;  %v2715_v3 = vmul.f32 %v6683_v6, %v6393_v47 }
 0x36c   :  { %2576 = vrot.lane.b32.xlu0 %v2530_v55, %s4361_s14  ;;  %v6865_v51 = vpop.permute.xlu1 %2472  ;;  %v6867_v42 = vpop.permute.xlu0 %2548  ;;  %v6876_v55 = vld [vmem:[%s7853_s0 + $0x60] sm:$0xff] }
 0x36d   :  { %8466 = vst [vmem:[#allocation68_spill] sm:$0xff] %v6865_v51  ;;  %8467 = vst [vmem:[#allocation69_spill] sm:$0xff] %v6867_v42  ;;  %v2724_v39 = vmul.f32 %v6876_v55, %v6393_v47 }
 0x36e   :  { %2654 = vrot.lane.b32.xlu1 %v2618_v13, %s4362_s16  ;;  %v2812_v13 = vmul.f32 %v6698_v63, %v6661_v49 }
 0x370   :  { %2672 = vrot.lane.b32.xlu0 %v2627_v34, %s4362_s16  ;;  %v6880_v19 = vpop.permute.xlu1 %2550  ;;  %v6882_v5 = vpop.permute.xlu0 %2568  ;;  %v2821_v34 = vmul.f32 %v6821_v27, %v6661_v49 }
 0x371   :  { %8468 = vst [vmem:[#allocation70_spill] sm:$0xff] %v6880_v19  ;;  %8469 = vst [vmem:[#allocation71_spill] sm:$0xff] %v6882_v5 }
 0x372   :  { %2750 = vrot.lane.b32.xlu1 %v2715_v3, %s4363_s18  ;;  %v6901_v3 = vld [vmem:[%s7853_s0 + $0x70] sm:$0xff] }
 0x373   :  { %8470 = vst [vmem:[#allocation72_spill] sm:$0xff] %v6901_v3 }
 0x374   :  { %2768 = vrot.lane.b32.xlu0 %v2724_v39, %s4363_s18  ;;  %v6890_v48 = vpop.permute.xlu1 %2662  ;;  %v6892_v15 = vpop.permute.xlu0 %2664  ;;  %v3078_v39 = vmul.f32 %v6901_v3, %v6293_v11 }
 0x376   :  { %2846 = vrot.lane.b32.xlu1 %v2812_v13, %s4364_s20  ;;  %v3166_v13 = vmul.f32 %v6741_v33, %v8438_v28 }
 0x378   :  { %2864 = vrot.lane.b32.xlu0 %v2821_v34, %s4364_s20  ;;  %v6905_v60 = vpop.permute.xlu1 %3096  ;;  %v6907_v5 = vpop.permute.xlu0 %3098  ;;  %v3175_v34 = vmul.f32 %v6861_v10, %v8438_v28 }
 0x379   :  { %8471 = vst [vmem:[#allocation73_spill] sm:$0xff] %v6905_v60  ;;  %8472 = vst [vmem:[#allocation74_spill] sm:$0xff] %v6907_v5  ;;  %v3263_v60 = vmul.f32 %v6683_v6, %v6589_v40 }
 0x37a   :  { %3106 = vrot.lane.b32.xlu1 %v3069_v1, %s4358_s10  ;;  %v3272_v1 = vmul.f32 %v6876_v55, %v6589_v40 }
 0x37c   :  { %3124 = vrot.lane.b32.xlu0 %v3078_v39, %s4358_s10  ;;  %v6915_v42 = vpop.permute.xlu1 %3116  ;;  %v6917_v51 = vpop.permute.xlu0 %3210 }
 0x37d   :  { %8473 = vst [vmem:[#allocation75_spill] sm:$0xff] %v6915_v42  ;;  %8474 = vst [vmem:[#allocation76_spill] sm:$0xff] %v6917_v51  ;;  %v6933_v42 = vld [vmem:[%s7853_s0 + $0x38] sm:$0x7f] }
 0x37e   :  { %3202 = vrot.lane.b32.xlu1 %v3166_v13, %s4359_s9  ;;  %8477 = vst [vmem:[#allocation79_spill] sm:$0xff] %v6933_v42  ;;  %v2425_v13 = vmul.f32 %v6933_v42, %v8443_v56  ;;  %v2619_v56 = vmul.f32 %v6726_v35, %v6338_v29 }
 0x380   :  { %3220 = vrot.lane.b32.xlu0 %v3175_v34, %s4359_s9  ;;  %v6925_v5 = vpop.permute.xlu1 %3212  ;;  %v6927_v39 = vpop.permute.xlu0 %2474  ;;  %v2522_v34 = vmul.f32 %v6833_v4, %v8445_v43 }
 0x381   :  { %8475 = vst [vmem:[#allocation77_spill] sm:$0xff] %v6925_v5  ;;  %8476 = vst [vmem:[#allocation78_spill] sm:$0xff] %v6927_v39 }
 0x382   :  { %3298 = vrot.lane.b32.xlu1 %v3263_v60, %s4360_s12  ;;  %v6948_v60 = vld [vmem:[%s7853_s0 + $0x78] sm:$0x7f] }
 0x383   :  { %8480 = vst [vmem:[#allocation82_spill] sm:$0xff] %v6948_v60  ;;  %v2531_v39 = vmul.f32 %v6948_v60, %v8445_v43  ;;  %v3079_v8 = vmul.f32 %v6948_v60, %v6293_v11 }
 0x384   :  { %3316 = vrot.lane.b32.xlu0 %v3272_v1, %s4360_s12  ;;  %v6940_v51 = vpop.permute.xlu1 %2552  ;;  %v6942_v5 = vpop.permute.xlu0 %2570 }
 0x385   :  { %8478 = vst [vmem:[#allocation80_spill] sm:$0xff] %v6940_v51  ;;  %8479 = vst [vmem:[#allocation81_spill] sm:$0xff] %v6942_v5  ;;  %v2716_v5 = vmul.f32 %v6741_v33, %v6393_v47 }
 0x386   :  { %2464 = vrot.lane.b32.xlu1 %v2425_v13, %s4360_s12  ;;  %v2628_v13 = vmul.f32 %v6901_v3, %v6338_v29 }
 0x388   :  { %2560 = vrot.lane.b32.xlu0 %v2522_v34, %s4361_s14  ;;  %v6955_v1 = vpop.permute.xlu1 %2646  ;;  %v6957_v51 = vpop.permute.xlu0 %2648 }
 0x389   :  { %8481 = vst [vmem:[#allocation83_spill] sm:$0xff] %v6955_v1  ;;  %8482 = vst [vmem:[#allocation84_spill] sm:$0xff] %v6957_v51  ;;  %v2725_v1 = vmul.f32 %v6861_v10, %v6393_v47 }
 0x38a   :  { %2578 = vrot.lane.b32.xlu1 %v2531_v39, %s4361_s14  ;;  %v2813_v39 = vmul.f32 %v6683_v6, %v6661_v49 }
 0x38c   :  { %2656 = vrot.lane.b32.xlu0 %v2619_v56, %s4362_s16  ;;  %v6965_v19 = vpop.permute.xlu1 %2666  ;;  %v6967_v34 = vpop.permute.xlu0 %2760 }
 0x38d   :  { %8483 = vst [vmem:[#allocation85_spill] sm:$0xff] %v6965_v19  ;;  %v2822_v19 = vmul.f32 %v6876_v55, %v6661_v49 }
 0x38e   :  { %2674 = vrot.lane.b32.xlu1 %v2628_v13, %s4362_s16  ;;  %v3070_v13 = vmul.f32 %v6833_v4, %v6293_v11 }
 0x390   :  { %2752 = vrot.lane.b32.xlu0 %v2716_v5, %s4363_s18  ;;  %v6975_v51 = vpop.permute.xlu1 %2762  ;;  %v6977_v56 = vpop.permute.xlu0 %3100 }
 0x391   :  { %8484 = vst [vmem:[#allocation86_spill] sm:$0xff] %v6977_v56 }
 0x392   :  { %2770 = vrot.lane.b32.xlu1 %v2725_v1, %s4363_s18  ;;  %v3167_v1 = vmul.f32 %v6726_v35, %v8438_v28 }
 0x394   :  { %2848 = vrot.lane.b32.xlu0 %v2813_v39, %s4364_s20  ;;  %v6985_v50 = vpop.permute.xlu1 %3118  ;;  %v6987_v5 = vpop.permute.xlu0 %3194 }
 0x395   :  { %8485 = vst [vmem:[#allocation87_spill] sm:$0xff] %v6985_v50  ;;  %8486 = vst [vmem:[#allocation88_spill] sm:$0xff] %v6987_v5  ;;  %v3176_v50 = vmul.f32 %v6901_v3, %v8438_v28 }
 0x396   :  { %2866 = vrot.lane.b32.xlu1 %v2822_v19, %s4364_s20  ;;  %v3264_v19 = vmul.f32 %v6741_v33, %v6589_v40 }
 0x398   :  { %3108 = vrot.lane.b32.xlu0 %v3070_v13, %s4358_s10  ;;  %v6995_v56 = vpop.permute.xlu1 %3196  ;;  %v6997_v39 = vpop.permute.xlu0 %3214 }
 0x399   :  { %8487 = vst [vmem:[#allocation89_spill] sm:$0xff] %v6995_v56  ;;  %8488 = vst [vmem:[#allocation90_spill] sm:$0xff] %v6997_v39  ;;  %v3273_v56 = vmul.f32 %v6861_v10, %v6589_v40 }
 0x39a   :  { %3126 = vrot.lane.b32.xlu1 %v3079_v8, %s4358_s10  ;;  %v2523_v8 = vmul.f32 %v6933_v42, %v8445_v43  ;;  %v2717_v43 = vmul.f32 %v6726_v35, %v6393_v47 }
 0x39c   :  { %3204 = vrot.lane.b32.xlu0 %v3167_v1, %s4359_s9  ;;  %v7005_v5 = vpop.permute.xlu1 %3308  ;;  %v7007_v13 = vpop.permute.xlu0 %3310 }
 0x39d   :  { %8489 = vst [vmem:[#allocation91_spill] sm:$0xff] %v7005_v5  ;;  %8490 = vst [vmem:[#allocation92_spill] sm:$0xff] %v7007_v13  ;;  %v2620_v5 = vmul.f32 %v6833_v4, %v6338_v29 }
 0x39e   :  { %3222 = vrot.lane.b32.xlu1 %v3176_v50, %s4359_s9  ;;  %v2629_v50 = vmul.f32 %v6948_v60, %v6338_v29 }
 0x3a0   :  { %3300 = vrot.lane.b32.xlu0 %v3264_v19, %s4360_s12  ;;  %v7015_v39 = vpop.permute.xlu1 %2476  ;;  %v7017_v1 = vpop.permute.xlu0 %2554 }
 0x3a1   :  { %8491 = vst [vmem:[#allocation93_spill] sm:$0xff] %v7015_v39  ;;  %8492 = vst [vmem:[#allocation94_spill] sm:$0xff] %v7017_v1 }
 0x3a2   :  { %3318 = vrot.lane.b32.xlu1 %v3273_v56, %s4360_s12  ;;  %v2726_v56 = vmul.f32 %v6901_v3, %v6393_v47 }
 0x3a4   :  { %2562 = vrot.lane.b32.xlu0 %v2523_v8, %s4361_s14  ;;  %v7025_v13 = vpop.permute.xlu1 %2572  ;;  %v7027_v19 = vpop.permute.xlu0 %2650 }
 0x3a5   :  { %8493 = vst [vmem:[#allocation95_spill] sm:$0xff] %v7025_v13  ;;  %8494 = vst [vmem:[#allocation96_spill] sm:$0xff] %v7027_v19  ;;  %v2814_v13 = vmul.f32 %v6741_v33, %v6661_v49 }
 0x3a6   :  { %2658 = vrot.lane.b32.xlu1 %v2620_v5, %s4362_s16  ;;  %v2823_v5 = vmul.f32 %v6861_v10, %v6661_v49 }
 0x3a8   :  { %2676 = vrot.lane.b32.xlu0 %v2629_v50, %s4362_s16  ;;  %v7035_v39 = vpop.permute.xlu1 %2668  ;;  %v7037_v8 = vpop.permute.xlu0 %2744 }
 0x3a9   :  { %8495 = vst [vmem:[#allocation97_spill] sm:$0xff] %v7035_v39  ;;  %8496 = vst [vmem:[#allocation98_spill] sm:$0xff] %v7037_v8  ;;  %v3071_v39 = vmul.f32 %v6933_v42, %v6293_v11 }
 0x3aa   :  { %2754 = vrot.lane.b32.xlu1 %v2717_v43, %s4363_s18  ;;  %v3168_v43 = vmul.f32 %v6833_v4, %v8438_v28 }
 0x3ac   :  { %2772 = vrot.lane.b32.xlu0 %v2726_v56, %s4363_s18  ;;  %v7045_v1 = vpop.permute.xlu1 %2746  ;;  %v7047_v50 = vpop.permute.xlu0 %2764 }
 0x3ad   :  { %8497 = vst [vmem:[#allocation99_spill] sm:$0xff] %v7045_v1  ;;  %8498 = vst [vmem:[#allocation100_spill] sm:$0xff] %v7047_v50  ;;  %v3177_v1 = vmul.f32 %v6948_v60, %v8438_v28  ;;  %v3274_v50 = vmul.f32 %v6901_v3, %v6589_v40 }
 0x3ae   :  { %2850 = vrot.lane.b32.xlu1 %v2814_v13, %s4364_s20  ;;  %v3265_v13 = vmul.f32 %v6726_v35, %v6589_v40 }
 0x3b0   :  { %2868 = vrot.lane.b32.xlu0 %v2823_v5, %s4364_s20  ;;  %v7055_v8 = vpop.permute.xlu1 %2858  ;;  %v7057_v56 = vpop.permute.xlu0 %2860 }
 0x3b1   :  { %8499 = vst [vmem:[#allocation101_spill] sm:$0xff] %v7055_v8  ;;  %8500 = vst [vmem:[#allocation102_spill] sm:$0xff] %v7057_v56 }
 0x3b2   :  { %3110 = vrot.lane.b32.xlu1 %v3071_v39, %s4358_s10  ;;  %v2621_v39 = vmul.f32 %v6933_v42, %v6338_v29  ;;  %v2815_v29 = vmul.f32 %v6726_v35, %v6661_v49  ;;  %s4157_s10 = sld [smem:[#allocation3 + $0x14]] }
 0x3b4   :  { %3206 = vrot.lane.b32.xlu0 %v3168_v43, %s4359_s9  ;;  %v7065_v11 = vpop.permute.xlu1 %3102  ;;  %v7067_v5 = vpop.permute.xlu0 %3120 }
 0x3b5   :  { %8501 = vst [vmem:[#allocation103_spill] sm:$0xff] %v7065_v11  ;;  %8502 = vst [vmem:[#allocation104_spill] sm:$0xff] %v7067_v5  ;;  %v2718_v11 = vmul.f32 %v6833_v4, %v6393_v47 }
 0x3b6   :  { %3224 = vrot.lane.b32.xlu1 %v3177_v1, %s4359_s9  ;;  %v2727_v1 = vmul.f32 %v6948_v60, %v6393_v47 }
 0x3b8   :  { %3302 = vrot.lane.b32.xlu0 %v3265_v13, %s4360_s12  ;;  %v7075_v19 = vpop.permute.xlu1 %3198  ;;  %v7077_v43 = vpop.permute.xlu0 %3216 }
 0x3b9   :  { %8503 = vst [vmem:[#allocation105_spill] sm:$0xff] %v7075_v19  ;;  %8504 = vst [vmem:[#allocation106_spill] sm:$0xff] %v7077_v43  ;;  %v3169_v19 = vmul.f32 %v6933_v42, %v8438_v28 }
 0x3ba   :  { %3320 = vrot.lane.b32.xlu1 %v3274_v50, %s4360_s12  ;;  %v2824_v50 = vmul.f32 %v6901_v3, %v6661_v49  ;;  %v3275_v3 = vmul.f32 %v6948_v60, %v6589_v40 }
 0x3bc   :  { %2660 = vrot.lane.b32.xlu0 %v2621_v39, %s4362_s16  ;;  %v7085_v5 = vpop.permute.xlu1 %3292  ;;  %v7087_v13 = vpop.permute.xlu0 %3294  ;;  %s4399_s16 = smov 32  }
 0x3bd   :  { %8505 = vst [vmem:[#allocation107_spill] sm:$0xff] %v7085_v5  ;;  %8506 = vst [vmem:[#allocation108_spill] sm:$0xff] %v7087_v13 }
 0x3be   :  { %2756 = vrot.lane.b32.xlu1 %v2718_v11, %s4363_s18  ;;  %v3266_v11 = vmul.f32 %v6833_v4, %v6589_v40 }
 0x3c0   :  { %2774 = vrot.lane.b32.xlu0 %v2727_v1, %s4363_s18  ;;  %v7095_v43 = vpop.permute.xlu1 %3312  ;;  %v7097_v39 = vpop.permute.xlu0 %2460 }
 0x3c1   :  { %8507 = vst [vmem:[#allocation109_spill] sm:$0xff] %v7095_v43  ;;  %8508 = vst [vmem:[#allocation110_spill] sm:$0xff] %v7097_v39 }
 0x3c2   :  { %2852 = vrot.lane.b32.xlu1 %v2815_v29, %s4364_s20  ;;  %v2719_v29 = vmul.f32 %v6933_v42, %v6393_v47  ;;  %v3267_v47 = vmul.f32 %v6933_v42, %v6589_v40 }
 0x3c4   :  { %2870 = vrot.lane.b32.xlu0 %v2824_v50, %s4364_s20  ;;  %v7105_v13 = vpop.permute.xlu1 %2478  ;;  %v7107_v1 = vpop.permute.xlu0 %2556 }
 0x3c5   :  { %8509 = vst [vmem:[#allocation111_spill] sm:$0xff] %v7105_v13  ;;  %8510 = vst [vmem:[#allocation114_spill] sm:$0xff] %v7107_v1  ;;  %v2816_v13 = vmul.f32 %v6833_v4, %v6661_v49 }
 0x3c6   :  { %3208 = vrot.lane.b32.xlu1 %v3169_v19, %s4359_s9  ;;  %v2825_v19 = vmul.f32 %v6948_v60, %v6661_v49  ;;  %s4166_s9 = sld [smem:[#allocation3 + $0x1c]] }
 0x3c8   :  { %3304 = vrot.lane.b32.xlu0 %v3266_v11, %s4360_s12  ;;  %v7115_v28 = vpop.permute.xlu1 %2574  ;;  %v7117_v50 = vpop.permute.xlu0 %2652 }
 0x3c9   :  { %8511 = vst [vmem:[#allocation115_spill] sm:$0xff] %v7115_v28  ;;  %8512 = vst [vmem:[#allocation117_spill] sm:$0xff] %v7117_v50 }
 0x3ca   :  { %3322 = vrot.lane.b32.xlu1 %v3275_v3, %s4360_s12  ;;  %v2817_v3 = vmul.f32 %v6933_v42, %v6661_v49 }
 0x3cc   :  { %2758 = vrot.lane.b32.xlu0 %v2719_v29, %s4363_s18  ;;  %v7125_v1 = vpop.permute.xlu1 %2670  ;;  %v7127_v11 = vpop.permute.xlu0 %2748  ;;  %v7189_v39 = vstv %s4166_s9  ;;  %s4397_s9 = smov 40   ;;  %s4400_s18 = smov 36  }
 0x3cd   :  { %8513 = vst [vmem:[#allocation118_spill] sm:$0xff] %v7125_v1  ;;  %8514 = vst [vmem:[#allocation119_spill] sm:$0xff] %v7127_v11  ;;  %v3030_v57 = vmul.f32 %v6639_v61, %v7189_v39 }
 0x3ce   :  { %2854 = vrot.lane.b32.xlu1 %v2816_v13, %s4364_s20 }
 0x3d0   :  { %2872 = vrot.lane.b32.xlu0 %v2825_v19, %s4364_s20  ;;  %v7135_v28 = vpop.permute.xlu1 %2766  ;;  %v7137_v29 = vpop.permute.xlu0 %2842 }
 0x3d1   :  { %8515 = vst [vmem:[#allocation120_spill] sm:$0xff] %v7135_v28  ;;  %8516 = vst [vmem:[#allocation121_spill] sm:$0xff] %v7137_v29 }
 0x3d2   :  { %3306 = vrot.lane.b32.xlu1 %v3267_v47, %s4360_s12  ;;  %s4398_s12 = smov 44  }
 0x3d4   :  { %2856 = vrot.lane.b32.xlu0 %v2817_v3, %s4364_s20  ;;  %v7141_v60 = vpop.permute.xlu1 %2844  ;;  %v7143_v1 = vpop.permute.xlu0 %2862  ;;  %s4401_s20 = smov 24  }
 0x3d5   :  { %8517 = vst [vmem:[#allocation122_spill] sm:$0xff] %v7141_v60  ;;  %8518 = vst [vmem:[#allocation123_spill] sm:$0xff] %v7143_v1 }
 0x3d8   :  { %v7145_v13 = vpop.permute.xlu1 %3104  ;;  %v7147_v40 = vpop.permute.xlu0 %3122 }
 0x3d9   :  { %8519 = vst [vmem:[#allocation124_spill] sm:$0xff] %v7145_v13  ;;  %8520 = vst [vmem:[#allocation125_spill] sm:$0xff] %v7147_v40  ;;  %v7165_v13 = vstv %s4157_s10  ;;  %v4286_v40 = vld [vmem:[%s7853_s0 + $0x40] sm:$0xff]  ;;  %s4396_s10 = smov 52  }
 0x3da   :  { %8529 = vst [vmem:[#allocation134_spill] sm:$0xff] %v7165_v13  ;;  %v2190_v1 = vmul.f32 %v6698_v63, %v7165_v13  ;;  %v2191_v28 = vmul.f32 %v6683_v6, %v7165_v13  ;;  %v7195_v29 = vmul.f32 %v6741_v33, %v7165_v13  ;;  %v2199_v11 = vmul.f32 %v6821_v27, %v7165_v13 }
 0x3db   :  { %v2200_v56 = vmul.f32 %v6876_v55, %v7165_v13  ;;  %v3038_v8 = vmul.f32 %v4286_v40, %v7189_v39 }
 0x3dc   :  { %v7149_v19 = vpop.permute.xlu1 %3200  ;;  %v7151_v43 = vpop.permute.xlu0 %3218  ;;  %8532 = vst [vmem:[#allocation137_spill] sm:$0xff] %v7195_v29  ;;  %v7210_v29 = vmul.f32 %v6861_v10, %v7165_v13 }
 0x3dd   :  { %8521 = vst [vmem:[#allocation126_spill] sm:$0xff] %v7149_v19  ;;  %8522 = vst [vmem:[#allocation127_spill] sm:$0xff] %v7151_v43  ;;  %v2196_v43 = vmul.f32 %v4286_v40, %v7165_v13  ;;  %v7228_v40 = vmul.f32 %v6698_v63, %v7189_v39 }
 0x3de   :  { %8533 = vst [vmem:[#allocation138_spill] sm:$0xff] %v7210_v29 }
 0x3df   :  { %v2310_v60 = vadd.f32 %v6627_v2, %v2196_v43 }
 0x3e0   :  { %v7153_v49 = vpop.permute.xlu1 %3296  ;;  %v7155_v42 = vpop.permute.xlu0 %3314 }
 0x3e1   :  { %8523 = vst [vmem:[#allocation128_spill] sm:$0xff] %v7153_v49  ;;  %8524 = vst [vmem:[#allocation129_spill] sm:$0xff] %v7155_v42  ;;  %v2188_v42 = vmul.f32 %v6639_v61, %v7165_v13  ;;  %v2408_v18 = vadd.f32 %v6745_v26, %v2310_v60  ;;  %v7235_v26 = vmul.f32 %v6821_v27, %v7189_v39 }
 0x3e2   :  { %v2305_v60 = vadd.f32 %v6593_v9, %v2191_v28  ;;  %v2314_v9 = vadd.f32 %v6665_v45, %v2200_v56  ;;  %v8534_v28 = vld [vmem:[#allocation62_spill] sm:$0xff] }
 0x3e3   :  { %v2506_v63 = vadd.f32 %v6812_v37, %v2408_v18  ;;  %v7262_v37 = vmul.f32 %v6683_v6, %v7189_v39 }
 0x3e4   :  { %v7157_v47 = vpop.permute.xlu1 %2462  ;;  %v7159_v3 = vpop.permute.xlu0 %2480 }
 0x3e5   :  { %8525 = vst [vmem:[#allocation130_spill] sm:$0xff] %v7157_v47  ;;  %8526 = vst [vmem:[#allocation131_spill] sm:$0xff] %v7159_v3  ;;  %v4287_v3 = vld [vmem:[%s7853_s0 + $0x48] sm:$0xff]  ;;  %v2198_v47 = vmul.f32 %v6786_v36, %v7165_v13 }
 0x3e6   :  { %v2197_v49 = vmul.f32 %v4287_v3, %v7165_v13 }
 0x3e8   :  { %v7161_v50 = vpop.permute.xlu1 %2558  ;;  %v7163_v5 = vpop.permute.xlu0 %2576 }
 0x3e9   :  { %8527 = vst [vmem:[#allocation132_spill] sm:$0xff] %v7161_v50  ;;  %8528 = vst [vmem:[#allocation133_spill] sm:$0xff] %v7163_v5  ;;  %v2189_v50 = vmul.f32 %v6653_v38, %v7165_v13 }
 0x3eb   :  { %v2303_v61 = vadd.f32 %v6579_v7, %v2189_v50 }
 0x3ec   :  { %v7179_v5 = vpop.permute.xlu1 %2654  ;;  %v7181_v19 = vpop.permute.xlu0 %2672 }
 0x3ed   :  { %8530 = vst [vmem:[#allocation135_spill] sm:$0xff] %v7179_v5  ;;  %8531 = vst [vmem:[#allocation136_spill] sm:$0xff] %v7181_v19  ;;  %v2193_v19 = vmul.f32 %v6726_v35, %v7165_v13  ;;  %v2194_v5 = vmul.f32 %v6833_v4, %v7165_v13  ;;  %v2311_v35 = vadd.f32 %v6629_v53, %v2197_v49 }
 0x3ee   :  { %v3039_v4 = vmul.f32 %v4287_v3, %v7189_v39  ;;  %v3031_v13 = vmul.f32 %v6653_v38, %v7189_v39  ;;  %v3040_v53 = vmul.f32 %v6786_v36, %v7189_v39  ;;  %v2302_v49 = vadd.f32 %v6577_v17, %v2188_v42 }
 0x3ef   :  { %v2409_v3 = vadd.f32 %v6747_v54, %v2311_v35  ;;  %v2304_v38 = vadd.f32 %v6591_v23, %v2190_v1  ;;  %v2307_v36 = vadd.f32 %v6603_v52, %v2193_v19  ;;  %v2308_v29 = vadd.f32 %v6614_v12, %v2194_v5 }
 0x3f0   :  { %v7217_v2 = vpop.permute.xlu1 %2750  ;;  %v7219_v43 = vpop.permute.xlu0 %2768  ;;  %v2312_v17 = vadd.f32 %v6644_v32, %v2198_v47  ;;  %v7245_v42 = vstv %s7177_s19  ;;  %v2313_v23 = vadd.f32 %v6646_v24, %v2199_v11  ;;  %v2604_v52 = vadd.f32 %v6840_v22, %v2506_v63  ;;  %s4402_s19 = smov 28  }
 0x3f1   :  { %v2507_v7 = vadd.f32 %v6825_v46, %v2409_v3  ;;  %v7255_v1 = vstv %s7191_s21  ;;  %v2400_v12 = vadd.f32 %v6690_v58, %v2302_v49  ;;  %v2401_v32 = vadd.f32 %v6692_v25, %v2303_v61  ;;  %v8541_v3 = vld [vmem:[#allocation68_spill] sm:$0xff]  ;;  %s4403_s21 = smov 16  }
 0x3f2   :  { %v2402_v46 = vadd.f32 %v6705_v31, %v2304_v38  ;;  %v2403_v24 = vadd.f32 %v6707_v62, %v2305_v60  ;;  %v2702_v45 = vadd.f32 %v6890_v48, %v2604_v52  ;;  %v7269_v22 = vmul.f32 %v6876_v55, %v7189_v39  ;;  %v8542_v60 = vld [vmem:[#allocation69_spill] sm:$0xff] }
 0x3f3   :  { %v2605_v18 = vadd.f32 %v6842_v41, %v2507_v7  ;;  %v7272_v58 = vadd.f32 %v6717_v30, %v2307_v36  ;;  %v2406_v25 = vadd.f32 %v6730_v0, %v2308_v29  ;;  %v2410_v41 = vadd.f32 %v6755_v44, %v2312_v17  ;;  %v8543_v36 = vld [vmem:[#allocation71_spill] sm:$0xff]  ;;  %v8544_v17 = vld [vmem:[#allocation76_spill] sm:$0xff]  ;;  %v8545_v7 = vld [vmem:[#allocation73_spill] sm:$0xff] }
 0x3f4   :  { %v7247_v54 = vpop.permute.xlu1 %2846  ;;  %v7249_v27 = vpop.permute.xlu0 %2864  ;;  %v2411_v62 = vadd.f32 %v6757_v14, %v2313_v23  ;;  %v2412_v48 = vadd.f32 %v6765_v16, %v2314_v9  ;;  %v2498_v55 = vadd.f32 %v6790_v20, %v2400_v12  ;;  %v2800_v5 = vadd.f32 %v6967_v34, %v2702_v45  ;;  %v8535_v14 = vld [vmem:[#allocation64_spill] sm:$0xff]  ;;  %v8536_v16 = vld [vmem:[#allocation66_spill] sm:$0xff]  ;;  %v8537_v20 = vld [vmem:[#allocation101_spill] sm:$0xff] }
 0x3f5   :  { %v2703_v6 = vadd.f32 %v6892_v15, %v2605_v18  ;;  %v2499_v30 = vadd.f32 %v6792_v59, %v2401_v32  ;;  %v2500_v0 = vadd.f32 %v6800_v21, %v2402_v46  ;;  %v7290_v15 = vmul.f32 %v6741_v33, %v7189_v39  ;;  %v8538_v34 = vld [vmem:[#allocation67_spill] sm:$0xff]  ;;  %v8539_v59 = vld [vmem:[#allocation70_spill] sm:$0xff]  ;;  %v8547_v12 = vld [vmem:[#allocation80_spill] sm:$0xff] }
 0x3f6   :  { %v7293_v50 = vadd.f32 %v8534_v28, %v2403_v24  ;;  %v2508_v11 = vadd.f32 %v8535_v14, %v2410_v41  ;;  %v3152_v29 = vadd.f32 %v8536_v16, %v3038_v8  ;;  %v2898_v19 = vadd.f32 %v8537_v20, %v2800_v5  ;;  %v8540_v21 = vld [vmem:[#allocation102_spill] sm:$0xff]  ;;  %v8549_v46 = vld [vmem:[#allocation75_spill] sm:$0xff]  ;;  %v8550_v45 = vld [vmem:[#allocation77_spill] sm:$0xff] }
 0x3f7   :  { %v2801_v44 = vadd.f32 %v6975_v51, %v2703_v6  ;;  %v3153_v47 = vadd.f32 %v8538_v34, %v3039_v4  ;;  %v2597_v35 = vadd.f32 %v8539_v59, %v2499_v30  ;;  %v7303_v51 = vmul.f32 %v6861_v10, %v7189_v39  ;;  %v8546_v9 = vld [vmem:[#allocation74_spill] sm:$0xff]  ;;  %v8548_v10 = vld [vmem:[#allocation84_spill] sm:$0xff]  ;;  %v8551_v6 = vld [vmem:[#allocation91_spill] sm:$0xff] }
 0x3f8   :  { %v7277_v56 = vpop.permute.xlu1 %3106  ;;  %v7279_v31 = vpop.permute.xlu0 %3124  ;;  %v2509_v38 = vadd.f32 %v8541_v3, %v2411_v62  ;;  %v2596_v8 = vadd.f32 %v8542_v60, %v2498_v55  ;;  %v2606_v63 = vadd.f32 %v8543_v36, %v2508_v11  ;;  %v3250_v4 = vadd.f32 %v8544_v17, %v3152_v29  ;;  %v8552_v5 = vld [vmem:[#allocation83_spill] sm:$0xff]  ;;  %v8556_v29 = vld [vmem:[#allocation81_spill] sm:$0xff]  ;;  %v8560_v3 = vld [vmem:[#allocation98_spill] sm:$0xff] }
 0x3f9   :  { %v2899_v49 = vadd.f32 %v8540_v21, %v2801_v44  ;;  %v3144_v23 = vadd.f32 %v8545_v7, %v3030_v57  ;;  %v3145_v52 = vadd.f32 %v8546_v9, %v3031_v13  ;;  %v2598_v32 = vadd.f32 %v8547_v12, %v2500_v0  ;;  %v8553_v44 = vld [vmem:[#allocation96_spill] sm:$0xff]  ;;  %v8554_v14 = vld [vmem:[#allocation99_spill] sm:$0xff]  ;;  %v8557_v34 = vld [vmem:[#allocation85_spill] sm:$0xff] }
 0x3fa   :  { %v2695_v18 = vadd.f32 %v8548_v10, %v2597_v35  ;;  %v3154_v24 = vadd.f32 %v8549_v46, %v3040_v53  ;;  %v3251_v41 = vadd.f32 %v8550_v45, %v3153_v47  ;;  %v3348_v62 = vadd.f32 %v8551_v6, %v3250_v4  ;;  %v8555_v53 = vld [vmem:[#allocation78_spill] sm:$0xff]  ;;  %v8563_v7 = vld [vmem:[#allocation97_spill] sm:$0xff]  ;;  %v8567_v6 = vld [vmem:[#allocation87_spill] sm:$0xff] }
 0x3fb   :  { %v2915_v55 = vadd.f32 %v7255_v1, %v2898_v19  ;;  %v2694_v30 = vadd.f32 %v8552_v5, %v2596_v8  ;;  %v2696_v28 = vadd.f32 %v8553_v44, %v2598_v32  ;;  %v2916_v13 = vadd.f32 %v7255_v1, %v2899_v49  ;;  %v8558_v19 = vld [vmem:[#allocation92_spill] sm:$0xff]  ;;  %v8559_v35 = vld [vmem:[#allocation86_spill] sm:$0xff]  ;;  %v8561_v8 = vld [vmem:[#allocation119_spill] sm:$0xff] }
 0x3fc   :  { %v7305_v33 = vpop.permute.xlu1 %3202  ;;  %v7307_v61 = vpop.permute.xlu0 %3220  ;;  %v2793_v57 = vadd.f32 %v8554_v14, %v2695_v18  ;;  %v2510_v16 = vadd.f32 %v8555_v53, %v2412_v48  ;;  %v2607_v20 = vadd.f32 %v8556_v29, %v2509_v38  ;;  %v2704_v47 = vadd.f32 %v8557_v34, %v2606_v63  ;;  %v8562_v49 = vld [vmem:[#allocation122_spill] sm:$0xff]  ;;  %v8565_v32 = vld [vmem:[#allocation100_spill] sm:$0xff]  ;;  %v8566_v18 = vld [vmem:[#allocation121_spill] sm:$0xff] }
 0x3fd   :  { %v3349_v59 = vadd.f32 %v8558_v19, %v3251_v41  ;;  %v3146_v21 = vadd.f32 %v8559_v35, %v7228_v40  ;;  %v2792_v60 = vadd.f32 %v8560_v3, %v2694_v30  ;;  %v2794_v36 = vadd.f32 %v8561_v8, %v2696_v28  ;;  %v8564_v12 = vld [vmem:[#allocation130_spill] sm:$0xff]  ;;  %v8569_v44 = vld [vmem:[#allocation88_spill] sm:$0xff]  ;;  %v8572_v29 = vld [vmem:[#allocation89_spill] sm:$0xff] }
 0x3fe   :  { %v2891_v17 = vadd.f32 %v8562_v49, %v2793_v57  ;;  %v3365_v4 = vadd.f32 %v7245_v42, %v3348_v62  ;;  %v2705_v9 = vadd.f32 %v8563_v7, %v2607_v20  ;;  %v2931_v48 = vmax.f32 %v2915_v55, 0.0  ;;  %v8568_v55 = vld [vmem:[#allocation110_spill] sm:$0xff]  ;;  %v8570_v14 = vld [vmem:[#allocation120_spill] sm:$0xff] }
 0x3ff   :  { %v2504_v38 = vadd.f32 %v8564_v12, %v2406_v25  ;;  %v2802_v63 = vadd.f32 %v8565_v32, %v2704_v47  ;;  %v2932_v10 = vmax.f32 %v2916_v13, 0.0  ;;  %v2890_v46 = vadd.f32 %v8566_v18, %v2792_v60  ;;  %v8571_v13 = vld [vmem:[#allocation123_spill] sm:$0xff]  ;;  %v8574_v19 = vld [vmem:[#allocation132_spill] sm:$0xff]  ;;  %v8575_v35 = vld [vmem:[#allocation42_spill] sm:$0xff] }
 0x400   :  { %v7325_v0 = vpop.permute.xlu1 %3298  ;;  %v7327_v11 = vpop.permute.xlu0 %3316  ;;  %v2892_v40 = vadd.f32 %v7247_v54, %v2794_v36  ;;  %v3155_v5 = vadd.f32 %v8567_v6, %v7235_v26  ;;  %v7349_v62 = vadd.f32 %v7245_v42, %v3349_v59  ;;  %v2503_v30 = vadd.f32 %v8568_v55, %v7272_v58  ;;  %v8573_v26 = vld [vmem:[#allocation43_spill] sm:$0xff]  ;;  %v8576_v49 = vld [vmem:[#allocation90_spill] sm:$0xff] }
 0x401   :  { %v3242_v28 = vadd.f32 %v8569_v44, %v3144_v23  ;;  %v2803_v57 = vadd.f32 %v8570_v14, %v2705_v9  ;;  %v2908_v54 = vadd.f32 %v7255_v1, %v2891_v17  ;;  %v2900_v53 = vadd.f32 %v8571_v13, %v2802_v63  ;;  %v8580_v18 = vld [vmem:[#allocation95_spill] sm:$0xff]  ;;  %v8582_v14 = vld [vmem:[#allocation104_spill] sm:$0xff] }
 0x402   :  { %v3243_v20 = vadd.f32 %v8572_v29, %v3145_v52  ;;  %v3381_v34 = vmax.f32 %v3365_v4, 0.0  ;;  %v2947_v47 = vmul.f32 %v2931_v48, %v8573_v26  ;;  %v2601_v59 = vadd.f32 %v8574_v19, %v2503_v30  ;;  %v8577_v4 = vld [vmem:[#allocation107_spill] sm:$0xff]  ;;  %v8578_v48 = vld [vmem:[#allocation94_spill] sm:$0xff] }
 0x403   :  { %v2948_v3 = vmul.f32 %v2932_v10, %v8575_v35  ;;  %v2907_v58 = vadd.f32 %v7255_v1, %v2890_v46  ;;  %v2909_v60 = vadd.f32 %v7255_v1, %v2892_v40  ;;  %v2901_v23 = vadd.f32 %v7249_v27, %v2803_v57  ;;  %v8581_v40 = vld [vmem:[#allocation103_spill] sm:$0xff] }
 0x404   :  { %v7344_v45 = vpop.permute.xlu1 %2464  ;;  %v2561_v41 = vpop.permute.xlu0 %2560  ;;  %v3252_v17 = vadd.f32 %v8576_v49, %v3154_v24  ;;  %v3382_v52 = vmax.f32 %v7349_v62, 0.0  ;;  %v3340_v7 = vadd.f32 %v8577_v4, %v3242_v28  ;;  %v2599_v12 = vadd.f32 %v8578_v48, %v7293_v50  ;;  %v8589_v4 = vld [vmem:[#allocation44_spill] sm:$0xff] }
 0x405   :  { %v7353_v25 = vadd.f32 %v2561_v41, %v2504_v38  ;;  %v8579_v38 = vld [vmem:[#allocation108_spill] sm:$0xff]  ;;  %v2924_v63 = vmax.f32 %v2908_v54, 0.0  ;;  %v2917_v10 = vadd.f32 %v7255_v1, %v2900_v53  ;;  %v7378_v27 = vmul.f32 %v3381_v34, %v8573_v26  ;;  %v8583_v54 = vld [vmem:[#allocation105_spill] sm:$0xff] }
 0x406   :  { %v3341_v32 = vadd.f32 %v8579_v38, %v3243_v20  ;;  %v2608_v46 = vadd.f32 %v8580_v18, %v2510_v16  ;;  %v2978_v24 = vsel %vm2955_vm7, %v2947_v47, 0.0  ;;  %v3147_v41 = vadd.f32 %v8581_v40, %v7262_v37  ;;  %v8584_v53 = vld [vmem:[#allocation117_spill] sm:$0xff]  ;;  %v8585_v37 = vld [vmem:[#allocation106_spill] sm:$0xff]  ;;  %v8591_v40 = vld [vmem:[#allocation127_spill] sm:$0xff] }
 0x407   :  { %v2979_v6 = vsel %vm2955_vm7, %v2948_v3, 0.0  ;;  %v2923_v55 = vmax.f32 %v2907_v58, 0.0  ;;  %v2925_v30 = vmax.f32 %v2909_v60, 0.0  ;;  %v2918_v50 = vadd.f32 %v7255_v1, %v2901_v23  ;;  %v8586_v3 = vld [vmem:[#allocation126_spill] sm:$0xff]  ;;  %v8587_v60 = vld [vmem:[#allocation128_spill] sm:$0xff] }
 0x408   :  { %v7366_v8 = vpop.permute.xlu1 %2578  ;;  %v2657_v36 = vpop.permute.xlu0 %2656  ;;  %v3156_v57 = vadd.f32 %v8582_v14, %v7269_v22  ;;  %v3244_v16 = vadd.f32 %v8583_v54, %v3146_v21  ;;  %v3357_v13 = vadd.f32 %v7245_v42, %v3340_v7  ;;  %v2697_v29 = vadd.f32 %v8584_v53, %v2599_v12 }
 0x409   :  { %v7371_v9 = vadd.f32 %v2657_v36, %v2601_v59  ;;  %v3253_v20 = vadd.f32 %v8585_v37, %v3155_v5  ;;  %v3358_v34 = vadd.f32 %v7245_v42, %v3341_v32  ;;  %v2940_v47 = vmul.f32 %v2924_v63, %v8575_v35  ;;  %v8588_v36 = vld [vmem:[#allocation109_spill] sm:$0xff]  ;;  %v8590_v32 = vld [vmem:[#allocation118_spill] sm:$0xff] }
 0x40a   :  { %v2933_v19 = vmax.f32 %v2917_v10, 0.0  ;;  %v2980_v59 = vadd.f32 %v2979_v6, %v2978_v24  ;;  %v3245_v58 = vadd.f32 %v8586_v3, %v3147_v41  ;;  %v3342_v23 = vadd.f32 %v8587_v60, %v3244_v16  ;;  %v8593_v16 = vld [vmem:[#allocation45_spill] sm:$0xff] }
 0x40b   :  { %v2795_v22 = vadd.f32 %v7217_v2, %v2697_v29  ;;  %v3350_v21 = vadd.f32 %v8588_v36, %v3252_v17  ;;  %v2939_v49 = vmul.f32 %v2923_v55, %v8573_v26  ;;  %v2941_v7 = vmul.f32 %v2925_v30, %v8589_v4  ;;  %v8592_v55 = vld [vmem:[#allocation129_spill] sm:$0xff] }
 0x40c   :  { %v7386_v44 = vpop.permute.xlu1 %2674  ;;  %v7388_v28 = vpop.permute.xlu0 %2752  ;;  %v2934_v48 = vmax.f32 %v2918_v50, 0.0  ;;  %v3373_v38 = vmax.f32 %v3357_v13, 0.0  ;;  %v2706_v63 = vadd.f32 %v8590_v32, %v2608_v46  ;;  %v3343_v10 = vadd.f32 %v7325_v0, %v3245_v58 }
 0x40d   :  { %v3374_v24 = vmax.f32 %v3358_v34, 0.0  ;;  %v2957_v2 = vsel %vm2955_vm7, %v2940_v47, 0.0  ;;  %v2949_v17 = vmul.f32 %v2933_v19, %v8589_v4  ;;  %v3254_v41 = vadd.f32 %v8591_v40, %v3156_v57 }
 0x40e   :  { %v3359_v6 = vadd.f32 %v7245_v42, %v3342_v23  ;;  %v3351_v30 = vadd.f32 %v8592_v55, %v3253_v20  ;;  %v2804_v50 = vadd.f32 %v7219_v43, %v2706_v63  ;;  %v3367_v46 = vadd.f32 %v7245_v42, %v3350_v21  ;;  %v8594_v21 = vld [vmem:[#allocation124_spill] sm:$0xff] }
 0x40f   :  { %v2956_v0 = vsel %vm2955_vm7, %v2939_v49, 0.0  ;;  %v2959_v54 = vsel %vm2955_vm7, %v2941_v7, 0.0  ;;  %v2950_v13 = vmul.f32 %v2934_v48, %v8593_v16  ;;  %v3360_v57 = vadd.f32 %v7245_v42, %v3343_v10 }
 0x410   :  { %v7404_v5 = vpop.permute.xlu1 %2770  ;;  %v2849_v12 = vpop.permute.xlu0 %2848  ;;  %v3352_v37 = vadd.f32 %v7327_v11, %v3254_v41  ;;  %v3389_v43 = vmul.f32 %v3373_v38, %v8573_v26  ;;  %v3390_v47 = vmul.f32 %v3374_v24, %v8575_v35  ;;  %v2958_v19 = vadd.f32 %v2957_v2, %v2956_v0  ;;  %v8595_v41 = vld [vmem:[#allocation46_spill] sm:$0xff] }
 0x411   :  { %v2893_v18 = vadd.f32 %v2849_v12, %v2795_v22  ;;  %v2981_v3 = vsel %vm2955_vm7, %v2949_v17, 0.0  ;;  %v3375_v58 = vmax.f32 %v3359_v6, 0.0  ;;  %v3368_v60 = vadd.f32 %v7245_v42, %v3351_v30 }
 0x412   :  { %v3383_v36 = vmax.f32 %v3367_v46, 0.0  ;;  %v3148_v11 = vadd.f32 %v8594_v21, %v7290_v15  ;;  %v2960_v49 = vadd.f32 %v2959_v54, %v2958_v19  ;;  %v2983_v7 = vsel %vm2955_vm7, %v2950_v13, 0.0  ;;  %v8600_v19 = vld [vmem:[#allocation54_spill] sm:$0xff]  ;;  %v8601_v21 = vld [vmem:[#allocation57_spill] sm:$0xff] }
 0x413   :  { %v2910_v14 = vadd.f32 %v7255_v1, %v2893_v18  ;;  %v3376_v12 = vmax.f32 %v3360_v57, 0.0  ;;  %v3369_v38 = vadd.f32 %v7245_v42, %v3352_v37  ;;  %v3398_v10 = vmul.f32 %v3382_v52, %v8575_v35 }
 0x414   :  { %v2867_v53 = vpop.permute.xlu1 %2866  ;;  %v7419_v29 = vpop.permute.xlu0 %3108  ;;  %v3406_v18 = vsel %vm3405_vm8, %v3389_v43, 0.0  ;;  %v2982_v15 = vadd.f32 %v2981_v3, %v2980_v59  ;;  %v3391_v2 = vmul.f32 %v3375_v58, %v8589_v4  ;;  %v3384_v17 = vmax.f32 %v3368_v60, 0.0 }
 0x415   :  { %v2926_v20 = vmax.f32 %v2910_v14, 0.0  ;;  %v2902_v34 = vadd.f32 %v2867_v53, %v2804_v50  ;;  %v3246_v40 = vadd.f32 %v7305_v33, %v3148_v11  ;;  %v3407_v55 = vsel %vm3405_vm8, %v3390_v47, 0.0  ;;  %v8596_v50 = vld [vmem:[#allocation125_spill] sm:$0xff]  ;;  %v8599_v47 = vld [vmem:[#allocation138_spill] sm:$0xff] }
 0x416   :  { %v3399_v30 = vmul.f32 %v3383_v36, %v8589_v4  ;;  %v3157_v62 = vadd.f32 %v8596_v50, %v7303_v51  ;;  %v2984_v35 = vadd.f32 %v2983_v7, %v2982_v15  ;;  %v3392_v14 = vmul.f32 %v3376_v12, %v8593_v16  ;;  %v8602_v12 = vld [vmem:[#allocation59_spill] sm:$0xff] }
 0x417   :  { %v2942_v23 = vmul.f32 %v2926_v20, %v8593_v16  ;;  %v2919_v22 = vadd.f32 %v7255_v1, %v2902_v34  ;;  %v3385_v46 = vmax.f32 %v3369_v38, 0.0  ;;  %v3428_v33 = vsel %vm3405_vm8, %v7378_v27, 0.0  ;;  %v8597_v20 = vld [vmem:[#allocation137_spill] sm:$0xff]  ;;  %v8598_v34 = vld [vmem:[#allocation50_spill] sm:$0xff] }
 0x418   :  { %v7432_v26 = vpop.permute.xlu1 %3126  ;;  %v7434_v48 = vpop.permute.xlu0 %3204  ;;  %v3429_v13 = vsel %vm3405_vm8, %v3398_v10, 0.0  ;;  %v3409_v4 = vsel %vm3405_vm8, %v3391_v2, 0.0  ;;  %v3400_v51 = vmul.f32 %v3384_v17, %v8593_v16  ;;  %v3255_v57 = vadd.f32 %v7307_v61, %v3157_v62 }
 0x419   :  { %v2961_v32 = vsel %vm2955_vm7, %v2942_v23, 0.0  ;;  %v2935_v63 = vmax.f32 %v2919_v22, 0.0  ;;  %v2306_v43 = vadd.f32 %v8598_v34, %v8597_v20  ;;  %v2315_v3 = vadd.f32 %v8600_v19, %v8599_v47  ;;  %v8608_v20 = vld [vmem:[#allocation135_spill] sm:$0xff] }
 0x41a   :  { %v7442_v24 = vadd.f32 %v2961_v32, %v2960_v49  ;;  %v3408_v58 = vadd.f32 %v3407_v55, %v3406_v18  ;;  %v3431_v27 = vsel %vm3405_vm8, %v3399_v30, 0.0  ;;  %v3411_v22 = vsel %vm3405_vm8, %v3392_v14, 0.0  ;;  %v8603_v18 = vld [vmem:[#allocation63_spill] sm:$0xff]  ;;  %v8604_v55 = vld [vmem:[#allocation93_spill] sm:$0xff] }
 0x41b   :  { %v2951_v6 = vmul.f32 %v2935_v63, %v8595_v41  ;;  %v3401_v16 = vmul.f32 %v3385_v46, %v8595_v41  ;;  %v2404_v11 = vadd.f32 %v8601_v21, %v2306_v43  ;;  %v3430_v49 = vadd.f32 %v3429_v13, %v3428_v33  ;;  %v8605_v46 = vld [vmem:[#allocation114_spill] sm:$0xff]  ;;  %v8607_v13 = vld [vmem:[#allocation47_spill] sm:$0xff]  ;;  %v8609_v43 = vld [vmem:[#allocation136_spill] sm:$0xff] }
 0x41c   :  { %v7451_v52 = vpop.permute.xlu1 %3222  ;;  %v3301_v59 = vpop.permute.xlu0 %3300  ;;  %v3410_v7 = vadd.f32 %v3409_v4, %v3408_v58  ;;  %v2413_v38 = vadd.f32 %v8602_v12, %v2315_v3  ;;  %v3433_v32 = vsel %vm3405_vm8, %v3400_v51, 0.0 }
 0x41d   :  { %v2985_v0 = vsel %vm2955_vm7, %v2951_v6, 0.0  ;;  %v3344_v54 = vadd.f32 %v3301_v59, %v3246_v40  ;;  %v2502_v15 = vadd.f32 %v8603_v18, %v2404_v11  ;;  %v3432_v2 = vadd.f32 %v3431_v27, %v3430_v49 }
 0x41e   :  { %v7458_v53 = vadd.f32 %v2985_v0, %v2984_v35  ;;  %v3412_v17 = vadd.f32 %v3411_v22, %v3410_v7  ;;  %v2511_v30 = vadd.f32 %v8604_v55, %v2413_v38  ;;  %v3435_v50 = vsel %vm3405_vm8, %v3401_v16, 0.0  ;;  %v7497_v16 = vld [vmem:[%s7853_s0 + $0x28] sm:$0xff]  ;;  %v8610_v7 = vld [vmem:[#allocation134_spill] sm:$0xff]  ;;  %v8612_v55 = vld [vmem:[#allocation55_spill] sm:$0xff] }
 0x41f   :  { %v3361_v37 = vadd.f32 %v7245_v42, %v3344_v54  ;;  %v3434_v59 = vadd.f32 %v3433_v32, %v3432_v2  ;;  %v2600_v0 = vadd.f32 %v8605_v46, %v2502_v15  ;;  %v8606_v54 = vld [vmem:[#allocation115_spill] sm:$0xff] }
 0x420   :  { %v3319_v60 = vpop.permute.xlu1 %3318  ;;  %v7469_v23 = vpop.permute.xlu0 %2562  ;;  %v2609_v33 = vadd.f32 %v8606_v54, %v2511_v30 }
 0x421   :  { %v3377_v36 = vmax.f32 %v3361_v37, 0.0  ;;  %v3353_v61 = vadd.f32 %v3319_v60, %v3255_v57  ;;  %v3436_v51 = vadd.f32 %v3435_v50, %v3434_v59  ;;  %v2698_v34 = vadd.f32 %v8608_v20, %v2600_v0 }
 0x422   :  { %v2707_v47 = vadd.f32 %v8609_v43, %v2609_v33 }
 0x423   :  { %v3393_v63 = vmul.f32 %v3377_v36, %v8595_v41  ;;  %v3370_v10 = vadd.f32 %v7245_v42, %v3353_v61  ;;  %v2796_v58 = vadd.f32 %v7388_v28, %v2698_v34  ;;  %v3035_v36 = vmul.f32 %v7497_v16, %v7189_v39  ;;  %v8611_v28 = vld [vmem:[#allocation72_spill] sm:$0xff]  ;;  %v8614_v34 = vld [vmem:[#allocation111_spill] sm:$0xff] }
 0x424   :  { %v7479_v40 = vpop.permute.xlu1 %2658  ;;  %v7481_v6 = vpop.permute.xlu0 %2676  ;;  %v2805_v27 = vadd.f32 %v7404_v5, %v2707_v47  ;;  %v2202_v12 = vmul.f32 %v8611_v28, %v8610_v7 }
 0x425   :  { %v3413_v62 = vsel %vm3405_vm8, %v3393_v63, 0.0  ;;  %v3386_v35 = vmax.f32 %v3370_v10, 0.0  ;;  %v3149_v32 = vadd.f32 %v7277_v56, %v3035_v36  ;;  %v3044_v63 = vmul.f32 %v8611_v28, %v7189_v39 }
 0x426   :  { %v3414_v14 = vadd.f32 %v3413_v62, %v3412_v17  ;;  %v2316_v30 = vadd.f32 %v8612_v55, %v2202_v12 }
 0x427   :  { %v3402_v4 = vmul.f32 %v3386_v35, %v8607_v13  ;;  %v3247_v15 = vadd.f32 %v7434_v48, %v3149_v32  ;;  %v3158_v35 = vadd.f32 %v7279_v31, %v3044_v63  ;;  %v8613_v48 = vld [vmem:[#allocation60_spill] sm:$0xff] }
 0x428   :  { %v2755_v57 = vpop.permute.xlu1 %2754  ;;  %v2773_v37 = vpop.permute.xlu0 %2772  ;;  %v2414_v33 = vadd.f32 %v8613_v48, %v2316_v30  ;;  %v8618_v63 = vld [vmem:[#allocation48_spill] sm:$0xff] }
 0x429   :  { %v3437_v19 = vsel %vm3405_vm8, %v3402_v4, 0.0  ;;  %v2797_v12 = vadd.f32 %v2755_v57, %v7371_v9  ;;  %v8621_v9 = vld [vmem:[#allocation61_spill] sm:$0xff] }
 0x42a   :  { %v3438_v3 = vadd.f32 %v3437_v19, %v3436_v51  ;;  %v2512_v31 = vadd.f32 %v8614_v34, %v2414_v33  ;;  %v8615_v19 = vld [vmem:[#allocation133_spill] sm:$0xff]  ;;  %v8622_v33 = vld [vmem:[#allocation131_spill] sm:$0xff] }
 0x42c   :  { %v2851_v60 = vpop.permute.xlu1 %2850  ;;  %v2869_v22 = vpop.permute.xlu0 %2868 }
 0x42d   :  { %v2894_v61 = vadd.f32 %v2851_v60, %v2796_v58  ;;  %v2903_v21 = vadd.f32 %v2869_v22, %v2805_v27  ;;  %v2610_v58 = vadd.f32 %v8615_v19, %v2512_v31 }
 0x42f   :  { %v2911_v11 = vadd.f32 %v7255_v1, %v2894_v61  ;;  %v2920_v49 = vadd.f32 %v7255_v1, %v2903_v21  ;;  %v2708_v36 = vadd.f32 %v7386_v44, %v2610_v58  ;;  %v8617_v61 = vld [vmem:[#allocation65_spill] sm:$0xff] }
 0x430   :  { %v7505_v5 = vpop.permute.xlu1 %3110  ;;  %v3207_v38 = vpop.permute.xlu0 %3206  ;;  %v3036_v21 = vmul.f32 %v8617_v61, %v7189_v39 }
 0x431   :  { %v2927_v10 = vmax.f32 %v2911_v11, 0.0  ;;  %v2936_v18 = vmax.f32 %v2920_v49, 0.0  ;;  %v2806_v32 = vadd.f32 %v2773_v37, %v2708_v36 }
 0x432   :  { %v3150_v55 = vadd.f32 %v7419_v29, %v3036_v21 }
 0x433   :  { %v2943_v2 = vmul.f32 %v2927_v10, %v8595_v41  ;;  %v2952_v17 = vmul.f32 %v2936_v18, %v8607_v13  ;;  %v3256_v41 = vadd.f32 %v7451_v52, %v3158_v35  ;;  %v8619_v18 = vld [vmem:[#allocation56_spill] sm:$0xff] }
 0x434   :  { %v3225_v50 = vpop.permute.xlu1 %3224  ;;  %v3303_v62 = vpop.permute.xlu0 %3302 }
 0x435   :  { %v2963_v59 = vsel %vm2955_vm7, %v2943_v2, 0.0  ;;  %v2987_v56 = vsel %vm2955_vm7, %v2952_v17, 0.0  ;;  %v3345_v46 = vadd.f32 %v3303_v62, %v3247_v15 }
 0x436   :  { %v2964_v0 = vadd.f32 %v2963_v59, %v7442_v24  ;;  %v2988_v54 = vadd.f32 %v2987_v56, %v7458_v53  ;;  %v8616_v53 = vld [vmem:[#allocation82_spill] sm:$0xff]  ;;  %v3248_v56 = vadd.f32 %v3207_v38, %v3150_v55 }
 0x437   :  { %v3362_v4 = vadd.f32 %v7245_v42, %v3345_v46  ;;  %v2203_v60 = vmul.f32 %v8616_v53, %v8610_v7  ;;  %v3045_v2 = vmul.f32 %v8616_v53, %v7189_v39  ;;  %v2700_v53 = vadd.f32 %v7479_v40, %v7353_v25 }
 0x438   :  { %v3321_v51 = vpop.permute.xlu1 %3320  ;;  %v7522_v20 = vpop.permute.xlu0 %2660 }
 0x439   :  { %v3378_v43 = vmax.f32 %v3362_v4, 0.0  ;;  %v3354_v47 = vadd.f32 %v3321_v51, %v3256_v41  ;;  %v2317_v15 = vadd.f32 %v8619_v18, %v2203_v60  ;;  %v3159_v29 = vadd.f32 %v7432_v26, %v3045_v2 }
 0x43b   :  { %v3394_v27 = vmul.f32 %v3378_v43, %v8607_v13  ;;  %v3371_v24 = vadd.f32 %v7245_v42, %v3354_v47  ;;  %v2415_v57 = vadd.f32 %v8621_v9, %v2317_v15  ;;  %v8623_v47 = vld [vmem:[#allocation52_spill] sm:$0xff]  ;;  %v3257_v58 = vadd.f32 %v3225_v50, %v3159_v29 }
 0x43c   :  { %v2757_v22 = vpop.permute.xlu1 %2756  ;;  %v2775_v52 = vpop.permute.xlu0 %2774 }
 0x43d   :  { %v3415_v11 = vsel %vm3405_vm8, %v3394_v27, 0.0  ;;  %v3387_v49 = vmax.f32 %v3371_v24, 0.0  ;;  %v2513_v41 = vadd.f32 %v8622_v33, %v2415_v57  ;;  %v8624_v27 = vld [vmem:[#allocation58_spill] sm:$0xff] }
 0x43e   :  { %v7534_v28 = vadd.f32 %v3415_v11, %v3414_v14  ;;  %v8620_v14 = vld [vmem:[#allocation79_spill] sm:$0xff] }
 0x43f   :  { %v3403_v10 = vmul.f32 %v3387_v49, %v8618_v63  ;;  %v2195_v59 = vmul.f32 %v8620_v14, %v8610_v7  ;;  %v2611_v7 = vadd.f32 %v7366_v8, %v2513_v41  ;;  %v3037_v26 = vmul.f32 %v8620_v14, %v7189_v39 }
 0x440   :  { %v2853_v17 = vpop.permute.xlu1 %2852  ;;  %v2871_v44 = vpop.permute.xlu0 %2870 }
 0x441   :  { %v3439_v30 = vsel %vm3405_vm8, %v3403_v10, 0.0  ;;  %v2895_v62 = vadd.f32 %v2853_v17, %v2797_v12  ;;  %v2904_v35 = vadd.f32 %v2871_v44, %v2806_v32  ;;  %v2309_v19 = vadd.f32 %v8623_v47, %v2195_v59 }
 0x442   :  { %v3440_v37 = vadd.f32 %v3439_v30, %v3438_v3  ;;  %v2709_v21 = vadd.f32 %v7481_v6, %v2611_v7  ;;  %v2798_v32 = vadd.f32 %v2757_v22, %v2700_v53  ;;  %v3151_v6 = vadd.f32 %v7505_v5, %v3037_v26 }
 0x443   :  { %v2912_v46 = vadd.f32 %v7255_v1, %v2895_v62  ;;  %v2921_v48 = vadd.f32 %v7255_v1, %v2904_v35  ;;  %v2407_v24 = vadd.f32 %v8624_v27, %v2309_v19 }
 0x444   :  { %v3209_v4 = vpop.permute.xlu1 %3208  ;;  %v3305_v51 = vpop.permute.xlu0 %3304  ;;  %v2807_v25 = vadd.f32 %v2775_v52, %v2709_v21 }
 0x445   :  { %v2928_v34 = vmax.f32 %v2912_v46, 0.0  ;;  %v2937_v31 = vmax.f32 %v2921_v48, 0.0  ;;  %v3346_v43 = vadd.f32 %v3305_v51, %v3248_v56  ;;  %v2505_v11 = vadd.f32 %v7344_v45, %v2407_v24 }
 0x446   :  { %v3249_v45 = vadd.f32 %v3209_v4, %v3151_v6 }
 0x447   :  { %v2944_v3 = vmul.f32 %v2928_v34, %v8607_v13  ;;  %v2953_v38 = vmul.f32 %v2937_v31, %v8618_v63  ;;  %v3363_v60 = vadd.f32 %v7245_v42, %v3346_v43  ;;  %v2603_v39 = vadd.f32 %v7469_v23, %v2505_v11 }
 0x448   :  { %v3323_v36 = vpop.permute.xlu1 %3322  ;;  %v2759_v61 = vpop.permute.xlu0 %2758 }
 0x449   :  { %v2965_v8 = vsel %vm2955_vm7, %v2944_v3, 0.0  ;;  %v2989_v13 = vsel %vm2955_vm7, %v2953_v38, 0.0  ;;  %v3355_v50 = vadd.f32 %v3323_v36, %v3257_v58  ;;  %v3379_v10 = vmax.f32 %v3363_v60, 0.0 }
 0x44a   :  { %v2966_v49 = vadd.f32 %v2965_v8, %v2964_v0  ;;  %v2990_v12 = vadd.f32 %v2989_v13, %v2988_v54  ;;  %v2701_v55 = vadd.f32 %v7522_v20, %v2603_v39  ;;  %v8625_v0 = vld [vmem:[#allocation49_spill] sm:$0xff] }
 0x44b   :  { %v3372_v40 = vadd.f32 %v7245_v42, %v3355_v50  ;;  %v3395_v23 = vmul.f32 %v3379_v10, %v8618_v63  ;;  %v8626_v39 = vld [vmem:[#allocation53_spill] sm:$0xff] }
 0x44c   :  { %v2855_v18 = vpop.permute.xlu1 %2854  ;;  %v2873_v15 = vpop.permute.xlu0 %2872  ;;  %v2799_v30 = vadd.f32 %v2759_v61, %v2701_v55 }
 0x44d   :  { %v3388_v2 = vmax.f32 %v3372_v40, 0.0  ;;  %v2896_v17 = vadd.f32 %v2855_v18, %v2798_v32  ;;  %v2905_v44 = vadd.f32 %v2873_v15, %v2807_v25  ;;  %v3417_v4 = vsel %vm3405_vm8, %v3395_v23, 0.0 }
 0x44e   :  { %v3418_v19 = vadd.f32 %v3417_v4, %v7534_v28  ;;  %vm4085_vm8 = vcmask 326912  }
 0x44f   :  { %v3404_v54 = vmul.f32 %v3388_v2, %v8625_v0  ;;  %v2913_v22 = vadd.f32 %v7255_v1, %v2896_v17  ;;  %v2922_v52 = vadd.f32 %v7255_v1, %v2905_v44 }
 0x450   :  { %v3307_v62 = vpop.permute.xlu1 %3306  ;;  %v2857_v35 = vpop.permute.xlu0 %2856 }
 0x451   :  { %v3441_v5 = vsel %vm3419_vm9, %v3404_v54, 0.0  ;;  %v2929_v14 = vmax.f32 %v2913_v22, 0.0  ;;  %v2938_v59 = vmax.f32 %v2922_v52, 0.0  ;;  %v3347_v9 = vadd.f32 %v3307_v62, %v3249_v45 }
 0x452   :  { %v3442_v57 = vadd.f32 %v3441_v5, %v3440_v37  ;;  %v2897_v20 = vadd.f32 %v2857_v35, %v2799_v30 }
 0x453   :  { %v2945_v56 = vmul.f32 %v2929_v14, %v8618_v63  ;;  %v2954_v46 = vmul.f32 %v2938_v59, %v8625_v0  ;;  %v3364_v48 = vadd.f32 %v7245_v42, %v3347_v9 }
 0x454   :  { %v3443_v33 = vrot.slane %v3442_v57, 4  ;;  %v2914_v41 = vadd.f32 %v7255_v1, %v2897_v20 }
 0x455   :  { %v2967_v51 = vsel %vm2955_vm7, %v2945_v56, 0.0  ;;  %v2991_v29 = vsel %vm2969_vm10, %v2954_v46, 0.0  ;;  %v3380_v34 = vmax.f32 %v3364_v48, 0.0  ;;  %vm4078_vm7 = vcmask 261312  }
 0x456   :  { %v3444_v31 = vadd.f32 %v3443_v33, %v3442_v57  ;;  %v2968_v37 = vadd.f32 %v2967_v51, %v2966_v49  ;;  %v2992_v43 = vadd.f32 %v2991_v29, %v2990_v12  ;;  %v2930_v47 = vmax.f32 %v2914_v41, 0.0 }
 0x457   :  { %v3396_v63 = vmul.f32 %v3380_v34, %v8625_v0  ;;  %v3484_v57 = vstv %s4170_s26  ;;  %v4408_v34 = vmov 1934713408   ;;  %s4135_s26 = sld [smem:[#allocation6 + $0x4]] }
 0x458   :  { %v3445_v7 = vrot.slane %v3444_v31, 2  ;;  %v2993_v42 = vrot.slane %v2992_v43, 4  ;;  %v2946_v58 = vmul.f32 %v2930_v47, %v8625_v0 }
 0x459   :  { %v3420_v1 = vsel %vm3419_vm9, %v3396_v63, 0.0  ;;  %vm4113_vm9 = vcmask 320512  }
 0x45a   :  { %v3446_v3 = vadd.f32 %v3445_v7, %v3444_v31  ;;  %v2994_v38 = vadd.f32 %v2993_v42, %v2992_v43  ;;  %v3421_v27 = vadd.f32 %v3420_v1, %v3418_v19  ;;  %v2970_v24 = vsel %vm2969_vm10, %v2946_v58, 0.0  ;;  %v8627_v42 = vld [vmem:[#allocation51_spill] sm:$0xff] }
 0x45b   :  { %v2971_v53 = vadd.f32 %v2970_v24, %v2968_v37  ;;  %v3604_v31 = vunpack.c.l.s4 %v4408_v34 }
 0x45c   :  { %v3447_v26 = vrot.slane %v3446_v3, 1  ;;  %v2995_v60 = vrot.slane %v2994_v38, 2  ;;  %v3422_v36 = vrot.slane %v3421_v27, 4 }
 0x45d   :  { %v2972_v61 = vrot.slane %v2971_v53, 4  ;;  %v3605_v47 = vunpack.c.0.s8 %v3604_v31 }
 0x45e   :  { %v2996_v21 = vadd.f32 %v2995_v60, %v2994_v38  ;;  %v3423_v8 = vadd.f32 %v3422_v36, %v3421_v27  ;;  %v3448_v11 = vadd.f32 %v3447_v26, %v3446_v3 }
 0x45f   :  { %v2973_v13 = vadd.f32 %v2972_v61, %v2971_v53  ;;  %v7649_v58 = vsub.s32 %v3605_v47, %v8627_v42 }
 0x460   :  { %v2997_v28 = vrot.slane %v2996_v21, 1  ;;  %v3424_v50 = vrot.slane %v3423_v8, 2  ;;  %v3464_v10 = vrot.slane %v3448_v11, %v8626_v39 }
 0x461   :  { %v2974_v49 = vrot.slane %v2973_v13, 2 }
 0x462   :  { %v3425_v12 = vadd.f32 %v3424_v50, %v3423_v8  ;;  %v2998_v32 = vadd.f32 %v2997_v28, %v2996_v21  ;;  %v3467_v44 = vrot.slane %v3464_v10, 7 }
 0x463   :  { %v2975_v25 = vadd.f32 %v2974_v49, %v2973_v13 }
 0x464   :  { %v3426_v40 = vrot.slane %v3425_v12, 1  ;;  %v3014_v15 = vrot.slane %v2998_v32, %v8626_v39 }
 0x465   :  { %v2976_v18 = vrot.slane %v2975_v25, 1 }
 0x466   :  { %v3427_v6 = vadd.f32 %v3426_v40, %v3425_v12  ;;  %v3017_v45 = vrot.slane %v3014_v15, 7 }
 0x467   :  { %v2977_v2 = vadd.f32 %v2976_v18, %v2975_v25 }
 0x468   :  { %v3457_v17 = vrot.slane %v3427_v6, %v8626_v39 }
 0x469   :  { %v3007_v55 = vrot.slane %v2977_v2, %v8626_v39 }
 0x46a   :  { %v3468_v0 = vsel %vm2174_vm2, %v3467_v44, %v3457_v17 }
 0x46b   :  { %v3469_v54 = vsel %vm2176_vm3, %v3467_v44, %v3468_v0  ;;  %v3018_v22 = vsel %vm2174_vm2, %v3017_v45, %v3007_v55 }
 0x46c   :  { %v3470_v52 = vsel %vm2178_vm4, %v3467_v44, %v3469_v54  ;;  %v3019_v23 = vsel %vm2176_vm3, %v3017_v45, %v3018_v22  ;;  %vm97_vm3 = vcmask 523264  }
 0x46d   :  { %v3471_v30 = vsel %vm2180_vm5, %v3467_v44, %v3470_v52  ;;  %v3020_v62 = vsel %vm2178_vm4, %v3017_v45, %v3019_v23  ;;  %vm105_vm4 = vcmask 522240  }
 0x46e   :  { %3472 = vrot.lane.b32.xlu1 %v3471_v30, %s4379_s24  ;;  %v3021_v35 = vsel %vm2180_vm5, %v3017_v45, %v3020_v62  ;;  %s4406_s24 = smov 12   ;;  %vm4064_vm5 = vcmask 130112  }
 0x46f   :  { %3022 = vrot.lane.b32.xlu0 %v3021_v35, %s4380_s25  ;;  %s4407_s25 = smov 4  }
 0x4e0   :  { %v3473_v5 = vpop.permute.xlu1 %3472 }
 0x4e1   :  { %v3474_v14 = vrot.slane %v3473_v5, 6  ;;  %v3023_v59 = vpop.permute.xlu0 %3022 }
 0x4e2   :  { %3026 = vst.msk [vmem:[#allocation2] sm:$0x3] %vm3025_vm13, %v3023_v59 }
 0x4e3   :  { %v3476_v9 = vsel %vm3475_vm14, %v3474_v14, %v3473_v5 }
 0x4e4   :  { %3481 = vst.msk [vmem:[#allocation2] sm:$0xf] %vm3480_vm15, %v3476_v9 }
 0x4eb   :  { %v3482_v20 = vld [vmem:[#allocation2] sm:$0xf] }
 0x4ec   :  { %v3485_v56 = vadd.f32 %v3484_v57, %v3482_v20 }
 0x4ee   :  { %v3487_v46 = vmin.f32 %v3485_v56, 0.0  ;;  %vm3486_vm0 = vcmp.gt.f32.partialorder %v3485_v56, 0.0 }
 0x4f0   :  { %v3488_v48 = vmul.f32 1.442695, %v3487_v46 }
 0x4f2   :  { %4238 = vpow2.f32 %v3488_v48 }
 0x4fc   :  { %v4239_v33 = vpop.eup %4238 }
 0x4fd   :  { %v4171_v41 = vadd.f32 -1.0, %v4239_v33 }
 0x4ff   :  { %v7597_v4 = vsel %vm3486_vm0, %v3485_v56, %v4171_v41 }
 0x500   :  { %3499 = vrot.lane.b32.xlu0 %v7597_v4, %s4365_s22  ;;  %3495 = vrot.lane.b32.xlu1 %v7597_v4, %s4361_s14  ;;  %s4385_s22 = smov 88   ;;  %s4386_s14 = smov 92  }
 0x504   :  { %3507 = vrot.lane.b32.xlu0 %v7597_v4, %s4374_s6  ;;  %3503 = vrot.lane.b32.xlu1 %v7597_v4, %s4369_s7  ;;  %s4387_s6 = smov 80   ;;  %s4388_s7 = smov 84  }
 0x508   :  { %3515 = vrot.lane.b32.xlu0 %v7597_v4, %s4381_s1  ;;  %3511 = vrot.lane.b32.xlu1 %v7597_v4, %s4382_s2  ;;  %s7717_s1 = sld [smem:[#allocation6 + $0x5]] }
 0x50c   :  { %3530 = vrot.lane.b32.xlu0 %v7597_v4, %s4383_s27  ;;  %3519 = vrot.lane.b32.xlu1 %v7597_v4, %s4384_s28 }
 0x510   :  { %3536 = vrot.lane.b32.xlu0 %v7597_v4, %s4385_s22  ;;  %3533 = vrot.lane.b32.xlu1 %v7597_v4, %s4386_s14 }
 0x514   :  { %3542 = vrot.lane.b32.xlu0 %v7597_v4, %s4387_s6  ;;  %3539 = vrot.lane.b32.xlu1 %v7597_v4, %s4388_s7 }
 0x518   :  { %3548 = vrot.lane.b32.xlu0 %v7597_v4, %s4389_s29  ;;  %3545 = vrot.lane.b32.xlu1 %v7597_v4, %s4390_s30 }
 0x51c   :  { %3554 = vrot.lane.b32.xlu0 %v7597_v4, %s4391_s8  ;;  %3551 = vrot.lane.b32.xlu1 %v7597_v4, %s4392_s11 }
 0x520   :  { %3560 = vrot.lane.b32.xlu0 %v7597_v4, %s4393_s13  ;;  %3557 = vrot.lane.b32.xlu1 %v7597_v4, %s4394_s15 }
 0x524   :  { %3566 = vrot.lane.b32.xlu0 %v7597_v4, %s4395_s17  ;;  %3563 = vrot.lane.b32.xlu1 %v7597_v4, %s4396_s10 }
 0x528   :  { %3572 = vrot.lane.b32.xlu0 %v7597_v4, %s4397_s9  ;;  %3569 = vrot.lane.b32.xlu1 %v7597_v4, %s4398_s12 }
 0x52c   :  { %3578 = vrot.lane.b32.xlu0 %v7597_v4, %s4399_s16  ;;  %3575 = vrot.lane.b32.xlu1 %v7597_v4, %s4400_s18 }
 0x530   :  { %3584 = vrot.lane.b32.xlu0 %v7597_v4, %s4401_s20  ;;  %3581 = vrot.lane.b32.xlu1 %v7597_v4, %s4402_s19 }
 0x534   :  { %3590 = vrot.lane.b32.xlu0 %v7597_v4, %s4403_s21  ;;  %3587 = vrot.lane.b32.xlu1 %v7597_v4, %s4404_s3 }
 0x538   :  { %3596 = vrot.lane.b32.xlu0 %v7597_v4, %s4405_s23  ;;  %3593 = vrot.lane.b32.xlu1 %v7597_v4, %s4406_s24 }
 0x53c   :  { %3599 = vrot.lane.b32.xlu1 %v7597_v4, %s4407_s25 }
 0x572   :  { %v7634_v51 = vpop.permute.xlu0 %3499  ;;  %v7636_v29 = vpop.permute.xlu1 %3495 }
 0x573   :  { %v3602_v1 = vcombine.low %v7597_v4, %v7636_v29 }
 0x575   :  { %v3609_v53 = vrot.slane %v3602_v1, %v7649_v58 }
 0x576   :  { %v7638_v37 = vpop.permute.xlu0 %3507  ;;  %v7640_v43 = vpop.permute.xlu1 %3503 }
 0x577   :  { %v3611_v63 = vcombine.low %v7634_v51, %v7640_v43 }
 0x579   :  { %v3618_v3 = vrot.slane %v3611_v63, %v7649_v58 }
 0x57a   :  { %v7644_v19 = vpop.permute.xlu0 %3515  ;;  %v7646_v7 = vpop.permute.xlu1 %3511 }
 0x57b   :  { %v3620_v38 = vcombine.low %v7638_v37, %v7646_v7  ;;  %v3822_v60 = vcombine.low %v3609_v53, %v3618_v3  ;;  %v4172_v13 = vcombine.high %v3609_v53, %v3618_v3 }
 0x57d   :  { %v3627_v36 = vrot.slane %v3620_v38, %v7649_v58  ;;  %v3830_v11 = vrot.slane %v3822_v60, %v8626_v39  ;;  %v3915_v10 = vrot.slane %v4172_v13, %v8626_v39 }
 0x57e   :  { %v3531_v27 = vpop.permute.xlu0 %3530  ;;  %v7656_v24 = vpop.permute.xlu1 %3519 }
 0x57f   :  { %v3629_v26 = vcombine.low %v7644_v19, %v7656_v24 }
 0x581   :  { %v3636_v61 = vrot.slane %v3629_v26, %v7649_v58 }
 0x582   :  { %v3537_v21 = vpop.permute.xlu0 %3536  ;;  %v3534_v8 = vpop.permute.xlu1 %3533 }
 0x583   :  { %v3823_v28 = vcombine.low %v3627_v36, %v3636_v61  ;;  %v4173_v50 = vcombine.high %v3627_v36, %v3636_v61  ;;  %v3638_v44 = vcombine.low %v3531_v27, %v3534_v8 }
 0x585   :  { %v3837_v49 = vrot.slane %v3823_v28, %v8626_v39  ;;  %v3922_v12 = vrot.slane %v4173_v50, %v8626_v39  ;;  %v3645_v52 = vrot.slane %v3638_v44, %v7649_v58  ;;  %v3505_v44 = vrot.slane %v7640_v43, 2 }
 0x586   :  { %v3543_v32 = vpop.permute.xlu0 %3542  ;;  %v3540_v25 = vpop.permute.xlu1 %3539 }
 0x587   :  { %v3838_v40 = vcombine.low %v3830_v11, %v3837_v49  ;;  %v3647_v18 = vcombine.low %v3537_v21, %v3540_v25  ;;  %v3923_v6 = vcombine.low %v3915_v10, %v3922_v12  ;;  %v3521_v25 = vrot.slane %v7656_v24, 2 }
 0x588   :  { %v3509_v24 = vrot.slane %v7638_v37, 2 }
 0x589   :  { %v4003_v15 = vsel %vm4002_vm1, %v3838_v40, 0.0  ;;  %v3654_v55 = vrot.slane %v3647_v18, %v7649_v58  ;;  %v4018_v0 = vsel %vm4002_vm1, %v3923_v6, 0.0  ;;  %v3517_v6 = vrot.slane %v7644_v19, 2 }
 0x58a   :  { %v3549_v2 = vpop.permute.xlu0 %3548  ;;  %4004 = vadd.xlane.f32.xlu0 %v4003_v15  ;;  %v3546_v17 = vpop.permute.xlu1 %3545 }
 0x58b   :  { %v3656_v45 = vcombine.low %v3543_v32, %v3546_v17  ;;  %v3839_v30 = vcombine.low %v3645_v52, %v3654_v55  ;;  %v4174_v62 = vcombine.high %v3645_v52, %v3654_v55  ;;  %v3501_v52 = vrot.slane %v7634_v51, 2 }
 0x58d   :  { %v3663_v35 = vrot.slane %v3656_v45, %v7649_v58  ;;  %v3932_v20 = vrot.slane %v4174_v62, %v8626_v39  ;;  %v3847_v46 = vrot.slane %v3839_v30, %v8626_v39 }
 0x58e   :  { %v3555_v54 = vpop.permute.xlu0 %3554  ;;  %4019 = vadd.xlane.f32.xlu0 %v4018_v0  ;;  %v3552_v22 = vpop.permute.xlu1 %3551  ;;  %v3497_v0 = vrot.slane %v7636_v29, 2 }
 0x58f   :  { %v3665_v23 = vcombine.low %v3549_v2, %v3552_v22  ;;  %v3513_v2 = vrot.slane %v7646_v7, 2  ;;  %v3493_v7 = vrot.slane %v7597_v4, 2 }
 0x591   :  { %v3672_v5 = vrot.slane %v3665_v23, %v7649_v58  ;;  %v3764_v62 = vcombine.low %v3509_v24, %v3513_v2  ;;  %v3746_v29 = vcombine.low %v3493_v7, %v3497_v0  ;;  %v4292_v2 = vld [vmem:[%s7853_s0 + $0x18] sm:$0xff]  ;;  %v4294_v0 = vld [vmem:[%s7853_s0 + $0x30] sm:$0xff] }
 0x592   :  { %v3561_v14 = vpop.permute.xlu0 %3560  ;;  %v3558_v59 = vpop.permute.xlu1 %3557 }
 0x593   :  { %v3840_v9 = vcombine.low %v3663_v35, %v3672_v5  ;;  %v4175_v57 = vcombine.high %v3663_v35, %v3672_v5  ;;  %v3674_v27 = vcombine.low %v3555_v54, %v3558_v59  ;;  %v3773_v54 = vcombine.low %v3517_v6, %v3521_v25 }
 0x594   :  { %v3755_v35 = vcombine.low %v3501_v52, %v3505_v44  ;;  %v3771_v51 = vrot.slane %v3764_v62, %v7649_v58  ;;  %v62_v25 = vstv %s4135_s26  ;;  %v4293_v44 = vld [vmem:[%s7853_s0 + $0x20] sm:$0xff]  ;;  %v4299_v62 = vld [vmem:[%s7853_s0 + $0x58] sm:$0xff] }
 0x595   :  { %v3939_v56 = vrot.slane %v4175_v57, %v8626_v39  ;;  %v3854_v48 = vrot.slane %v3840_v9, %v8626_v39  ;;  %v3681_v61 = vrot.slane %v3674_v27, %v7649_v58  ;;  %v3780_v37 = vrot.slane %v3773_v54, %v7649_v58  ;;  %v4295_v54 = vld [vmem:[%s7853_s0 + $0x38] sm:$0x7f]  ;;  %v4296_v52 = vld [vmem:[%s7853_s0 + $0x40] sm:$0xff] }
 0x596   :  { %v3567_v33 = vpop.permute.xlu0 %3566  ;;  %v3564_v41 = vpop.permute.xlu1 %3563  ;;  %v69_v24 = vmul.f32 %v4294_v0, %v62_v25 }
 0x597   :  { %v3940_v34 = vcombine.low %v3932_v20, %v3939_v56  ;;  %v3855_v31 = vcombine.low %v3847_v46, %v3854_v48  ;;  %v3683_v47 = vcombine.low %v3561_v14, %v3564_v41  ;;  %v3762_v20 = vrot.slane %v3755_v35, %v7649_v58  ;;  %v4300_v35 = vld [vmem:[%s7853_s0 + $0x60] sm:$0xff] }
 0x598   :  { %v3753_v46 = vrot.slane %v3746_v29, %v7649_v58  ;;  %v4181_v48 = vcombine.high %v3771_v51, %v3780_v37  ;;  %v4301_v29 = vld [vmem:[%s7853_s0 + $0x68] sm:$0xff] }
 0x599   :  { %v4021_v63 = vsel %vm4002_vm1, %v3940_v34, 0.0  ;;  %v4006_v1 = vsel %vm4002_vm1, %v3855_v31, 0.0  ;;  %v3690_v53 = vrot.slane %v3683_v47, %v7649_v58 }
 0x59a   :  { %v3573_v3 = vpop.permute.xlu0 %3572  ;;  %4022 = vadd.xlane.f32.xlu0 %v4021_v63  ;;  %4007 = vadd.xlane.f32.xlu1 %v4006_v1  ;;  %v3570_v38 = vpop.permute.xlu1 %3569  ;;  %v3990_v27 = vrot.slane %v4181_v48, %v8626_v39 }
 0x59b   :  { %v3692_v26 = vcombine.low %v3567_v33, %v3570_v38  ;;  %v3856_v8 = vcombine.low %v3681_v61, %v3690_v53  ;;  %v4176_v13 = vcombine.high %v3681_v61, %v3690_v53  ;;  %v3891_v33 = vcombine.low %v3771_v51, %v3780_v37  ;;  %v4303_v51 = vld [vmem:[%s7853_s0 + $0x78] sm:$0x7f] }
 0x59c   :  { %v3890_v38 = vcombine.low %v3753_v46, %v3762_v20  ;;  %v76_v37 = vmul.f32 %v4301_v29, %v62_v25 }
 0x59d   :  { %v3699_v28 = vrot.slane %v3692_v26, %v7649_v58  ;;  %v3949_v40 = vrot.slane %v4176_v13, %v8626_v39  ;;  %v3864_v18 = vrot.slane %v3856_v8, %v8626_v39  ;;  %v3905_v53 = vrot.slane %v3891_v33, %v8626_v39 }
 0x59e   :  { %v3579_v60 = vpop.permute.xlu0 %3578  ;;  %v3576_v36 = vpop.permute.xlu1 %3575  ;;  %v3898_v13 = vrot.slane %v3890_v38, %v8626_v39 }
 0x59f   :  { %v3701_v21 = vcombine.low %v3573_v3, %v3576_v36  ;;  %v4180_v3 = vcombine.high %v3753_v46, %v3762_v20 }
 0x5a1   :  { %v3708_v50 = vrot.slane %v3701_v21, %v7649_v58 }
 0x5a2   :  { %v3585_v11 = vpop.permute.xlu0 %3584  ;;  %v3582_v49 = vpop.permute.xlu1 %3581 }
 0x5a3   :  { %v3857_v12 = vcombine.low %v3699_v28, %v3708_v50  ;;  %v4177_v32 = vcombine.high %v3699_v28, %v3708_v50  ;;  %v3710_v5 = vcombine.low %v3579_v60, %v3582_v49  ;;  %v3906_v49 = vcombine.low %v3898_v13, %v3905_v53 }
 0x5a5   :  { %v3956_v10 = vrot.slane %v4177_v32, %v8626_v39  ;;  %v3871_v15 = vrot.slane %v3857_v12, %v8626_v39  ;;  %v3717_v4 = vrot.slane %v3710_v5, %v7649_v58  ;;  %v4015_v32 = vsel %vm4002_vm1, %v3906_v49, 0.0 }
 0x5a6   :  { %v3588_v17 = vpop.permute.xlu1 %3587  ;;  %v3591_v22 = vpop.permute.xlu0 %3590  ;;  %v75_v5 = vmul.f32 %v4300_v35, %v62_v25 }
 0x5a7   :  { %v3957_v55 = vcombine.low %v3949_v40, %v3956_v10  ;;  %v3872_v45 = vcombine.low %v3864_v18, %v3871_v15  ;;  %v3719_v23 = vcombine.low %v3585_v11, %v3588_v17  ;;  %v4290_v10 = vld [vmem:[%s7853_s0 + $0x8] sm:$0xff]  ;;  %v4291_v15 = vld [vmem:[%s7853_s0 + $0x10] sm:$0xff]  ;;  %v66_v17 = vmul.f32 %v4292_v2, %v62_v25 }
 0x5a8   :  { %v64_v18 = vmul.f32 %v4290_v10, %v62_v25  ;;  %v65_v6 = vmul.f32 %v4291_v15, %v62_v25 }
 0x5a9   :  { %v4024_v30 = vsel %vm4002_vm1, %v3957_v55, 0.0  ;;  %v4009_v19 = vsel %vm4002_vm1, %v3872_v45, 0.0  ;;  %v3726_v14 = vrot.slane %v3719_v23, %v7649_v58  ;;  %v67_v55 = vmul.f32 %v4293_v44, %v62_v25 }
 0x5aa   :  { %4025 = vadd.xlane.f32.xlu0 %v4024_v30  ;;  %4010 = vadd.xlane.f32.xlu1 %v4009_v19  ;;  %v3594_v43 = vpop.permute.xlu1 %3593  ;;  %v3597_v9 = vpop.permute.xlu0 %3596  ;;  %v68_v45 = vmul.f32 %v7497_v16, %v62_v25  ;;  %v71_v23 = vmul.f32 %v4296_v52, %v62_v25  ;;  %v4297_v16 = vld [vmem:[%s7853_s0 + $0x48] sm:$0xff]  ;;  %v4298_v19 = vld [vmem:[%s7853_s0 + $0x50] sm:$0xff] }
 0x5ab   :  { %v3728_v59 = vcombine.low %v3591_v22, %v3594_v43  ;;  %v3873_v41 = vcombine.low %v3717_v4, %v3726_v14  ;;  %v4178_v34 = vcombine.high %v3717_v4, %v3726_v14  ;;  %v70_v22 = vmul.f32 %v4295_v54, %v62_v25  ;;  %v4302_v14 = vld [vmem:[%s7853_s0 + $0x70] sm:$0xff] }
 0x5ac   :  { %v72_v30 = vmul.f32 %v4297_v16, %v62_v25  ;;  %v73_v7 = vmul.f32 %v4298_v19, %v62_v25  ;;  %v74_v43 = vmul.f32 %v4299_v62, %v62_v25 }
 0x5ad   :  { %v3735_v31 = vrot.slane %v3728_v59, %v7649_v58  ;;  %v3966_v26 = vrot.slane %v4178_v34, %v8626_v39  ;;  %v3881_v36 = vrot.slane %v3873_v41, %v8626_v39  ;;  %v77_v59 = vmul.f32 %v4302_v14, %v62_v25 }
 0x5ae   :  { %v3600_v57 = vpop.permute.xlu1 %3599 }
 0x5af   :  { %v3737_v56 = vcombine.low %v3597_v9, %v3600_v57  ;;  %v78_v9 = vmul.f32 %v4303_v51, %v62_v25  ;;  %v80_v57 = vstv %s7717_s1 }
 0x5b0   :  { %v82_v4 = vadd.f32 %v80_v57, %v64_v18  ;;  %v84_v46 = vadd.f32 %v80_v57, %v66_v17  ;;  %v85_v48 = vadd.f32 %v80_v57, %v67_v55  ;;  %v86_v33 = vadd.f32 %v80_v57, %v68_v45 }
 0x5b1   :  { %v3744_v47 = vrot.slane %v3737_v56, %v7649_v58  ;;  %v3983_v58 = vrot.slane %v4180_v3, %v8626_v39  ;;  %v83_v56 = vadd.f32 %v80_v57, %v65_v6  ;;  %v87_v41 = vadd.f32 %v80_v57, %v69_v24 }
 0x5b2   :  { %v88_v34 = vadd.f32 %v80_v57, %v70_v22  ;;  %99 = vst.msk [vmem:[%s7857_s4 + $0x8] sm:$0xff] %vm97_vm3, %v82_v4  ;;  %101 = vst.msk [vmem:[%s7857_s4 + $0x18] sm:$0xff] %vm97_vm3, %v84_v46  ;;  %v93_v3 = vadd.f32 %v80_v57, %v75_v5  ;;  %v94_v38 = vadd.f32 %v80_v57, %v76_v37 }
 0x5b3   :  { %v3874_v63 = vcombine.low %v3735_v31, %v3744_v47  ;;  %v4179_v1 = vcombine.high %v3735_v31, %v3744_v47  ;;  %v3991_v11 = vcombine.low %v3983_v58, %v3990_v27  ;;  %v89_v31 = vadd.f32 %v80_v57, %v71_v23  ;;  %100 = vst.msk [vmem:[%s7857_s4 + $0x10] sm:$0xff] %vm97_vm3, %v83_v56 }
 0x5b4   :  { %v90_v47 = vadd.f32 %v80_v57, %v72_v30  ;;  %v95_v27 = vadd.f32 %v80_v57, %v77_v59  ;;  %v96_v53 = vadd.f32 %v80_v57, %v78_v9  ;;  %102 = vst.msk [vmem:[%s7857_s4 + $0x20] sm:$0xff] %vm97_vm3, %v85_v48  ;;  %103 = vst.msk [vmem:[%s7857_s4 + $0x28] sm:$0xff] %vm97_vm3, %v86_v33 }
 0x5b5   :  { %v3973_v60 = vrot.slane %v4179_v1, %v8626_v39  ;;  %v3888_v61 = vrot.slane %v3874_v63, %v8626_v39  ;;  %v4030_v12 = vsel %vm4002_vm1, %v3991_v11, 0.0  ;;  %v4289_v39 = vld [vmem:[%s7853_s0] sm:$0xff]  ;;  %v91_v63 = vadd.f32 %v80_v57, %v73_v7  ;;  %104 = vst.msk [vmem:[%s7857_s4 + $0x30] sm:$0xff] %vm97_vm3, %v87_v41  ;;  %107 = vst.msk [vmem:[%s7857_s4 + $0x40] sm:$0xff] %vm97_vm3, %v89_v31 }
 0x5b6   :  { %v63_v40 = vmul.f32 %v4289_v39, %v62_v25  ;;  %v92_v1 = vadd.f32 %v80_v57, %v74_v43  ;;  %106 = vst.msk [vmem:[%s7857_s4 + $0x38] sm:$0x7f] %vm105_vm4, %v88_v34  ;;  %114 = vst.msk [vmem:[%s7857_s4 + $0x78] sm:$0x7f] %vm105_vm4, %v96_v53 }
 0x5b7   :  { %v3974_v21 = vcombine.low %v3966_v26, %v3973_v60  ;;  %v3889_v8 = vcombine.low %v3881_v36, %v3888_v61  ;;  %108 = vst.msk [vmem:[%s7857_s4 + $0x48] sm:$0xff] %vm97_vm3, %v90_v47  ;;  %109 = vst.msk [vmem:[%s7857_s4 + $0x50] sm:$0xff] %vm97_vm3, %v91_v63  ;;  %v8628_v36 = vlaneseq }
 0x5b8   :  { %v81_v20 = vadd.f32 %v80_v57, %v63_v40  ;;  %110 = vst.msk [vmem:[%s7857_s4 + $0x58] sm:$0xff] %vm97_vm3, %v92_v1  ;;  %111 = vst.msk [vmem:[%s7857_s4 + $0x60] sm:$0xff] %vm97_vm3, %v93_v3 }
 0x5b9   :  { %v4027_v28 = vsel %vm4002_vm1, %v3974_v21, 0.0  ;;  %v4012_v50 = vsel %vm4002_vm1, %v3889_v8, 0.0  ;;  %112 = vst.msk [vmem:[%s7857_s4 + $0x68] sm:$0xff] %vm97_vm3, %v94_v38  ;;  %113 = vst.msk [vmem:[%s7857_s4 + $0x70] sm:$0xff] %vm97_vm3, %v95_v27  ;;  %v4054_v61 = vand.u32 127, %v8628_v36 }
 0x5ba   :  { %4028 = vadd.xlane.f32.xlu0 %v4027_v28  ;;  %4013 = vadd.xlane.f32.xlu1 %v4012_v50  ;;  %98 = vst.msk [vmem:[%s7857_s4] sm:$0xff] %vm97_vm3, %v81_v20  ;;  %s4409_s4 = smov [#allocation8]  }
 0x5bb   :  { %v4059_v58 = vadd.s32 4294967288, %v4054_v61  ;;  %v4066_v13 = vadd.s32 4294967280, %v4054_v61  ;;  %v4073_v11 = vadd.s32 4294967272, %v4054_v61  ;;  %v4080_v10 = vadd.s32 4294967264, %v4054_v61  ;;  %s4123_s1 = sshll.u32 %s4409_s4, 4  ;;  %s4124_s1 = int_to_ptr.vmem [resolvable:$true] %s4123_s1 }
 0x5bc   :  { %v4057_v18 = vsub.s32 %v4054_v61, %v8627_v42  ;;  %s4328_s6 = scalar_lea.vmem %s4124_s1, 32  ;;  %p4333_p11 = scmp.lt.s32.totalorder %s4124_s1, %s4124_s1 }
 0x5bd   :  { %v4062_v49 = vsub.s32 %v4059_v58, %v8627_v42  ;;  %v4069_v25 = vsub.s32 %v4066_v13, %v8627_v42  ;;  %v4076_v2 = vsub.s32 %v4073_v11, %v8627_v42  ;;  %v4083_v52 = vsub.s32 %v4080_v10, %v8627_v42  ;;  %p4329_p10 = scmp.ne.s32.totalorder %s4124_s1, %s4328_s6  ;;  %p4334_p12 = scmp.lt.s32.totalorder %s4328_s6, %s4328_s6 }
 0x5be   :  { %4031 = vadd.xlane.f32.xlu0 %v4030_v12  ;;  %4016 = vadd.xlane.f32.xlu1 %v4015_v32 }
 0x5bf   :  { %p4335_p13 = por %p4334_p12, %p4333_p11 }
 0x5c1   :  { %p4336_p0 = pnand %p4335_p13, %p4329_p10 }
 0x617   :  { %v4005_v26 = vpop.xlane.xlu0 %4004 }
 0x618   :  { %v4033_v15 = vmul.f32 0.25, %v4005_v26 }
 0x61a   :  { %v4058_v23 = vrot.slane %v4033_v15, %v4057_v18 }
 0x61b   :  { %v4020_v60 = vpop.xlane.xlu0 %4019 }
 0x61c   :  { %v4038_v6 = vmul.f32 0.25, %v4020_v60 }
 0x61e   :  { %v4090_v16 = vrot.slane %v4038_v6, %v4057_v18 }
 0x627   :  { %v4023_v21 = vpop.xlane.xlu0 %4022  ;;  %v4008_v8 = vpop.xlane.xlu1 %4007 }
 0x628   :  { %v4039_v12 = vmul.f32 0.25, %v4023_v21  ;;  %v4034_v32 = vmul.f32 0.25, %v4008_v8 }
 0x62a   :  { %v4094_v0 = vrot.slane %v4039_v12, %v4062_v49  ;;  %v4063_v24 = vrot.slane %v4034_v32, %v4062_v49 }
 0x62c   :  { %v4095_v5 = vsel %vm4064_vm5, %v4094_v0, %v4090_v16  ;;  %v4065_v29 = vsel %vm4064_vm5, %v4063_v24, %v4058_v23 }
 0x637   :  { %v4026_v28 = vpop.xlane.xlu0 %4025  ;;  %v4011_v50 = vpop.xlane.xlu1 %4010 }
 0x638   :  { %v4040_v39 = vmul.f32 0.25, %v4026_v28  ;;  %v4035_v40 = vmul.f32 0.25, %v4011_v50 }
 0x63a   :  { %v4099_v54 = vrot.slane %v4040_v39, %v4069_v25  ;;  %v4070_v22 = vrot.slane %v4035_v40, %v4069_v25 }
 0x63c   :  { %v4100_v37 = vsel %vm4071_vm6, %v4099_v54, %v4095_v5  ;;  %v4072_v42 = vsel %vm4071_vm6, %v4070_v22, %v4065_v29 }
 0x647   :  { %v4029_v17 = vpop.xlane.xlu0 %4028  ;;  %v4014_v44 = vpop.xlane.xlu1 %4013 }
 0x648   :  { %v4041_v55 = vmul.f32 0.25, %v4029_v17  ;;  %v4036_v45 = vmul.f32 0.25, %v4014_v44 }
 0x64a   :  { %v4104_v30 = vrot.slane %v4041_v55, %v4076_v2  ;;  %v4077_v19 = vrot.slane %v4036_v45, %v4076_v2 }
 0x64b   :  { %v4032_v7 = vpop.xlane.xlu0 %4031  ;;  %v4017_v62 = vpop.xlane.xlu1 %4016 }
 0x64c   :  { %v4042_v43 = vmul.f32 0.25, %v4032_v7  ;;  %v4037_v35 = vmul.f32 0.25, %v4017_v62  ;;  %v4079_v51 = vsel %vm4078_vm7, %v4077_v19, %v4072_v42  ;;  %v4105_v9 = vsel %vm4078_vm7, %v4104_v30, %v4100_v37 }
 0x64e   :  { %v4109_v14 = vrot.slane %v4042_v43, %v4083_v52  ;;  %v4084_v59 = vrot.slane %v4037_v35, %v4083_v52 }
 0x650   :  { %v4086_v57 = vsel %vm4085_vm8, %v4084_v59, %v4079_v51  ;;  %v4110_v20 = vsel %vm4085_vm8, %v4109_v14, %v4105_v9 }
 0x651   :  { %v4111_v4 = vsel %vm2174_vm2, %v4110_v20, %v4086_v57 }
 0x652   :  { %4114 = vst.msk [vmem:[#allocation8] sm:$0x3] %vm4113_vm9, %v4111_v4 }
 0x653   :  { %4339 = shalt.err (!%p4336_p0)
}
 0x654   :  { %s4340_s30 = scalar_lea.hbm %s7858_s5, 32 }
 0x655   :  { %p4341_p1 = scmp.ne.s32.totalorder %s7858_s5, %s4340_s30  ;;  %p4344_p2 = scmp.lt.u32.totalorder %s4340_s30, %s7858_s5 }
 0x657   :  { %p4346_p3 = pnand %p4344_p2, %p4341_p1 }
 0x659   :  { %4349 = shalt.err (!%p4346_p3)
}
 0x65a   :  { %4126 = dma.vmem_to_hbm [thread:$0]  %s4124_s1, 32, %s7858_s5, [#allocation4]  }
 0x65b   :  { %4354 = dma.done.wait [#allocation4], 32  }
 0x65c   :  { %4355 = vsyncadd [#allocation4], 4294967264 }
 0x65d   :  { %4132 = vsyncpa [#allocation4], 1 }
 0x65e   :  { %4133 = vsyncpa [#allocation5], 1 }
 0x65f   :  { %4134 = vsyncpa [#allocation7], 1 }

</bundles_post_ra>
